<compile_context>
chip_gen: v6e
topology: v6e:2x2x1
jax: 0.10.0
libtpu: 0.0.40
codegen_flags: <defaults>
</compile_context>

<pallas_src>
import functools

import jax
import jax.numpy as jnp
from jax.experimental import pallas as pl
from jax.experimental.pallas import tpu as pltpu


# ---------------------------------------------------------------------------
# Single-pass kernel: one (tb, C, HW) block holds the full spatial extent.
# ---------------------------------------------------------------------------
def _se_kernel(x_ref, w1t_ref, w2t_ref, o_ref, *, inv_hw):
    # Squeeze: fp32-accumulated global average pool over the spatial (lane) axis.
    pooled = jnp.sum(x_ref[...], axis=-1, dtype=jnp.float32) * inv_hw       # (tb, C)
    # Excitation: FC -> ReLU -> FC -> Sigmoid (tiny, fp32, lane-major operands).
    h = jnp.maximum(
        jnp.dot(pooled, w1t_ref[...], preferred_element_type=jnp.float32), 0.0)
    gate = jax.nn.sigmoid(
        jnp.dot(h, w2t_ref[...], preferred_element_type=jnp.float32))       # (tb, C)
    # Scale: re-read the block (never keep the slab live across the matmuls),
    # multiply in fp32, cast only the product.
    o_ref[...] = (x_ref[...] * gate[:, :, None]).astype(o_ref.dtype)


# ---------------------------------------------------------------------------
# Tiled path (VMEM escape hatch): pool+gate kernel with HW tiles, then scale.
# ---------------------------------------------------------------------------
def _se_pool_gate_kernel(x_ref, w1t_ref, w2t_ref, gate_ref, acc_ref, *, hw, inv_hw):
    t = pl.program_id(1)

    @pl.when(t == 0)
    def _():
        acc_ref[...] = jnp.zeros_like(acc_ref)

    # Mask the spatial padding of a partial last tile before pooling.
    thw = x_ref.shape[-1]
    lane = jax.lax.broadcasted_iota(jnp.int32, (1, 1, thw), 2)
    valid = lane < (hw - t * thw)
    xm = jnp.where(valid, x_ref[...], jnp.zeros((), x_ref.dtype))
    acc_ref[...] += jnp.sum(xm, axis=-1, dtype=jnp.float32)

    @pl.when(t == pl.num_programs(1) - 1)
    def _():
        pooled = acc_ref[...] * inv_hw                                       # (tb, C)
        h = jnp.maximum(
            jnp.dot(pooled, w1t_ref[...], preferred_element_type=jnp.float32), 0.0)
        g = jax.nn.sigmoid(
            jnp.dot(h, w2t_ref[...], preferred_element_type=jnp.float32))    # (tb, C)
        gate_ref[...] = g[:, :, None]                                        # (tb, C, 1)


def _se_scale_kernel(x_ref, gate_ref, o_ref):
    # gate is fp32; multiply in fp32 and cast only the product.
    o_ref[...] = (x_ref[...] * gate_ref[...]).astype(o_ref.dtype)


# ---------------------------------------------------------------------------
# Block-size / core-count helpers.
# ---------------------------------------------------------------------------
def _num_tensorcores():
    """Best-effort TensorCores-per-chip (2 on v7x, 1 on v5e/v6e). Defaults to 1."""
    try:
        info = pltpu.get_tpu_info()
        for name in ("num_cores", "core_count", "num_tensorcores", "tensorcore_count"):
            n = getattr(info, name, None)
            if n:
                return max(1, int(n))
    except Exception:
        pass
    try:
        n = getattr(jax.devices()[0], "num_cores", None)
        if n:
            return max(1, int(n))
    except Exception:
        pass
    return 1


def _pick_batch_block(B, per_batch_bytes, target_bytes, num_cores):
    """~target_bytes per block; on multi-core chips keep >=2 blocks per core."""
    tb = max(1, int(target_bytes) // max(1, per_batch_bytes))
    if num_cores > 1:
        min_blocks = 2 * num_cores           # >=2 "parallel" blocks per TensorCore
        if B >= min_blocks:
            tb = min(tb, B // min_blocks)
    return max(1, min(tb, B))


# ---------------------------------------------------------------------------
# pallas_call wrappers.
# ---------------------------------------------------------------------------
def _se_single_pass(x_r, w1t, w2t, *, tb, inv_hw, donate_x):
    B, C, HW = x_r.shape
    hidden = w1t.shape[1]
    grid = (pl.cdiv(B, tb),)
    kernel = functools.partial(_se_kernel, inv_hw=inv_hw)
    return pl.pallas_call(
        kernel,
        out_shape=jax.ShapeDtypeStruct((B, C, HW), x_r.dtype),
        grid_spec=pltpu.PrefetchScalarGridSpec(
            num_scalar_prefetch=0,
            grid=grid,
            in_specs=[
                pl.BlockSpec((tb, C, HW), lambda b: (b, 0, 0)),
                pl.BlockSpec((C, hidden), lambda b: (0, 0)),
                pl.BlockSpec((hidden, C), lambda b: (0, 0)),
            ],
            out_specs=pl.BlockSpec((tb, C, HW), lambda b: (b, 0, 0)),
        ),
        compiler_params=pltpu.CompilerParams(
            dimension_semantics=("parallel",),
            vmem_limit_bytes=32 * 1024 * 1024,    # 4x block (<=6 MiB) fits easily
        ),
        # Only alias when the caller actually donates x (e.g. under jit with
        # donate_argnums); aliasing a live caller buffer would force a copy.
        input_output_aliases=({0: 0} if donate_x else {}),
    )(x_r, w1t, w2t)


def _se_tiled(x_r, w1t, w2t, *, target_block_bytes, inv_hw, donate_x):
    B, C, HW = x_r.shape
    hidden = w1t.shape[1]
    itemsize = jnp.dtype(x_r.dtype).itemsize
    tb = 1                                              # one batch element per block
    # Spatial tile: multiple of 128 lanes, ~target_block_bytes per block.
    thw = max(1, int(target_block_bytes) // max(1, tb * C * itemsize))
    if thw >= HW:
        thw = HW
    else:
        thw = max(128, (thw // 128) * 128)
    nt = pl.cdiv(HW, thw)
    grid = (pl.cdiv(B, tb), nt)
    vmem_limit = 32 * 1024 * 1024

    pool_kernel = functools.partial(_se_pool_gate_kernel, hw=HW, inv_hw=inv_hw)
    gate = pl.pallas_call(
        pool_kernel,
        out_shape=jax.ShapeDtypeStruct((B, C, 1), jnp.float32),
        grid_spec=pltpu.PrefetchScalarGridSpec(
            num_scalar_prefetch=0,
            grid=grid,
            in_specs=[
                pl.BlockSpec((tb, C, thw), lambda b, t: (b, 0, t)),
                pl.BlockSpec((C, hidden), lambda b, t: (0, 0)),
                pl.BlockSpec((hidden, C), lambda b, t: (0, 0)),
            ],
            out_specs=pl.BlockSpec((tb, C, 1), lambda b, t: (b, 0, 0)),
            scratch_shapes=[pltpu.VMEM((tb, C), jnp.float32)],
        ),
        compiler_params=pltpu.CompilerParams(
            dimension_semantics=("parallel", "arbitrary"),
            vmem_limit_bytes=vmem_limit,
        ),
    )(x_r, w1t, w2t)

    return pl.pallas_call(
        _se_scale_kernel,
        out_shape=jax.ShapeDtypeStruct((B, C, HW), x_r.dtype),
        grid_spec=pltpu.PrefetchScalarGridSpec(
            num_scalar_prefetch=0,
            grid=grid,
            in_specs=[
                pl.BlockSpec((tb, C, thw), lambda b, t: (b, 0, t)),
                pl.BlockSpec((tb, C, 1), lambda b, t: (b, 0, 0)),
            ],
            out_specs=pl.BlockSpec((tb, C, thw), lambda b, t: (b, 0, t)),
        ),
        compiler_params=pltpu.CompilerParams(
            dimension_semantics=("parallel", "parallel"),
            vmem_limit_bytes=vmem_limit,
        ),
        input_output_aliases=({0: 0} if donate_x else {}),
    )(x_r, gate)


def se_layer(x, w1, w2, *,
             target_block_bytes=2 << 20,
             max_single_block_bytes=6 << 20,
             donate_x=False):
    """x: (B, C, H, W) NCHW; w1: (C//r, C); w2: (C, C//r). Returns NCHW output."""
    B, C, H, W = x.shape
    HW = H * W
    itemsize = jnp.dtype(x.dtype).itemsize
    per_batch_bytes = C * HW * itemsize

    x_r = x.reshape(B, C, HW)                   # free reshape -- no transpose
    w1t = jnp.asarray(w1, jnp.float32).T        # (C, hidden)  tiny, cast once
    w2t = jnp.asarray(w2, jnp.float32).T        # (hidden, C)
    ncores = _num_tensorcores()
    inv_hw = 1.0 / HW

    if per_batch_bytes <= max_single_block_bytes:
        tb = _pick_batch_block(B, per_batch_bytes, target_block_bytes, ncores)
        out = _se_single_pass(x_r, w1t, w2t, tb=tb, inv_hw=inv_hw, donate_x=donate_x)
    else:
        out = _se_tiled(x_r, w1t, w2t, target_block_bytes=target_block_bytes,
                        inv_hw=inv_hw, donate_x=donate_x)
    return out.reshape(B, C, H, W)


def se_layer_ref(x, w1, w2):
    """Pure-JAX reference matching the PyTorch forward."""
    y = jnp.mean(x.astype(jnp.float32), axis=(2, 3))              # (B, C)
    y = jnp.maximum(y @ w1.astype(jnp.float32).T, 0.0)            # (B, C//r)
    y = jax.nn.sigmoid(y @ w2.astype(jnp.float32).T)              # (B, C)
    return (x.astype(jnp.float32) * y[:, :, None, None]).astype(x.dtype)


if __name__ == "__main__":
    key = jax.random.PRNGKey(0)
    kx, k1, k2, kx2 = jax.random.split(key, 4)

    # --- single-pass path: C=128, HW=256 (lane-dense stored dim) ---
    B, C, H, W = 8, 128, 16, 16
    reduction = 16
    hidden = C // reduction
    x = jax.random.normal(kx, (B, C, H, W), dtype=jnp.float32)
    # PyTorch nn.Linear stores weights as (out_features, in_features).
    w1 = jax.random.normal(k1, (hidden, C), dtype=jnp.float32) * 0.1
    w2 = jax.random.normal(k2, (C, hidden), dtype=jnp.float32) * 0.1

    out = jax.block_until_ready(se_layer(x, w1, w2))
    ref = se_layer_ref(x, w1, w2)
    assert out.shape == (B, C, H, W)
    assert jnp.allclose(out, ref, atol=1e-5, rtol=1e-5)

    # --- tiled (VMEM escape-hatch) path, forced at a small shape ---
    # HW = 192 with thw = 128 -> 2 spatial tiles, second one partial (masked).
    B2, H2, W2 = 2, 16, 12
    x2 = jax.random.normal(kx2, (B2, C, H2, W2), dtype=jnp.float32)
    out2 = jax.block_until_ready(
        se_layer(x2, w1, w2,
                 target_block_bytes=128 * 128 * 4,   # -> thw = 128
                 max_single_block_bytes=0))          # force the tiled path
    ref2 = se_layer_ref(x2, w1, w2)
    assert out2.shape == (B2, C, H2, W2)
    assert jnp.allclose(out2, ref2, atol=1e-5, rtol=1e-5)

    print("KERNEL_OK")
</pallas_src>

<mosaic_0001>
module attributes {stable_mosaic.version = 11 : i64} {
  func.func @_se_kernel(%arg0: i32, %arg1: memref<8x128x256xf32, #tpu.memory_space<vmem>>, %arg2: memref<128x8xf32, #tpu.memory_space<vmem>>, %arg3: memref<8x128xf32, #tpu.memory_space<vmem>>, %arg4: memref<8x128x256xf32, #tpu.memory_space<vmem>>) attributes {dimension_semantics = [#tpu.dimension_semantics<parallel>], iteration_bounds = array<i64: 1>, scalar_prefetch = 0 : i64, scratch_operands = 0 : i64, tpu.core_type = #tpu.core_type<tc>, window_params = [{transform_indices = @transform_0, window_bounds = array<i64: 8, 128, 256>}, {pipeline_mode = #tpu.pipeline_mode<synchronous>, transform_indices = @transform_1, window_bounds = array<i64: 128, 8>}, {pipeline_mode = #tpu.pipeline_mode<synchronous>, transform_indices = @transform_2, window_bounds = array<i64: 8, 128>}, {transform_indices = @transform_3, window_bounds = array<i64: 8, 128, 256>}]} {
    %c0 = arith.constant 0 : index
    %c0_0 = arith.constant 0 : index
    %c0_1 = arith.constant 0 : index
    %0 = vector.load %arg1[%c0, %c0_0, %c0_1] : memref<8x128x256xf32, #tpu.memory_space<vmem>>, vector<8x128x256xf32>
    %cst = arith.constant dense<0.000000e+00> : vector<8x128xf32>
    %1 = vector.multi_reduction <add>, %0, %cst [2] : vector<8x128x256xf32> to vector<8x128xf32>
    %cst_2 = arith.constant 3.906250e-03 : f32
    %2 = vector.broadcast %cst_2 : f32 to vector<8x128xf32>
    %3 = arith.mulf %1, %2 : vector<8x128xf32>
    %c0_3 = arith.constant 0 : index
    %c0_4 = arith.constant 0 : index
    %4 = vector.load %arg2[%c0_3, %c0_4] : memref<128x8xf32, #tpu.memory_space<vmem>>, vector<128x8xf32>
    %cst_5 = arith.constant dense<0.000000e+00> : vector<8x8xf32>
    %5 = tpu.matmul %3, %4, %cst_5 {dimension_numbers = #tpu.dot_dimension_numbers<[1], [0], [0], [1], [0, 0, 1, 1], [], []>} : vector<8x128xf32>, vector<128x8xf32>, vector<8x8xf32> -> vector<8x8xf32>
    %cst_6 = arith.constant 0.000000e+00 : f32
    %6 = vector.broadcast %cst_6 : f32 to vector<8x8xf32>
    %7 = arith.maximumf %5, %6 : vector<8x8xf32>
    %c0_7 = arith.constant 0 : index
    %c0_8 = arith.constant 0 : index
    %8 = vector.load %arg3[%c0_7, %c0_8] : memref<8x128xf32, #tpu.memory_space<vmem>>, vector<8x128xf32>
    %cst_9 = arith.constant dense<0.000000e+00> : vector<8x128xf32>
    %9 = tpu.matmul %7, %8, %cst_9 {dimension_numbers = #tpu.dot_dimension_numbers<[1], [0], [0], [1], [0, 0, 1, 1], [], []>} : vector<8x8xf32>, vector<8x128xf32>, vector<8x128xf32> -> vector<8x128xf32>
    %10 = arith.negf %9 : vector<8x128xf32>
    %11 = math.exp %10 : vector<8x128xf32>
    %cst_10 = arith.constant 1.000000e+00 : f32
    %12 = vector.broadcast %cst_10 : f32 to vector<8x128xf32>
    %13 = arith.addf %12, %11 : vector<8x128xf32>
    %14 = arith.divf %12, %13 : vector<8x128xf32>
    %c0_11 = arith.constant 0 : index
    %c0_12 = arith.constant 0 : index
    %c0_13 = arith.constant 0 : index
    %15 = vector.load %arg1[%c0_11, %c0_12, %c0_13] : memref<8x128x256xf32, #tpu.memory_space<vmem>>, vector<8x128x256xf32>
    %16 = vector.shape_cast %14 : vector<8x128xf32> to vector<8x128x1xf32>
    %17 = vector.broadcast %16 : vector<8x128x1xf32> to vector<8x128x256xf32>
    %18 = arith.mulf %15, %17 : vector<8x128x256xf32>
    %c0_14 = arith.constant 0 : index
    %c0_15 = arith.constant 0 : index
    %c0_16 = arith.constant 0 : index
    %19 = vector.load %arg4[%c0_14, %c0_15, %c0_16] : memref<8x128x256xf32, #tpu.memory_space<vmem>>, vector<8x128x256xf32>
    tpu.vector_store %arg4[%c0_14, %c0_15, %c0_16], %18 {strides = array<i32>} : memref<8x128x256xf32, #tpu.memory_space<vmem>>, vector<8x128x256xf32>,
    return
  }
  func.func @transform_0(%arg0: i32) -> (i32, i32, i32) {
    %c0_i32 = arith.constant 0 : i32
    %c0_i32_0 = arith.constant 0 : i32
    %c0_i32_1 = arith.constant 0 : i32
    return %arg0, %c0_i32, %c0_i32_0 : i32, i32, i32
  }
  func.func @transform_1(%arg0: i32) -> (i32, i32) {
    %c0_i32 = arith.constant 0 : i32
    %c0_i32_0 = arith.constant 0 : i32
    %c0_i32_1 = arith.constant 0 : i32
    return %c0_i32, %c0_i32_0 : i32, i32
  }
  func.func @transform_2(%arg0: i32) -> (i32, i32) {
    %c0_i32 = arith.constant 0 : i32
    %c0_i32_0 = arith.constant 0 : i32
    %c0_i32_1 = arith.constant 0 : i32
    return %c0_i32, %c0_i32_0 : i32, i32
  }
  func.func @transform_3(%arg0: i32) -> (i32, i32, i32) {
    %c0_i32 = arith.constant 0 : i32
    %c0_i32_0 = arith.constant 0 : i32
    %c0_i32_1 = arith.constant 0 : i32
    return %arg0, %c0_i32, %c0_i32_0 : i32, i32, i32
  }
}

</mosaic_0001>

<bundles_post_ra>
// kernel: tpu_custom_call.1
= control target key start
LH: loop header
LB: loop body
LE: loop exit
PB: predicated region body
PF: predicated region fallthrough
CT: control target
= control target key end

     0   :  { %8 = vsyncpa [#allocation3], 0  ;;  %s4039_s0 = inlined_call_operand.hbm [shape: f32[8,128,256], index: 0, kind: input, shape index: {}]   ;;  %s4040_s1 = inlined_call_operand.vmem [shape: f32[128,8], index: 1, kind: input, shape index: {}]   ;;  %s4041_s2 = inlined_call_operand.vmem [shape: f32[8,128], index: 2, kind: input, shape index: {}]   ;;  %s4042_s3 = inlined_call_operand.hbm [shape: f32[8,128,256], index: 3, kind: output, shape index: {}]  }
   0x1   :  { %9 = vsyncpa [#allocation4], 0  ;;  %s3208_s12 = smov [#allocation2]  }
   0x2   :  { %s15_s13 = sshll.u32 %s3208_s12, 4  ;;  %s16_s13 = int_to_ptr.vmem [resolvable:$true] %s15_s13 }
   0x3   :  { %s3172_s14 = scalar_lea.vmem %s16_s13, 32768  ;;  %p3177_p1 = scmp.lt.s32.totalorder %s16_s13, %s16_s13 }
   0x4   :  { %p3173_p0 = scmp.ne.s32.totalorder %s16_s13, %s3172_s14  ;;  %p3178_p2 = scmp.lt.s32.totalorder %s3172_s14, %s3172_s14 }
   0x6   :  { %p3179_p3 = por %p3178_p2, %p3177_p1 }
   0x8   :  { %p3180_p4 = pnand %p3179_p3, %p3173_p0 }
   0xa   :  { %3183 = shalt.err (!%p3180_p4)
}
   0xb   :  { %s3209_s15 = smov 256   ;;  %s3210_s16 = smov 16  }
   0xc   :  { %21 = dma.hbm_to_vmem [thread:$0]  %s4039_s0, 32768, %s16_s13, [#allocation3], %s3209_s15, %s3209_s15, %s3210_s16  }
   0xd   :  { %3204 = dma.done.wait [#allocation3], 32768  }
   0xe   :  { %3205 = vsyncadd [#allocation3], 4294934528  ;;  %v61_v0 = vld [vmem:[#allocation2 + $0x100] sm:$0xff]  ;;  %v62_v1 = vld [vmem:[#allocation2 + $0x108] sm:$0xff]  ;;  %vm952_vm0 = vcmask 130112   ;;  %vm4043_vm1 = vcmask 195712  }
   0xf   :  { %v29_v2 = vld [vmem:[#allocation2] sm:$0xff]  ;;  %v333_v3 = vadd.f32 %v62_v1, %v61_v0  ;;  %v30_v4 = vld [vmem:[#allocation2 + $0x8] sm:$0xff]  ;;  %v63_v5 = vld [vmem:[#allocation2 + $0x110] sm:$0xff]  ;;  %vm966_vm2 = vcmask 261312   ;;  %vm973_vm3 = vcmask 326912   ;;  %vm980_vm4 = vcmask 392512  }
  0x10   :  { %v64_v6 = vld [vmem:[#allocation2 + $0x118] sm:$0xff]  ;;  %v285_v7 = vadd.f32 %v30_v4, %v29_v2  ;;  %v31_v8 = vld [vmem:[#allocation2 + $0x10] sm:$0xff]  ;;  %v65_v12 = vld [vmem:[#allocation2 + $0x120] sm:$0xff]  ;;  %vm987_vm5 = vcmask 458112   ;;  %vm3212_vm6 = vmmov 0   ;;  %vm994_vm7 = vcmask 523712  }
  0x11   :  { %v32_v9 = vld [vmem:[#allocation2 + $0x18] sm:$0xff]  ;;  %334 = vadd.xlane.f32.xlu1 %v333_v3  ;;  %v336_v10 = vadd.f32 %v64_v6, %v63_v5  ;;  %v66_v13 = vld [vmem:[#allocation2 + $0x128] sm:$0xff]  ;;  %v33_v14 = vld [vmem:[#allocation2 + $0x20] sm:$0xff]  ;;  %vm1001_vm8 = vcmask 589312   ;;  %vm1008_vm9 = vcmask 654912   ;;  %vm1015_vm10 = vcmask 720512  }
  0x12   :  { %286 = vadd.xlane.f32.xlu0 %v285_v7  ;;  %v288_v11 = vadd.f32 %v32_v9, %v31_v8  ;;  %v34_v15 = vld [vmem:[#allocation2 + $0x28] sm:$0xff]  ;;  %v339_v16 = vadd.f32 %v66_v13, %v65_v12  ;;  %v95_v18 = vld [vmem:[#allocation2 + $0x210] sm:$0xff]  ;;  %v96_v19 = vld [vmem:[#allocation2 + $0x218] sm:$0xff]  ;;  %vm1022_vm11 = vcmask 786112   ;;  %vm1029_vm12 = vcmask 851712  }
  0x13   :  { %v291_v17 = vadd.f32 %v34_v15, %v33_v14  ;;  %v93_v20 = vld [vmem:[#allocation2 + $0x200] sm:$0xff]  ;;  %v94_v21 = vld [vmem:[#allocation2 + $0x208] sm:$0xff]  ;;  %v384_v22 = vadd.f32 %v96_v19, %v95_v18  ;;  %v67_v24 = vld [vmem:[#allocation2 + $0x130] sm:$0xff]  ;;  %vm1036_vm13 = vcmask 917312   ;;  %vm1043_vm14 = vcmask 982912  }
  0x14   :  { %v381_v23 = vadd.f32 %v94_v21, %v93_v20  ;;  %v68_v25 = vld [vmem:[#allocation2 + $0x138] sm:$0xff]  ;;  %v35_v26 = vld [vmem:[#allocation2 + $0x30] sm:$0xff]  ;;  %v125_v30 = vld [vmem:[#allocation2 + $0x300] sm:$0xff]  ;;  %vm1050_vm15 = vcmask 1048512  }
  0x15   :  { %337 = vadd.xlane.f32.xlu1 %v336_v10  ;;  %v36_v27 = vld [vmem:[#allocation2 + $0x38] sm:$0xff]  ;;  %v342_v28 = vadd.f32 %v68_v25, %v67_v24  ;;  %v126_v31 = vld [vmem:[#allocation2 + $0x308] sm:$0xff]  ;;  %v97_v32 = vld [vmem:[#allocation2 + $0x220] sm:$0xff] }
  0x16   :  { %289 = vadd.xlane.f32.xlu0 %v288_v11  ;;  %v294_v29 = vadd.f32 %v36_v27, %v35_v26  ;;  %v98_v33 = vld [vmem:[#allocation2 + $0x228] sm:$0xff]  ;;  %v429_v34 = vadd.f32 %v126_v31, %v125_v30  ;;  %v37_v36 = vld [vmem:[#allocation2 + $0x40] sm:$0xff]  ;;  %v127_v38 = vld [vmem:[#allocation2 + $0x310] sm:$0xff] }
  0x17   :  { %v387_v35 = vadd.f32 %v98_v33, %v97_v32  ;;  %v38_v37 = vld [vmem:[#allocation2 + $0x48] sm:$0xff]  ;;  %v128_v39 = vld [vmem:[#allocation2 + $0x318] sm:$0xff]  ;;  %v99_v42 = vld [vmem:[#allocation2 + $0x230] sm:$0xff] }
  0x18   :  { %v297_v40 = vadd.f32 %v38_v37, %v37_v36  ;;  %v432_v41 = vadd.f32 %v128_v39, %v127_v38  ;;  %v100_v43 = vld [vmem:[#allocation2 + $0x238] sm:$0xff]  ;;  %v69_v44 = vld [vmem:[#allocation2 + $0x140] sm:$0xff]  ;;  %v70_v45 = vld [vmem:[#allocation2 + $0x148] sm:$0xff] }
  0x19   :  { %340 = vadd.xlane.f32.xlu1 %v339_v16  ;;  %v390_v46 = vadd.f32 %v100_v43, %v99_v42  ;;  %v345_v47 = vadd.f32 %v70_v45, %v69_v44  ;;  %v157_v48 = vld [vmem:[#allocation2 + $0x400] sm:$0xff]  ;;  %v158_v49 = vld [vmem:[#allocation2 + $0x408] sm:$0xff]  ;;  %v39_v54 = vld [vmem:[#allocation2 + $0x50] sm:$0xff] }
  0x1a   :  { %292 = vadd.xlane.f32.xlu0 %v291_v17  ;;  %v129_v50 = vld [vmem:[#allocation2 + $0x320] sm:$0xff]  ;;  %v130_v51 = vld [vmem:[#allocation2 + $0x328] sm:$0xff]  ;;  %v477_v52 = vadd.f32 %v158_v49, %v157_v48  ;;  %v40_v55 = vld [vmem:[#allocation2 + $0x58] sm:$0xff] }
  0x1b   :  { %v435_v53 = vadd.f32 %v130_v51, %v129_v50  ;;  %v159_v56 = vld [vmem:[#allocation2 + $0x410] sm:$0xff]  ;;  %v160_v57 = vld [vmem:[#allocation2 + $0x418] sm:$0xff]  ;;  %v300_v58 = vadd.f32 %v40_v55, %v39_v54  ;;  %v101_v60 = vld [vmem:[#allocation2 + $0x240] sm:$0xff] }
  0x1c   :  { %v480_v59 = vadd.f32 %v160_v57, %v159_v56  ;;  %v102_v61 = vld [vmem:[#allocation2 + $0x248] sm:$0xff]  ;;  %v71_v62 = vld [vmem:[#allocation2 + $0x150] sm:$0xff]  ;;  %v72_v63 = vld [vmem:[#allocation2 + $0x158] sm:$0xff] }
  0x1d   :  { %385 = vadd.xlane.f32.xlu1 %v384_v22  ;;  %v393_v0 = vadd.f32 %v102_v61, %v101_v60  ;;  %v348_v1 = vadd.f32 %v72_v63, %v71_v62  ;;  %v161_v2 = vld [vmem:[#allocation2 + $0x420] sm:$0xff]  ;;  %v162_v3 = vld [vmem:[#allocation2 + $0x428] sm:$0xff]  ;;  %v131_v4 = vld [vmem:[#allocation2 + $0x330] sm:$0xff] }
  0x1e   :  { %382 = vadd.xlane.f32.xlu0 %v381_v23  ;;  %v132_v5 = vld [vmem:[#allocation2 + $0x338] sm:$0xff]  ;;  %v483_v6 = vadd.f32 %v162_v3, %v161_v2  ;;  %v191_v8 = vld [vmem:[#allocation2 + $0x510] sm:$0xff]  ;;  %v189_v10 = vld [vmem:[#allocation2 + $0x500] sm:$0xff] }
  0x1f   :  { %v438_v7 = vadd.f32 %v132_v5, %v131_v4  ;;  %v192_v9 = vld [vmem:[#allocation2 + $0x518] sm:$0xff]  ;;  %v190_v11 = vld [vmem:[#allocation2 + $0x508] sm:$0xff]  ;;  %v73_v14 = vld [vmem:[#allocation2 + $0x160] sm:$0xff] }
  0x20   :  { %v528_v12 = vadd.f32 %v192_v9, %v191_v8  ;;  %v525_v13 = vadd.f32 %v190_v11, %v189_v10  ;;  %v74_v15 = vld [vmem:[#allocation2 + $0x168] sm:$0xff]  ;;  %v41_v16 = vld [vmem:[#allocation2 + $0x60] sm:$0xff]  ;;  %v103_v22 = vld [vmem:[#allocation2 + $0x250] sm:$0xff] }
  0x21   :  { %343 = vadd.xlane.f32.xlu1 %v342_v28  ;;  %v42_v17 = vld [vmem:[#allocation2 + $0x68] sm:$0xff]  ;;  %v351_v18 = vadd.f32 %v74_v15, %v73_v14  ;;  %v133_v20 = vld [vmem:[#allocation2 + $0x340] sm:$0xff]  ;;  %v104_v23 = vld [vmem:[#allocation2 + $0x258] sm:$0xff] }
  0x22   :  { %295 = vadd.xlane.f32.xlu0 %v294_v29  ;;  %v303_v19 = vadd.f32 %v42_v17, %v41_v16  ;;  %v134_v21 = vld [vmem:[#allocation2 + $0x348] sm:$0xff]  ;;  %v396_v25 = vadd.f32 %v104_v23, %v103_v22  ;;  %v193_v26 = vld [vmem:[#allocation2 + $0x520] sm:$0xff]  ;;  %v163_v28 = vld [vmem:[#allocation2 + $0x430] sm:$0xff] }
  0x23   :  { %v441_v24 = vadd.f32 %v134_v21, %v133_v20  ;;  %v194_v27 = vld [vmem:[#allocation2 + $0x528] sm:$0xff]  ;;  %v164_v29 = vld [vmem:[#allocation2 + $0x438] sm:$0xff]  ;;  %v223_v32 = vld [vmem:[#allocation2 + $0x610] sm:$0xff] }
  0x24   :  { %v531_v30 = vadd.f32 %v194_v27, %v193_v26  ;;  %v486_v31 = vadd.f32 %v164_v29, %v163_v28  ;;  %v224_v33 = vld [vmem:[#allocation2 + $0x618] sm:$0xff]  ;;  %v75_v38 = vld [vmem:[#allocation2 + $0x170] sm:$0xff]  ;;  %v253_v56 = vld [vmem:[#allocation2 + $0x700] sm:$0xff] }
  0x25   :  { %430 = vadd.xlane.f32.xlu1 %v429_v34  ;;  %v221_v34 = vld [vmem:[#allocation2 + $0x600] sm:$0xff]  ;;  %v576_v36 = vadd.f32 %v224_v33, %v223_v32  ;;  %v76_v39 = vld [vmem:[#allocation2 + $0x178] sm:$0xff]  ;;  %v135_v44 = vld [vmem:[#allocation2 + $0x350] sm:$0xff] }
  0x26   :  { %388 = vadd.xlane.f32.xlu0 %v387_v35  ;;  %v222_v35 = vld [vmem:[#allocation2 + $0x608] sm:$0xff]  ;;  %v354_v42 = vadd.f32 %v76_v39, %v75_v38  ;;  %v136_v45 = vld [vmem:[#allocation2 + $0x358] sm:$0xff]  ;;  %v195_v50 = vld [vmem:[#allocation2 + $0x530] sm:$0xff] }
  0x27   :  { %v573_v37 = vadd.f32 %v222_v35, %v221_v34  ;;  %v444_v48 = vadd.f32 %v136_v45, %v135_v44  ;;  %v196_v51 = vld [vmem:[#allocation2 + $0x538] sm:$0xff]  ;;  %v254_v57 = vld [vmem:[#allocation2 + $0x708] sm:$0xff]  ;;  %v45_v62 = vld [vmem:[#allocation2 + $0x80] sm:$0xff] }
  0x28   :  { %v534_v54 = vadd.f32 %v196_v51, %v195_v50  ;;  %v621_v60 = vadd.f32 %v254_v57, %v253_v56  ;;  %v46_v63 = vld [vmem:[#allocation2 + $0x88] sm:$0xff]  ;;  %v107_v4 = vld [vmem:[#allocation2 + $0x270] sm:$0xff]  ;;  %v108_v5 = vld [vmem:[#allocation2 + $0x278] sm:$0xff] }
  0x29   :  { %298 = vadd.xlane.f32.xlu1 %v297_v40  ;;  %v43_v40 = vld [vmem:[#allocation2 + $0x70] sm:$0xff]  ;;  %v309_v2 = vadd.f32 %v46_v63, %v45_v62  ;;  %v402_v8 = vadd.f32 %v108_v5, %v107_v4  ;;  %v168_v11 = vld [vmem:[#allocation2 + $0x458] sm:$0xff]  ;;  %v109_v28 = vld [vmem:[#allocation2 + $0x280] sm:$0xff] }
  0x2a   :  { %433 = vadd.xlane.f32.xlu0 %v432_v41  ;;  %v44_v41 = vld [vmem:[#allocation2 + $0x78] sm:$0xff]  ;;  %v167_v10 = vld [vmem:[#allocation2 + $0x450] sm:$0xff]  ;;  %v110_v29 = vld [vmem:[#allocation2 + $0x288] sm:$0xff] }
  0x2b   :  { %v306_v43 = vadd.f32 %v44_v41, %v43_v40  ;;  %v492_v14 = vadd.f32 %v168_v11, %v167_v10  ;;  %v227_v16 = vld [vmem:[#allocation2 + $0x630] sm:$0xff]  ;;  %v228_v17 = vld [vmem:[#allocation2 + $0x638] sm:$0xff]  ;;  %v405_v32 = vadd.f32 %v110_v29, %v109_v28  ;;  %v169_v34 = vld [vmem:[#allocation2 + $0x460] sm:$0xff] }
  0x2c   :  { %v582_v20 = vadd.f32 %v228_v17, %v227_v16  ;;  %v47_v22 = vld [vmem:[#allocation2 + $0x90] sm:$0xff]  ;;  %v48_v23 = vld [vmem:[#allocation2 + $0x98] sm:$0xff]  ;;  %v170_v35 = vld [vmem:[#allocation2 + $0x468] sm:$0xff]  ;;  %v941_v16 = vlaneseq }
  0x2d   :  { %391 = vadd.xlane.f32.xlu1 %v390_v46  ;;  %v105_v46 = vld [vmem:[#allocation2 + $0x260] sm:$0xff]  ;;  %v312_v26 = vadd.f32 %v48_v23, %v47_v22  ;;  %v495_v38 = vadd.f32 %v170_v35, %v169_v34  ;;  %v230_v41 = vld [vmem:[#allocation2 + $0x648] sm:$0xff]  ;;  %v143_v22 = vld [vmem:[#allocation2 + $0x390] sm:$0xff] }
  0x2e   :  { %346 = vadd.xlane.f32.xlu0 %v345_v47  ;;  %v106_v47 = vld [vmem:[#allocation2 + $0x268] sm:$0xff]  ;;  %v229_v40 = vld [vmem:[#allocation2 + $0x640] sm:$0xff]  ;;  %v144_v23 = vld [vmem:[#allocation2 + $0x398] sm:$0xff] }
  0x2f   :  { %v399_v49 = vadd.f32 %v106_v47, %v105_v46  ;;  %v585_v44 = vadd.f32 %v230_v41, %v229_v40  ;;  %v49_v46 = vld [vmem:[#allocation2 + $0xa0] sm:$0xff]  ;;  %v50_v47 = vld [vmem:[#allocation2 + $0xa8] sm:$0xff]  ;;  %v456_v28 = vadd.f32 %v144_v23, %v143_v22 }
  0x30   :  { %v315_v50 = vadd.f32 %v50_v47, %v49_v46  ;;  %v233_v29 = vld [vmem:[#allocation2 + $0x660] sm:$0xff]  ;;  %v263_v46 = vld [vmem:[#allocation2 + $0x750] sm:$0xff]  ;;  %v264_v47 = vld [vmem:[#allocation2 + $0x758] sm:$0xff] }
  0x31   :  { %478 = vadd.xlane.f32.xlu1 %v477_v52  ;;  %v165_v52 = vld [vmem:[#allocation2 + $0x440] sm:$0xff] }
  0x32   :  { %436 = vadd.xlane.f32.xlu0 %v435_v53  ;;  %v166_v53 = vld [vmem:[#allocation2 + $0x448] sm:$0xff] }
  0x33   :  { %v489_v55 = vadd.f32 %v166_v53, %v165_v52  ;;  %v111_v52 = vld [vmem:[#allocation2 + $0x290] sm:$0xff]  ;;  %v112_v53 = vld [vmem:[#allocation2 + $0x298] sm:$0xff] }
  0x34   :  { %v408_v56 = vadd.f32 %v112_v53, %v111_v52 }
  0x35   :  { %301 = vadd.xlane.f32.xlu1 %v300_v58  ;;  %v225_v58 = vld [vmem:[#allocation2 + $0x620] sm:$0xff] }
  0x36   :  { %481 = vadd.xlane.f32.xlu0 %v480_v59  ;;  %v226_v59 = vld [vmem:[#allocation2 + $0x628] sm:$0xff] }
  0x37   :  { %v579_v61 = vadd.f32 %v226_v59, %v225_v58  ;;  %v171_v58 = vld [vmem:[#allocation2 + $0x470] sm:$0xff]  ;;  %v172_v59 = vld [vmem:[#allocation2 + $0x478] sm:$0xff] }
  0x38   :  { %v498_v62 = vadd.f32 %v172_v59, %v171_v58  ;;  %v116_v58 = vld [vmem:[#allocation2 + $0x2b8] sm:$0xff] }
  0x39   :  { %394 = vadd.xlane.f32.xlu1 %v393_v0  ;;  %v255_v0 = vld [vmem:[#allocation2 + $0x710] sm:$0xff] }
  0x3a   :  { %349 = vadd.xlane.f32.xlu0 %v348_v1  ;;  %v256_v1 = vld [vmem:[#allocation2 + $0x718] sm:$0xff] }
  0x3b   :  { %v624_v3 = vadd.f32 %v256_v1, %v255_v0  ;;  %v231_v0 = vld [vmem:[#allocation2 + $0x650] sm:$0xff]  ;;  %v232_v1 = vld [vmem:[#allocation2 + $0x658] sm:$0xff] }
  0x3c   :  { %v588_v4 = vadd.f32 %v232_v1, %v231_v0 }
  0x3d   :  { %484 = vadd.xlane.f32.xlu1 %v483_v6  ;;  %v77_v6 = vld [vmem:[#allocation2 + $0x180] sm:$0xff] }
  0x3e   :  { %439 = vadd.xlane.f32.xlu0 %v438_v7  ;;  %v78_v7 = vld [vmem:[#allocation2 + $0x188] sm:$0xff] }
  0x3f   :  { %v357_v9 = vadd.f32 %v78_v7, %v77_v6  ;;  %v51_v6 = vld [vmem:[#allocation2 + $0xb0] sm:$0xff]  ;;  %v52_v7 = vld [vmem:[#allocation2 + $0xb8] sm:$0xff] }
  0x40   :  { %v318_v10 = vadd.f32 %v52_v7, %v51_v6 }
  0x41   :  { %529 = vadd.xlane.f32.xlu1 %v528_v12  ;;  %v137_v12 = vld [vmem:[#allocation2 + $0x360] sm:$0xff] }
  0x42   :  { %526 = vadd.xlane.f32.xlu0 %v525_v13  ;;  %v138_v13 = vld [vmem:[#allocation2 + $0x368] sm:$0xff] }
  0x43   :  { %v447_v15 = vadd.f32 %v138_v13, %v137_v12  ;;  %v113_v12 = vld [vmem:[#allocation2 + $0x2a0] sm:$0xff]  ;;  %v114_v13 = vld [vmem:[#allocation2 + $0x2a8] sm:$0xff] }
  0x44   :  { %v411_v17 = vadd.f32 %v114_v13, %v113_v12  ;;  %v145_v13 = vld [vmem:[#allocation2 + $0x3a0] sm:$0xff] }
  0x45   :  { %352 = vadd.xlane.f32.xlu1 %v351_v18  ;;  %v197_v18 = vld [vmem:[#allocation2 + $0x540] sm:$0xff] }
  0x46   :  { %304 = vadd.xlane.f32.xlu0 %v303_v19  ;;  %v198_v19 = vld [vmem:[#allocation2 + $0x548] sm:$0xff] }
  0x47   :  { %v537_v21 = vadd.f32 %v198_v19, %v197_v18  ;;  %v173_v19 = vld [vmem:[#allocation2 + $0x480] sm:$0xff] }
  0x49   :  { %442 = vadd.xlane.f32.xlu1 %v441_v24  ;;  %v257_v24 = vld [vmem:[#allocation2 + $0x720] sm:$0xff] }
  0x4a   :  { %397 = vadd.xlane.f32.xlu0 %v396_v25  ;;  %v258_v25 = vld [vmem:[#allocation2 + $0x728] sm:$0xff] }
  0x4b   :  { %v627_v27 = vadd.f32 %v258_v25, %v257_v24  ;;  %v3242_v24 = vshrl.u32 %v941_v16, 7 }
  0x4d   :  { %532 = vadd.xlane.f32.xlu1 %v531_v30  ;;  %v79_v30 = vld [vmem:[#allocation2 + $0x190] sm:$0xff] }
  0x4e   :  { %487 = vadd.xlane.f32.xlu0 %v486_v31  ;;  %v80_v31 = vld [vmem:[#allocation2 + $0x198] sm:$0xff] }
  0x4f   :  { %v360_v33 = vadd.f32 %v80_v31, %v79_v30  ;;  %v234_v30 = vld [vmem:[#allocation2 + $0x668] sm:$0xff] }
  0x51   :  { %577 = vadd.xlane.f32.xlu1 %v576_v36  ;;  %v139_v36 = vld [vmem:[#allocation2 + $0x370] sm:$0xff] }
  0x52   :  { %574 = vadd.xlane.f32.xlu0 %v573_v37  ;;  %v140_v37 = vld [vmem:[#allocation2 + $0x378] sm:$0xff] }
  0x53   :  { %v450_v39 = vadd.f32 %v140_v37, %v139_v36  ;;  %v591_v37 = vadd.f32 %v234_v30, %v233_v29  ;;  %v205_v29 = vld [vmem:[#allocation2 + $0x580] sm:$0xff]  ;;  %v206_v30 = vld [vmem:[#allocation2 + $0x588] sm:$0xff] }
  0x55   :  { %355 = vadd.xlane.f32.xlu1 %v354_v42  ;;  %v199_v42 = vld [vmem:[#allocation2 + $0x550] sm:$0xff] }
  0x56   :  { %307 = vadd.xlane.f32.xlu0 %v306_v43  ;;  %v200_v43 = vld [vmem:[#allocation2 + $0x558] sm:$0xff] }
  0x57   :  { %v540_v45 = vadd.f32 %v200_v43, %v199_v42  ;;  %v53_v42 = vld [vmem:[#allocation2 + $0xc0] sm:$0xff]  ;;  %v54_v43 = vld [vmem:[#allocation2 + $0xc8] sm:$0xff] }
  0x58   :  { %v321_v52 = vadd.f32 %v54_v43, %v53_v42  ;;  %v56_v42 = vld [vmem:[#allocation2 + $0xd8] sm:$0xff] }
  0x59   :  { %445 = vadd.xlane.f32.xlu1 %v444_v48  ;;  %v259_v48 = vld [vmem:[#allocation2 + $0x730] sm:$0xff] }
  0x5a   :  { %400 = vadd.xlane.f32.xlu0 %v399_v49  ;;  %v260_v49 = vld [vmem:[#allocation2 + $0x738] sm:$0xff] }
  0x5b   :  { %v630_v51 = vadd.f32 %v260_v49, %v259_v48 }
  0x5d   :  { %535 = vadd.xlane.f32.xlu1 %v534_v54  ;;  %v81_v54 = vld [vmem:[#allocation2 + $0x1a0] sm:$0xff] }
  0x5e   :  { %490 = vadd.xlane.f32.xlu0 %v489_v55  ;;  %v82_v55 = vld [vmem:[#allocation2 + $0x1a8] sm:$0xff] }
  0x5f   :  { %v363_v57 = vadd.f32 %v82_v55, %v81_v54 }
  0x61   :  { %622 = vadd.xlane.f32.xlu1 %v621_v60  ;;  %v141_v60 = vld [vmem:[#allocation2 + $0x380] sm:$0xff] }
  0x62   :  { %580 = vadd.xlane.f32.xlu0 %v579_v61  ;;  %v142_v61 = vld [vmem:[#allocation2 + $0x388] sm:$0xff] }
  0x63   :  { %v453_v63 = vadd.f32 %v142_v61, %v141_v60 }
  0x65   :  { %310 = vadd.xlane.f32.xlu1 %v309_v2  ;;  %v201_v2 = vld [vmem:[#allocation2 + $0x560] sm:$0xff] }
  0x66   :  { %625 = vadd.xlane.f32.xlu0 %v624_v3  ;;  %v202_v3 = vld [vmem:[#allocation2 + $0x568] sm:$0xff] }
  0x67   :  { %v543_v5 = vadd.f32 %v202_v3, %v201_v2 }
  0x69   :  { %403 = vadd.xlane.f32.xlu1 %v402_v8  ;;  %v261_v8 = vld [vmem:[#allocation2 + $0x740] sm:$0xff] }
  0x6a   :  { %358 = vadd.xlane.f32.xlu0 %v357_v9  ;;  %v262_v9 = vld [vmem:[#allocation2 + $0x748] sm:$0xff] }
  0x6b   :  { %v633_v11 = vadd.f32 %v262_v9, %v261_v8  ;;  %v175_v8 = vld [vmem:[#allocation2 + $0x490] sm:$0xff]  ;;  %v176_v9 = vld [vmem:[#allocation2 + $0x498] sm:$0xff] }
  0x6d   :  { %493 = vadd.xlane.f32.xlu1 %v492_v14  ;;  %v83_v14 = vld [vmem:[#allocation2 + $0x1b0] sm:$0xff] }
  0x6e   :  { %448 = vadd.xlane.f32.xlu0 %v447_v15  ;;  %v84_v15 = vld [vmem:[#allocation2 + $0x1b8] sm:$0xff] }
  0x6f   :  { %v366_v18 = vadd.f32 %v84_v15, %v83_v14  ;;  %v146_v14 = vld [vmem:[#allocation2 + $0x3a8] sm:$0xff] }
  0x70   :  { %v459_v23 = vadd.f32 %v146_v14, %v145_v13 }
  0x71   :  { %583 = vadd.xlane.f32.xlu1 %v582_v20  ;;  %v174_v20 = vld [vmem:[#allocation2 + $0x488] sm:$0xff] }
  0x72   :  { %538 = vadd.xlane.f32.xlu0 %v537_v21  ;;  %v3240_v21 = vand.u32 127, %v941_v16  ;;  %v501_v25 = vadd.f32 %v174_v20, %v173_v19  ;;  %v504_v19 = vadd.f32 %v176_v9, %v175_v8 }
  0x74   :  { %v3247_v34 = vsub.s32 %v3240_v21, %v3242_v24 }
  0x75   :  { %313 = vadd.xlane.f32.xlu1 %v312_v26  ;;  %v947_v26 = vadd.s32 4294967288, %v3240_v21 }
  0x76   :  { %628 = vadd.xlane.f32.xlu0 %v627_v27 }
  0x77   :  { %v3250_v36 = vsub.s32 %v947_v26, %v3242_v24  ;;  %v236_v26 = vld [vmem:[#allocation2 + $0x678] sm:$0xff] }
  0x79   :  { %406 = vadd.xlane.f32.xlu1 %v405_v32  ;;  %v203_v32 = vld [vmem:[#allocation2 + $0x570] sm:$0xff] }
  0x7a   :  { %361 = vadd.xlane.f32.xlu0 %v360_v33  ;;  %v204_v33 = vld [vmem:[#allocation2 + $0x578] sm:$0xff] }
  0x7b   :  { %v546_v41 = vadd.f32 %v204_v33, %v203_v32 }
  0x7d   :  { %496 = vadd.xlane.f32.xlu1 %v495_v38  ;;  %v954_v38 = vadd.s32 4294967280, %v3240_v21 }
  0x7e   :  { %451 = vadd.xlane.f32.xlu0 %v450_v39 }
  0x81   :  { %586 = vadd.xlane.f32.xlu1 %v585_v44 }
  0x82   :  { %541 = vadd.xlane.f32.xlu0 %v540_v45 }
  0x85   :  { %316 = vadd.xlane.f32.xlu1 %v315_v50 }
  0x86   :  { %631 = vadd.xlane.f32.xlu0 %v630_v51  ;;  %v3256_v51 = vsub.s32 %v954_v38, %v3242_v24 }
  0x89   :  { %409 = vadd.xlane.f32.xlu1 %v408_v56  ;;  %v636_v56 = vadd.f32 %v264_v47, %v263_v46  ;;  %v266_v46 = vld [vmem:[#allocation2 + $0x768] sm:$0xff] }
  0x8a   :  { %364 = vadd.xlane.f32.xlu0 %v363_v57  ;;  %v115_v57 = vld [vmem:[#allocation2 + $0x2b0] sm:$0xff] }
  0x8b   :  { %v414_v3 = vadd.f32 %v116_v58, %v115_v57  ;;  %v118_v57 = vld [vmem:[#allocation2 + $0x2c8] sm:$0xff] }
  0x8d   :  { %499 = vadd.xlane.f32.xlu1 %v498_v62  ;;  %v85_v62 = vld [vmem:[#allocation2 + $0x1c0] sm:$0xff] }
  0x8e   :  { %454 = vadd.xlane.f32.xlu0 %v453_v63  ;;  %v86_v63 = vld [vmem:[#allocation2 + $0x1c8] sm:$0xff] }
  0x8f   :  { %v369_v7 = vadd.f32 %v86_v63, %v85_v62 }
  0x91   :  { %589 = vadd.xlane.f32.xlu1 %v588_v4  ;;  %v961_v4 = vadd.s32 4294967272, %v3240_v21 }
  0x92   :  { %544 = vadd.xlane.f32.xlu0 %v543_v5 }
  0x95   :  { %319 = vadd.xlane.f32.xlu1 %v318_v10 }
  0x96   :  { %634 = vadd.xlane.f32.xlu0 %v633_v11 }
  0x99   :  { %412 = vadd.xlane.f32.xlu1 %v411_v17 }
  0x9a   :  { %367 = vadd.xlane.f32.xlu0 %v366_v18  ;;  %v335_v27 = vpop.xlane.xlu1 %334  ;;  %v3269_v18 = vsub.s32 %v961_v4, %v3242_v24 }
  0x9b   :  { %v287_v31 = vpop.xlane.xlu0 %286  ;;  %v685_v35 = vmul.f32 0.00390625, %v335_v27 }
  0x9c   :  { %v669_v39 = vmul.f32 0.00390625, %v287_v31 }
  0x9d   :  { %502 = vadd.xlane.f32.xlu1 %v501_v25  ;;  %v1055_v49 = vrot.slane %v685_v35, %v3247_v34  ;;  %v235_v25 = vld [vmem:[#allocation2 + $0x670] sm:$0xff] }
  0x9e   :  { %457 = vadd.xlane.f32.xlu0 %v456_v28  ;;  %v338_v40 = vpop.xlane.xlu1 %337  ;;  %v946_v53 = vrot.slane %v669_v39, %v3247_v34  ;;  %v594_v35 = vadd.f32 %v236_v26, %v235_v25  ;;  %v238_v25 = vld [vmem:[#allocation2 + $0x688] sm:$0xff] }
  0x9f   :  { %v686_v44 = vmul.f32 0.00390625, %v338_v40  ;;  %v290_v45 = vpop.xlane.xlu0 %289  ;;  %v549_v40 = vadd.f32 %v206_v30, %v205_v29  ;;  %v208_v29 = vld [vmem:[#allocation2 + $0x598] sm:$0xff] }
  0xa0   :  { %v670_v48 = vmul.f32 0.00390625, %v290_v45  ;;  %v265_v45 = vld [vmem:[#allocation2 + $0x760] sm:$0xff] }
  0xa1   :  { %v1059_v50 = vrot.slane %v686_v44, %v3250_v36  ;;  %592 = vadd.xlane.f32.xlu1 %v591_v37  ;;  %v968_v37 = vadd.s32 4294967264, %v3240_v21 }
  0xa2   :  { %v951_v54 = vrot.slane %v670_v48, %v3250_v36  ;;  %547 = vadd.xlane.f32.xlu0 %v546_v41  ;;  %v341_v55 = vpop.xlane.xlu1 %340  ;;  %v55_v41 = vld [vmem:[#allocation2 + $0xd0] sm:$0xff] }
  0xa3   :  { %v1060_v59 = vsel %vm952_vm0, %v1059_v50, %v1055_v49  ;;  %v687_v60 = vmul.f32 0.00390625, %v341_v55  ;;  %v293_v61 = vpop.xlane.xlu0 %292  ;;  %v3279_v49 = vsub.s32 %v968_v37, %v3242_v24  ;;  %v324_v50 = vadd.f32 %v56_v42, %v55_v41  ;;  %v58_v41 = vld [vmem:[#allocation2 + $0xe8] sm:$0xff] }
  0xa4   :  { %v953_v0 = vsel %vm952_vm0, %v951_v54, %v946_v53  ;;  %v671_v1 = vmul.f32 0.00390625, %v293_v61  ;;  %v639_v55 = vadd.f32 %v266_v46, %v265_v45  ;;  %v88_v61 = vld [vmem:[#allocation2 + $0x1d8] sm:$0xff]  ;;  %v267_v45 = vld [vmem:[#allocation2 + $0x770] sm:$0xff] }
  0xa5   :  { %v1064_v2 = vrot.slane %v687_v60, %v3256_v51  ;;  %322 = vadd.xlane.f32.xlu1 %v321_v52  ;;  %v87_v60 = vld [vmem:[#allocation2 + $0x1d0] sm:$0xff]  ;;  %v268_v46 = vld [vmem:[#allocation2 + $0x778] sm:$0xff] }
  0xa6   :  { %v958_v5 = vrot.slane %v671_v1, %v3256_v51  ;;  %637 = vadd.xlane.f32.xlu0 %v636_v56  ;;  %v386_v6 = vpop.xlane.xlu1 %385  ;;  %v117_v56 = vld [vmem:[#allocation2 + $0x2c0] sm:$0xff] }
  0xa7   :  { %v1065_v10 = vsel %vm4043_vm1, %v1064_v2, %v1060_v59  ;;  %v702_v11 = vmul.f32 0.00390625, %v386_v6  ;;  %v383_v12 = vpop.xlane.xlu0 %382  ;;  %v417_v1 = vadd.f32 %v118_v57, %v117_v56  ;;  %v177_v6 = vld [vmem:[#allocation2 + $0x4a0] sm:$0xff]  ;;  %v119_v56 = vld [vmem:[#allocation2 + $0x2d0] sm:$0xff]  ;;  %v120_v57 = vld [vmem:[#allocation2 + $0x2d8] sm:$0xff] }
  0xa8   :  { %v960_v15 = vsel %vm4043_vm1, %v958_v5, %v953_v0  ;;  %v701_v16 = vmul.f32 0.00390625, %v383_v12  ;;  %v372_v5 = vadd.f32 %v88_v61, %v87_v60  ;;  %v148_v12 = vld [vmem:[#allocation2 + $0x3b8] sm:$0xff]  ;;  %v89_v61 = vld [vmem:[#allocation2 + $0x1e0] sm:$0xff] }
  0xa9   :  { %v1138_v17 = vrot.slane %v702_v11, %v3250_v36  ;;  %415 = vadd.xlane.f32.xlu1 %v414_v3  ;;  %v147_v11 = vld [vmem:[#allocation2 + $0x3b0] sm:$0xff] }
  0xaa   :  { %v1134_v20 = vrot.slane %v701_v16, %v3247_v34  ;;  %370 = vadd.xlane.f32.xlu0 %v369_v7  ;;  %v344_v22 = vpop.xlane.xlu1 %343  ;;  %v178_v7 = vld [vmem:[#allocation2 + $0x4a8] sm:$0xff] }
  0xab   :  { %v688_v27 = vmul.f32 0.00390625, %v344_v22  ;;  %v296_v28 = vpop.xlane.xlu0 %295  ;;  %v507_v16 = vadd.f32 %v178_v7, %v177_v6  ;;  %v462_v22 = vadd.f32 %v148_v12, %v147_v11  ;;  %v179_v6 = vld [vmem:[#allocation2 + $0x4b0] sm:$0xff]  ;;  %v180_v7 = vld [vmem:[#allocation2 + $0x4b8] sm:$0xff]  ;;  %v149_v11 = vld [vmem:[#allocation2 + $0x3c0] sm:$0xff] }
  0xac   :  { %v1139_v31 = vsel %vm952_vm0, %v1138_v17, %v1134_v20  ;;  %v672_v32 = vmul.f32 0.00390625, %v296_v28  ;;  %v975_v17 = vadd.s32 4294967256, %v3240_v21  ;;  %v207_v28 = vld [vmem:[#allocation2 + $0x590] sm:$0xff]  ;;  %v150_v12 = vld [vmem:[#allocation2 + $0x3c8] sm:$0xff] }
  0xad   :  { %v1069_v33 = vrot.slane %v688_v27, %v3269_v18  ;;  %505 = vadd.xlane.f32.xlu1 %v504_v19 }
  0xae   :  { %v965_v38 = vrot.slane %v672_v32, %v3269_v18  ;;  %460 = vadd.xlane.f32.xlu0 %v459_v23  ;;  %v431_v39 = vpop.xlane.xlu1 %430  ;;  %v237_v23 = vld [vmem:[#allocation2 + $0x680] sm:$0xff]  ;;  %v3294_v32 = vsub.s32 %v975_v17, %v3242_v24  ;;  %v982_v17 = vadd.s32 4294967248, %v3240_v21 }
  0xaf   :  { %v1070_v43 = vsel %vm966_vm2, %v1069_v33, %v1065_v10  ;;  %v389_v44 = vpop.xlane.xlu0 %388  ;;  %v717_v52 = vmul.f32 0.00390625, %v431_v39  ;;  %v597_v33 = vadd.f32 %v238_v25, %v237_v23  ;;  %v552_v39 = vadd.f32 %v208_v29, %v207_v28  ;;  %v239_v23 = vld [vmem:[#allocation2 + $0x690] sm:$0xff]  ;;  %v240_v25 = vld [vmem:[#allocation2 + $0x698] sm:$0xff]  ;;  %v209_v29 = vld [vmem:[#allocation2 + $0x5a0] sm:$0xff] }
  0xb0   :  { %v967_v47 = vsel %vm966_vm2, %v965_v38, %v960_v15  ;;  %v703_v48 = vmul.f32 0.00390625, %v389_v44 }
  0xb1   :  { %595 = vadd.xlane.f32.xlu1 %v594_v35  ;;  %v1213_v2 = vrot.slane %v717_v52, %v3247_v34 }
  0xb2   :  { %v1143_v53 = vrot.slane %v703_v48, %v3256_v51  ;;  %550 = vadd.xlane.f32.xlu0 %v549_v40  ;;  %v299_v54 = vpop.xlane.xlu1 %298  ;;  %v57_v40 = vld [vmem:[#allocation2 + $0xe0] sm:$0xff] }
  0xb3   :  { %v673_v58 = vmul.f32 0.00390625, %v299_v54  ;;  %v434_v59 = vpop.xlane.xlu0 %433 }
  0xb4   :  { %v1144_v62 = vsel %vm4043_vm1, %v1143_v53, %v1139_v31  ;;  %v718_v63 = vmul.f32 0.00390625, %v434_v59 }
  0xb5   :  { %v972_v0 = vrot.slane %v673_v58, %v3279_v49  ;;  %325 = vadd.xlane.f32.xlu1 %v324_v50  ;;  %v327_v50 = vadd.f32 %v58_v41, %v57_v40 }
  0xb6   :  { %v1217_v3 = vrot.slane %v718_v63, %v3250_v36  ;;  %640 = vadd.xlane.f32.xlu0 %v639_v55  ;;  %v392_v4 = vpop.xlane.xlu1 %391  ;;  %v642_v55 = vadd.f32 %v268_v46, %v267_v45 }
  0xb7   :  { %v974_v8 = vsel %vm973_vm3, %v972_v0, %v967_v47  ;;  %v704_v9 = vmul.f32 0.00390625, %v392_v4  ;;  %v347_v10 = vpop.xlane.xlu0 %346 }
  0xb8   :  { %v1218_v13 = vsel %vm952_vm0, %v1217_v3, %v1213_v2  ;;  %v689_v14 = vmul.f32 0.00390625, %v347_v10  ;;  %v420_v2 = vadd.f32 %v120_v57, %v119_v56  ;;  %v121_v57 = vld [vmem:[#allocation2 + $0x2e0] sm:$0xff] }
  0xb9   :  { %v1148_v15 = vrot.slane %v704_v9, %v3269_v18  ;;  %418 = vadd.xlane.f32.xlu1 %v417_v1 }
  0xba   :  { %v1074_v19 = vrot.slane %v689_v14, %v3279_v49  ;;  %373 = vadd.xlane.f32.xlu0 %v372_v5  ;;  %v479_v20 = vpop.xlane.xlu1 %478 }
  0xbb   :  { %v1149_v26 = vsel %vm966_vm2, %v1148_v15, %v1144_v62  ;;  %v437_v27 = vpop.xlane.xlu0 %436  ;;  %v733_v35 = vmul.f32 0.00390625, %v479_v20  ;;  %v90_v62 = vld [vmem:[#allocation2 + $0x1e8] sm:$0xff] }
  0xbc   :  { %v1075_v30 = vsel %vm973_vm3, %v1074_v19, %v1070_v43  ;;  %v719_v31 = vmul.f32 0.00390625, %v437_v27  ;;  %v375_v5 = vadd.f32 %v90_v62, %v89_v61 }
  0xbd   :  { %508 = vadd.xlane.f32.xlu1 %v507_v16  ;;  %v1292_v52 = vrot.slane %v733_v35, %v3247_v34  ;;  %v510_v16 = vadd.f32 %v180_v7, %v179_v6 }
  0xbe   :  { %v1222_v37 = vrot.slane %v719_v31, %v3256_v51  ;;  %463 = vadd.xlane.f32.xlu0 %v462_v22  ;;  %v302_v38 = vpop.xlane.xlu1 %301  ;;  %v465_v22 = vadd.f32 %v150_v12, %v149_v11 }
  0xbf   :  { %v674_v42 = vmul.f32 0.00390625, %v302_v38  ;;  %v482_v44 = vpop.xlane.xlu0 %481  ;;  %v600_v38 = vadd.f32 %v240_v25, %v239_v23  ;;  %v211_v23 = vld [vmem:[#allocation2 + $0x5b0] sm:$0xff]  ;;  %v212_v25 = vld [vmem:[#allocation2 + $0x5b8] sm:$0xff] }
  0xc0   :  { %v1223_v43 = vsel %vm4043_vm1, %v1222_v37, %v1218_v13  ;;  %v734_v47 = vmul.f32 0.00390625, %v482_v44  ;;  %v3320_v37 = vsub.s32 %v982_v17, %v3242_v24  ;;  %v60_v44 = vld [vmem:[#allocation2 + $0xf8] sm:$0xff] }
  0xc1   :  { %v979_v48 = vrot.slane %v674_v42, %v3294_v32  ;;  %598 = vadd.xlane.f32.xlu1 %v597_v33  ;;  %v59_v42 = vld [vmem:[#allocation2 + $0xf0] sm:$0xff] }
  0xc2   :  { %v1296_v53 = vrot.slane %v734_v47, %v3250_v36  ;;  %553 = vadd.xlane.f32.xlu0 %v552_v39  ;;  %v395_v54 = vpop.xlane.xlu1 %394  ;;  %v269_v47 = vld [vmem:[#allocation2 + $0x780] sm:$0xff] }
  0xc3   :  { %v3302_v58 = vsel %vm980_vm4, %v979_v48, %v974_v8  ;;  %v705_v59 = vmul.f32 0.00390625, %v395_v54  ;;  %v350_v60 = vpop.xlane.xlu0 %349  ;;  %v270_v48 = vld [vmem:[#allocation2 + $0x788] sm:$0xff] }
  0xc4   :  { %v1297_v63 = vsel %vm952_vm0, %v1296_v53, %v1292_v52  ;;  %v690_v0 = vmul.f32 0.00390625, %v350_v60  ;;  %v330_v53 = vadd.f32 %v60_v44, %v59_v42  ;;  %v645_v56 = vadd.f32 %v270_v48, %v269_v47  ;;  %v184_v42 = vld [vmem:[#allocation2 + $0x4d8] sm:$0xff] }
  0xc5   :  { %v1153_v1 = vrot.slane %v705_v59, %v3279_v49  ;;  %328 = vadd.xlane.f32.xlu1 %v327_v50  ;;  %v122_v59 = vld [vmem:[#allocation2 + $0x2e8] sm:$0xff] }
  0xc6   :  { %v1079_v3 = vrot.slane %v690_v0, %v3294_v32  ;;  %643 = vadd.xlane.f32.xlu0 %v642_v55  ;;  %v485_v4 = vpop.xlane.xlu1 %484  ;;  %v92_v0 = vld [vmem:[#allocation2 + $0x1f8] sm:$0xff] }
  0xc7   :  { %v3308_v8 = vsel %vm973_vm3, %v1153_v1, %v1149_v26  ;;  %v735_v9 = vmul.f32 0.00390625, %v485_v4  ;;  %v440_v10 = vpop.xlane.xlu0 %439  ;;  %v423_v4 = vadd.f32 %v122_v59, %v121_v57 }
  0xc8   :  { %v1080_v13 = vsel %vm980_vm4, %v1079_v3, %v1075_v30  ;;  %v720_v14 = vmul.f32 0.00390625, %v440_v10  ;;  %v210_v30 = vld [vmem:[#allocation2 + $0x5a8] sm:$0xff] }
  0xc9   :  { %v1301_v15 = vrot.slane %v735_v9, %v3256_v51  ;;  %421 = vadd.xlane.f32.xlu1 %v420_v2  ;;  %v555_v41 = vadd.f32 %v210_v30, %v209_v29  ;;  %v181_v9 = vld [vmem:[#allocation2 + $0x4c0] sm:$0xff]  ;;  %v182_v10 = vld [vmem:[#allocation2 + $0x4c8] sm:$0xff]  ;;  %v558_v29 = vadd.f32 %v212_v25, %v211_v23  ;;  %v124_v30 = vld [vmem:[#allocation2 + $0x2f8] sm:$0xff] }
  0xca   :  { %v1227_v19 = vrot.slane %v720_v14, %v3269_v18  ;;  %376 = vadd.xlane.f32.xlu0 %v375_v5  ;;  %v530_v20 = vpop.xlane.xlu1 %529  ;;  %v275_v23 = vld [vmem:[#allocation2 + $0x7b0] sm:$0xff]  ;;  %v276_v25 = vld [vmem:[#allocation2 + $0x7b8] sm:$0xff] }
  0xcb   :  { %v3315_v26 = vsel %vm4043_vm1, %v1301_v15, %v1297_v63  ;;  %v750_v27 = vmul.f32 0.00390625, %v530_v20  ;;  %v527_v28 = vpop.xlane.xlu0 %526  ;;  %v91_v63 = vld [vmem:[#allocation2 + $0x1f0] sm:$0xff]  ;;  %v513_v15 = vadd.f32 %v182_v10, %v181_v9  ;;  %v242_v20 = vld [vmem:[#allocation2 + $0x6a8] sm:$0xff]  ;;  %v216_v10 = vld [vmem:[#allocation2 + $0x5d8] sm:$0xff] }
  0xcc   :  { %v1228_v31 = vsel %vm966_vm2, %v1227_v19, %v1223_v43  ;;  %v749_v33 = vmul.f32 0.00390625, %v527_v28  ;;  %v378_v7 = vadd.f32 %v92_v0, %v91_v63  ;;  %v241_v19 = vld [vmem:[#allocation2 + $0x6a0] sm:$0xff]  ;;  %v156_v63 = vld [vmem:[#allocation2 + $0x3f8] sm:$0xff]  ;;  %v215_v9 = vld [vmem:[#allocation2 + $0x5d0] sm:$0xff] }
  0xcd   :  { %v1375_v35 = vrot.slane %v750_v27, %v3250_v36  ;;  %511 = vadd.xlane.f32.xlu1 %v510_v16  ;;  %v603_v27 = vadd.f32 %v242_v20, %v241_v19 }
  0xce   :  { %v1371_v39 = vrot.slane %v749_v33, %v3247_v34  ;;  %466 = vadd.xlane.f32.xlu0 %v465_v22  ;;  %v353_v40 = vpop.xlane.xlu1 %352  ;;  %v271_v33 = vld [vmem:[#allocation2 + $0x790] sm:$0xff] }
  0xcf   :  { %v691_v45 = vmul.f32 0.00390625, %v353_v40  ;;  %v305_v46 = vpop.xlane.xlu0 %304 }
  0xd0   :  { %v3324_v43 = vsel %vm952_vm0, %v1375_v35, %v1371_v39  ;;  %v675_v50 = vmul.f32 0.00390625, %v305_v46  ;;  %v272_v35 = vld [vmem:[#allocation2 + $0x798] sm:$0xff]  ;;  %v154_v46 = vld [vmem:[#allocation2 + $0x3e8] sm:$0xff] }
  0xd1   :  { %v1084_v52 = vrot.slane %v691_v45, %v3320_v37  ;;  %601 = vadd.xlane.f32.xlu1 %v600_v38  ;;  %v648_v40 = vadd.f32 %v272_v35, %v271_v33  ;;  %v153_v45 = vld [vmem:[#allocation2 + $0x3e0] sm:$0xff] }
  0xd2   :  { %v986_v54 = vrot.slane %v675_v50, %v3320_v37  ;;  %556 = vadd.xlane.f32.xlu0 %v555_v41  ;;  %v443_v55 = vpop.xlane.xlu1 %442  ;;  %v183_v41 = vld [vmem:[#allocation2 + $0x4d0] sm:$0xff]  ;;  %v471_v50 = vadd.f32 %v154_v46, %v153_v45  ;;  %v188_v45 = vld [vmem:[#allocation2 + $0x4f8] sm:$0xff] }
  0xd3   :  { %v3329_v60 = vsel %vm987_vm5, %v1084_v52, %v1080_v13  ;;  %v721_v61 = vmul.f32 0.00390625, %v443_v55  ;;  %v398_v62 = vpop.xlane.xlu0 %397  ;;  %v152_v13 = vld [vmem:[#allocation2 + $0x3d8] sm:$0xff]  ;;  %v516_v47 = vadd.f32 %v184_v42, %v183_v41  ;;  %v243_v52 = vld [vmem:[#allocation2 + $0x6b0] sm:$0xff]  ;;  %v213_v55 = vld [vmem:[#allocation2 + $0x5c0] sm:$0xff] }
  0xd4   :  { %v3333_v1 = vsel %vm987_vm5, %v986_v54, %v3302_v58  ;;  %v706_v2 = vmul.f32 0.00390625, %v398_v62  ;;  %v151_v58 = vld [vmem:[#allocation2 + $0x3d0] sm:$0xff] }
  0xd5   :  { %v1232_v3 = vrot.slane %v721_v61, %v3279_v49  ;;  %331 = vadd.xlane.f32.xlu1 %v330_v53  ;;  %v468_v17 = vadd.f32 %v152_v13, %v151_v58  ;;  %v244_v53 = vld [vmem:[#allocation2 + $0x6b8] sm:$0xff]  ;;  %v155_v62 = vld [vmem:[#allocation2 + $0x3f0] sm:$0xff]  ;;  %v185_v13 = vld [vmem:[#allocation2 + $0x4e0] sm:$0xff] }
  0xd6   :  { %v1158_v5 = vrot.slane %v706_v2, %v3294_v32  ;;  %646 = vadd.xlane.f32.xlu0 %v645_v56  ;;  %v3337_v6 = vpop.xlane.xlu1 %532  ;;  %v214_v56 = vld [vmem:[#allocation2 + $0x5c8] sm:$0xff]  ;;  %v606_v57 = vadd.f32 %v244_v53, %v243_v52  ;;  %v273_v2 = vld [vmem:[#allocation2 + $0x7a0] sm:$0xff]  ;;  %v187_v42 = vld [vmem:[#allocation2 + $0x4f0] sm:$0xff] }
  0xd7   :  { %v3340_v11 = vsel %vm973_vm3, %v1232_v3, %v1228_v31  ;;  %v3342_v12 = vpop.xlane.xlu0 %487  ;;  %v561_v61 = vadd.f32 %v214_v56, %v213_v55  ;;  %v274_v3 = vld [vmem:[#allocation2 + $0x7a8] sm:$0xff]  ;;  %v277_v52 = vld [vmem:[#allocation2 + $0x7c0] sm:$0xff]  ;;  %v247_v56 = vld [vmem:[#allocation2 + $0x6d0] sm:$0xff] }
  0xd8   :  { %v3346_v14 = vsel %vm980_vm4, %v1158_v5, %v3308_v8  ;;  %v123_v8 = vld [vmem:[#allocation2 + $0x2f0] sm:$0xff]  ;;  %v278_v53 = vld [vmem:[#allocation2 + $0x7c8] sm:$0xff] }
  0xd9   :  { %424 = vadd.xlane.f32.xlu1 %v423_v4  ;;  %v426_v38 = vadd.f32 %v124_v30, %v123_v8  ;;  %v474_v4 = vadd.f32 %v156_v63, %v155_v62  ;;  %v246_v8 = vld [vmem:[#allocation2 + $0x6c8] sm:$0xff]  ;;  %v654_v30 = vadd.f32 %v276_v25, %v275_v23  ;;  %v251_v25 = vld [vmem:[#allocation2 + $0x6f0] sm:$0xff] }
  0xda   :  { %379 = vadd.xlane.f32.xlu0 %v378_v7  ;;  %v3348_v16 = vpop.xlane.xlu1 %577  ;;  %v651_v7 = vadd.f32 %v274_v3, %v273_v2  ;;  %v249_v2 = vld [vmem:[#allocation2 + $0x6e0] sm:$0xff]  ;;  %v250_v3 = vld [vmem:[#allocation2 + $0x6e8] sm:$0xff] }
  0xdb   :  { %v3350_v22 = vpop.xlane.xlu0 %574 }
  0xdd   :  { %514 = vadd.xlane.f32.xlu1 %v513_v15  ;;  %v186_v15 = vld [vmem:[#allocation2 + $0x4e8] sm:$0xff] }
  0xde   :  { %469 = vadd.xlane.f32.xlu0 %v468_v17  ;;  %v3352_v28 = vpop.xlane.xlu1 %355  ;;  %v564_v17 = vadd.f32 %v216_v10, %v215_v9  ;;  %v519_v20 = vadd.f32 %v186_v15, %v185_v13  ;;  %v220_v9 = vld [vmem:[#allocation2 + $0x5f8] sm:$0xff]  ;;  %v3211_v10 = vmov 0.0   ;;  %v615_v15 = vadd.f32 %v250_v3, %v249_v2  ;;  %v807_v2 = vld [vmem:[%s4040_s1 + $0x50] sm:$0xff] }
  0xdf   :  { %v3354_v31 = vpop.xlane.xlu0 %307  ;;  %2858 = vmatprep.subr.mxu0 %v3211_v10  ;;  %v812_v13 = vld [vmem:[%s4040_s1 + $0x78] sm:$0xff]  ;;  %2893 = vmatprep.subr.mxu1 %v3211_v10 }
  0xe0   :  { %2859 = vmatpush3.msra.mxu0 %v812_v13  ;;  %v806_v13 = vld [vmem:[%s4040_s1 + $0x48] sm:$0xff]  ;;  %2890 = vmatprep.mubr.msk.f32.mxu0 %vm3212_vm6, %v3211_v10 }
  0xe1   :  { %604 = vadd.xlane.f32.xlu1 %v603_v27  ;;  %2860 = vmatprep.subr.mxu0 %v3211_v10 }
  0xe2   :  { %559 = vadd.xlane.f32.xlu0 %v558_v29  ;;  %v3356_v39 = vpop.xlane.xlu1 %445  ;;  %v245_v29 = vld [vmem:[#allocation2 + $0x6c0] sm:$0xff]  ;;  %2895 = vmatprep.mubr.msk.f32.mxu1 %vm3212_vm6, %v3211_v10  ;;  %vm1605_vm6 = vcmask 1041409  }
  0xe3   :  { %v3358_v44 = vpop.xlane.xlu0 %400  ;;  %v609_v35 = vadd.f32 %v246_v8, %v245_v29  ;;  %v252_v29 = vld [vmem:[#allocation2 + $0x6f8] sm:$0xff] }
  0xe5   :  { %427 = vadd.xlane.f32.xlu1 %v426_v38  ;;  %v217_v38 = vld [vmem:[#allocation2 + $0x5e0] sm:$0xff] }
  0xe6   :  { %649 = vadd.xlane.f32.xlu0 %v648_v40  ;;  %v3360_v48 = vpop.xlane.xlu1 %535  ;;  %v218_v40 = vld [vmem:[#allocation2 + $0x5e8] sm:$0xff] }
  0xe7   :  { %v3362_v54 = vpop.xlane.xlu0 %490  ;;  %v567_v46 = vadd.f32 %v218_v40, %v217_v38  ;;  %v810_v38 = vld [vmem:[%s4040_s1 + $0x68] sm:$0xff]  ;;  %v618_v40 = vadd.f32 %v252_v29, %v251_v25  ;;  %v804_v25 = vld [vmem:[%s4040_s1 + $0x38] sm:$0xff]  ;;  %v803_v29 = vld [vmem:[%s4040_s1 + $0x30] sm:$0xff] }
  0xe9   :  { %517 = vadd.xlane.f32.xlu1 %v516_v47 }
  0xea   :  { %472 = vadd.xlane.f32.xlu0 %v471_v50  ;;  %v3364_v59 = vpop.xlane.xlu1 %622  ;;  %v522_v50 = vadd.f32 %v188_v45, %v187_v42  ;;  %v809_v42 = vld [vmem:[%s4040_s1 + $0x60] sm:$0xff] }
  0xeb   :  { %v3366_v0 = vpop.xlane.xlu0 %580 }
  0xed   :  { %607 = vadd.xlane.f32.xlu1 %v606_v57  ;;  %v248_v57 = vld [vmem:[#allocation2 + $0x6d8] sm:$0xff] }
  0xee   :  { %562 = vadd.xlane.f32.xlu0 %v561_v61  ;;  %v3368_v5 = vpop.xlane.xlu1 %310  ;;  %v657_v61 = vadd.f32 %v278_v53, %v277_v52  ;;  %v612_v63 = vadd.f32 %v248_v57, %v247_v56  ;;  %v284_v52 = vld [vmem:[#allocation2 + $0x7f8] sm:$0xff]  ;;  %v281_v56 = vld [vmem:[#allocation2 + $0x7e0] sm:$0xff]  ;;  %v282_v57 = vld [vmem:[#allocation2 + $0x7e8] sm:$0xff] }
  0xef   :  { %v3370_v58 = vpop.xlane.xlu0 %625 }
  0xf1   :  { %475 = vadd.xlane.f32.xlu1 %v474_v4 }
  0xf2   :  { %652 = vadd.xlane.f32.xlu0 %v651_v7  ;;  %v3372_v19 = vpop.xlane.xlu1 %403  ;;  %v219_v7 = vld [vmem:[#allocation2 + $0x5f0] sm:$0xff] }
  0xf3   :  { %v3374_v27 = vpop.xlane.xlu0 %358  ;;  %v570_v23 = vadd.f32 %v220_v9, %v219_v7  ;;  %v663_v7 = vadd.f32 %v282_v57, %v281_v56  ;;  %v798_v57 = vld [vmem:[%s4040_s1 + $0x8] sm:$0xff] }
  0xf5   :  { %565 = vadd.xlane.f32.xlu1 %v564_v17  ;;  %v811_v17 = vld [vmem:[%s4040_s1 + $0x70] sm:$0xff] }
  0xf6   :  { %520 = vadd.xlane.f32.xlu0 %v519_v20  ;;  %v3376_v33 = vpop.xlane.xlu1 %493  ;;  %2861 = vmatpush3.msra.mxu0 %v811_v17 }
  0xf7   :  { %v3378_v41 = vpop.xlane.xlu0 %448  ;;  %2862 = vmatprep.subr.mxu0 %v3211_v10 }
  0xf8   :  { %2863 = vmatpush3.msra.mxu0 %v810_v38  ;;  %v802_v38 = vld [vmem:[%s4040_s1 + $0x28] sm:$0xff] }
  0xf9   :  { %655 = vadd.xlane.f32.xlu1 %v654_v30  ;;  %v279_v30 = vld [vmem:[#allocation2 + $0x7d0] sm:$0xff]  ;;  %2864 = vmatprep.subr.mxu0 %v3211_v10 }
  0xfa   :  { %610 = vadd.xlane.f32.xlu0 %v609_v35  ;;  %v3380_v47 = vpop.xlane.xlu1 %583  ;;  %v280_v35 = vld [vmem:[#allocation2 + $0x7d8] sm:$0xff]  ;;  %2865 = vmatpush3.msra.mxu0 %v809_v42 }
  0xfb   :  { %v3382_v55 = vpop.xlane.xlu0 %538  ;;  %2866 = vmatprep.subr.mxu0 %v3211_v10 }
  0xfc   :  { %4044 = vst [vmem:[#allocation8_spill] sm:$0xff] %v3382_v55 }
  0xfd   :  { %568 = vadd.xlane.f32.xlu1 %v567_v46  ;;  %v660_v46 = vadd.f32 %v280_v35, %v279_v30 }
  0xfe   :  { %523 = vadd.xlane.f32.xlu0 %v522_v50  ;;  %v3384_v62 = vpop.xlane.xlu1 %313  ;;  %v283_v50 = vld [vmem:[#allocation2 + $0x7f0] sm:$0xff] }
  0xff   :  { %v3386_v4 = vpop.xlane.xlu0 %628 }
 0x100   :  { %4045 = vst [vmem:[#allocation9_spill] sm:$0xff] %v3386_v4 }
 0x101   :  { %658 = vadd.xlane.f32.xlu1 %v657_v61  ;;  %v808_v61 = vld [vmem:[%s4040_s1 + $0x58] sm:$0xff] }
 0x102   :  { %613 = vadd.xlane.f32.xlu0 %v612_v63  ;;  %v3397_v20 = vpop.xlane.xlu1 %406  ;;  %2867 = vmatpush3.msra.mxu0 %v808_v61  ;;  %v666_v63 = vadd.f32 %v284_v52, %v283_v50  ;;  %v800_v50 = vld [vmem:[%s4040_s1 + $0x18] sm:$0xff]  ;;  %v799_v52 = vld [vmem:[%s4040_s1 + $0x10] sm:$0xff] }
 0x103   :  { %v3399_v8 = vpop.xlane.xlu0 %361  ;;  %2868 = vmatprep.subr.mxu0 %v3211_v10 }
 0x104   :  { %2869 = vmatpush3.msra.mxu0 %v807_v2 }
 0x105   :  { %616 = vadd.xlane.f32.xlu1 %v615_v15  ;;  %2870 = vmatprep.subr.mxu0 %v3211_v10  ;;  %v805_v15 = vld [vmem:[%s4040_s1 + $0x40] sm:$0xff] }
 0x106   :  { %571 = vadd.xlane.f32.xlu0 %v570_v23  ;;  %v3409_v45 = vpop.xlane.xlu1 %496  ;;  %2871 = vmatpush3.msra.mxu0 %v806_v13 }
 0x107   :  { %4046 = vst [vmem:[#allocation10_spill] sm:$0xff] %v3409_v45  ;;  %v3411_v53 = vpop.xlane.xlu0 %451  ;;  %2872 = vmatprep.subr.mxu0 %v3211_v10  ;;  %v1031_v45 = vadd.s32 4294967192, %v3240_v21 }
 0x108   :  { %4047 = vst [vmem:[#allocation11_spill] sm:$0xff] %v3411_v53  ;;  %2873 = vmatpush3.msra.mxu0 %v805_v15 }
 0x109   :  { %619 = vadd.xlane.f32.xlu1 %v618_v40  ;;  %2874 = vmatprep.subr.mxu0 %v3211_v10  ;;  %v801_v40 = vld [vmem:[%s4040_s1 + $0x20] sm:$0xff] }
 0x10a   :  { %661 = vadd.xlane.f32.xlu0 %v660_v46  ;;  %v3421_v3 = vpop.xlane.xlu1 %586  ;;  %2875 = vmatpush3.msra.mxu0 %v804_v25 }
 0x10b   :  { %4048 = vst [vmem:[#allocation12_spill] sm:$0xff] %v3421_v3  ;;  %v3423_v9 = vpop.xlane.xlu0 %541  ;;  %2876 = vmatprep.subr.mxu0 %v3211_v10  ;;  %v736_v3 = vmul.f32 0.00390625, %v3342_v12 }
 0x10c   :  { %4049 = vst [vmem:[#allocation13_spill] sm:$0xff] %v3423_v9  ;;  %2877 = vmatpush3.msra.mxu0 %v803_v29  ;;  %v751_v9 = vmul.f32 0.00390625, %v3337_v6  ;;  %v766_v6 = vmul.f32 0.00390625, %v3348_v16 }
 0x10d   :  { %667 = vadd.xlane.f32.xlu1 %v666_v63  ;;  %2878 = vmatprep.subr.mxu0 %v3211_v10  ;;  %v797_v63 = vld [vmem:[%s4040_s1] sm:$0xff] }
 0x10e   :  { %664 = vadd.xlane.f32.xlu0 %v663_v7  ;;  %v3433_v17 = vpop.xlane.xlu1 %316  ;;  %2879 = vmatpush3.msra.mxu0 %v802_v38  ;;  %v1380_v16 = vrot.slane %v751_v9, %v3256_v51  ;;  %v1454_v9 = vrot.slane %v766_v6, %v3250_v36 }
 0x10f   :  { %v3435_v23 = vpop.xlane.xlu0 %631  ;;  %2880 = vmatprep.subr.mxu0 %v3211_v10 }
 0x110   :  { %4050 = vst [vmem:[#allocation14_spill] sm:$0xff] %v3435_v23  ;;  %2881 = vmatpush3.msra.mxu0 %v801_v40 }
 0x111   :  { %2882 = vmatprep.subr.mxu0 %v3211_v10 }
 0x112   :  { %v3445_v30 = vpop.xlane.xlu1 %409  ;;  %2883 = vmatpush3.msra.mxu0 %v800_v50 }
 0x113   :  { %4051 = vst [vmem:[#allocation15_spill] sm:$0xff] %v3445_v30  ;;  %v3447_v35 = vpop.xlane.xlu0 %364  ;;  %2884 = vmatprep.subr.mxu0 %v3211_v10 }
 0x114   :  { %2885 = vmatpush3.msra.mxu0 %v799_v52 }
 0x115   :  { %2886 = vmatprep.subr.mxu0 %v3211_v10 }
 0x116   :  { %v3457_v42 = vpop.xlane.xlu1 %499  ;;  %2887 = vmatpush3.msra.mxu0 %v798_v57 }
 0x117   :  { %4052 = vst [vmem:[#allocation16_spill] sm:$0xff] %v3457_v42  ;;  %v3459_v46 = vpop.xlane.xlu0 %454  ;;  %2888 = vmatprep.subr.mxu0 %v3211_v10 }
 0x118   :  { %4053 = vst [vmem:[#allocation17_spill] sm:$0xff] %v3459_v46  ;;  %2889 = vmatpush3.msra.mxu0 %v797_v63 }
 0x11a   :  { %v3469_v56 = vpop.xlane.xlu1 %589 }
 0x11b   :  { %4054 = vst [vmem:[#allocation18_spill] sm:$0xff] %v3469_v56  ;;  %v3474_v61 = vpop.xlane.xlu0 %544 }
 0x11c   :  { %4055 = vst [vmem:[#allocation19_spill] sm:$0xff] %v3474_v61 }
 0x11e   :  { %v3483_v2 = vpop.xlane.xlu1 %319 }
 0x11f   :  { %v3485_v7 = vpop.xlane.xlu0 %634 }
 0x120   :  { %4056 = vst [vmem:[#allocation20_spill] sm:$0xff] %v3485_v7 }
 0x122   :  { %v3487_v13 = vpop.xlane.xlu1 %412 }
 0x123   :  { %4057 = vst [vmem:[#allocation21_spill] sm:$0xff] %v3487_v13  ;;  %v3489_v15 = vpop.xlane.xlu0 %367  ;;  %v1038_v13 = vadd.s32 4294967184, %v3240_v21 }
 0x126   :  { %v3491_v25 = vpop.xlane.xlu1 %502 }
 0x127   :  { %4058 = vst [vmem:[#allocation22_spill] sm:$0xff] %v3491_v25  ;;  %v3493_v29 = vpop.xlane.xlu0 %457 }
 0x128   :  { %4059 = vst [vmem:[#allocation23_spill] sm:$0xff] %v3493_v29 }
 0x12a   :  { %v3495_v38 = vpop.xlane.xlu1 %592 }
 0x12b   :  { %4060 = vst [vmem:[#allocation24_spill] sm:$0xff] %v3495_v38  ;;  %v3497_v40 = vpop.xlane.xlu0 %547 }
 0x12c   :  { %4061 = vst [vmem:[#allocation25_spill] sm:$0xff] %v3497_v40 }
 0x12e   :  { %v3499_v50 = vpop.xlane.xlu1 %322 }
 0x12f   :  { %v3501_v10 = vpop.xlane.xlu0 %637 }
 0x130   :  { %4062 = vst [vmem:[#allocation26_spill] sm:$0xff] %v3501_v10 }
 0x132   :  { %v3503_v52 = vpop.xlane.xlu1 %415 }
 0x133   :  { %4063 = vst [vmem:[#allocation27_spill] sm:$0xff] %v3503_v52  ;;  %v3505_v57 = vpop.xlane.xlu0 %370  ;;  %v722_v52 = vmul.f32 0.00390625, %v3356_v39  ;;  %v3575_v39 = vsub.s32 %v1031_v45, %v3242_v24  ;;  %v3587_v45 = vsub.s32 %v1038_v13, %v3242_v24 }
 0x136   :  { %v3507_v63 = vpop.xlane.xlu1 %505 }
 0x137   :  { %4064 = vst [vmem:[#allocation28_spill] sm:$0xff] %v3507_v63  ;;  %v3509_v7 = vpop.xlane.xlu0 %460  ;;  %v989_v63 = vadd.s32 4294967240, %v3240_v21 }
 0x138   :  { %4065 = vst [vmem:[#allocation29_spill] sm:$0xff] %v3509_v7  ;;  %v996_v7 = vadd.s32 4294967232, %v3240_v21 }
 0x13a   :  { %v3511_v61 = vpop.xlane.xlu1 %595  ;;  %v3543_v53 = vsub.s32 %v996_v7, %v3242_v24  ;;  %v692_v7 = vmul.f32 0.00390625, %v3352_v28  ;;  %v737_v28 = vmul.f32 0.00390625, %v3362_v54 }
 0x13b   :  { %4066 = vst [vmem:[#allocation30_spill] sm:$0xff] %v3511_v61  ;;  %v3513_v25 = vpop.xlane.xlu0 %550  ;;  %v1003_v61 = vadd.s32 4294967224, %v3240_v21 }
 0x13c   :  { %4067 = vst [vmem:[#allocation31_spill] sm:$0xff] %v3513_v25  ;;  %v1010_v25 = vadd.s32 4294967216, %v3240_v21 }
 0x13e   :  { %v3515_v56 = vpop.xlane.xlu1 %325 }
 0x13f   :  { %v3517_v38 = vpop.xlane.xlu0 %640 }
 0x140   :  { %4068 = vst [vmem:[#allocation32_spill] sm:$0xff] %v3517_v38  ;;  %v1017_v38 = vadd.s32 4294967208, %v3240_v21 }
 0x142   :  { %v3519_v40 = vpop.xlane.xlu1 %418 }
 0x143   :  { %4069 = vst [vmem:[#allocation33_spill] sm:$0xff] %v3519_v40  ;;  %v3521_v42 = vpop.xlane.xlu0 %373  ;;  %v3557_v40 = vsub.s32 %v1017_v38, %v3242_v24 }
 0x146   :  { %v3523_v10 = vpop.xlane.xlu1 %508 }
 0x147   :  { %4070 = vst [vmem:[#allocation34_spill] sm:$0xff] %v3523_v10  ;;  %v3525_v29 = vpop.xlane.xlu0 %463  ;;  %v3538_v10 = vsub.s32 %v989_v63, %v3242_v24  ;;  %v765_v63 = vmul.f32 0.00390625, %v3350_v22  ;;  %v707_v22 = vmul.f32 0.00390625, %v3358_v44 }
 0x148   :  { %4071 = vst [vmem:[#allocation35_spill] sm:$0xff] %v3525_v29  ;;  %v1024_v29 = vadd.s32 4294967200, %v3240_v21 }
 0x149   :  { %v1450_v44 = vrot.slane %v765_v63, %v3247_v34  ;;  %v1163_v6 = vrot.slane %v707_v22, %v3320_v37  ;;  %v3606_v22 = vmul.f32 0.00390625, %v3370_v58 }
 0x14a   :  { %v3530_v23 = vpop.xlane.xlu1 %598  ;;  %v3569_v38 = vsub.s32 %v1024_v29, %v3242_v24  ;;  %v1045_v29 = vadd.s32 4294967176, %v3240_v21 }
 0x14b   :  { %4072 = vst [vmem:[#allocation36_spill] sm:$0xff] %v3530_v23  ;;  %v3534_v46 = vpop.xlane.xlu0 %553  ;;  %v3546_v23 = vsub.s32 %v1003_v61, %v3242_v24  ;;  %v676_v61 = vmul.f32 0.00390625, %v3354_v31  ;;  %v767_v31 = vmul.f32 0.00390625, %v3366_v0  ;;  %v1237_v0 = vrot.slane %v722_v52, %v3294_v32 }
 0x14c   :  { %4073 = vst [vmem:[#allocation37_spill] sm:$0xff] %v3534_v46  ;;  %v3554_v46 = vsub.s32 %v1010_v25, %v3242_v24  ;;  %v752_v25 = vmul.f32 0.00390625, %v3360_v48  ;;  %v677_v48 = vmul.f32 0.00390625, %v3368_v5  ;;  %v693_v5 = vmul.f32 0.00390625, %v3374_v27 }
 0x14d   :  { %v993_v54 = vrot.slane %v676_v61, %v3538_v10  ;;  %v3598_v61 = vmul.f32 0.00390625, %v3364_v59  ;;  %v1459_v13 = vrot.slane %v767_v31, %v3256_v51  ;;  %v3626_v58 = vsel %vm987_vm5, %v1163_v6, %v3346_v14 }
 0x14e   :  { %v3549_v4 = vpop.xlane.xlu1 %328  ;;  %v1385_v63 = vrot.slane %v752_v25, %v3269_v18  ;;  %v3619_v25 = vsel %vm980_vm4, %v1237_v0, %v3340_v11  ;;  %v694_v14 = vmul.f32 0.00390625, %v3399_v8  ;;  %v3654_v8 = vmul.f32 0.00390625, %v3376_v33 }
 0x14f   :  { %v3559_v12 = vpop.xlane.xlu0 %643  ;;  %v1529_v11 = vrot.slane %v3598_v61, %v3247_v34  ;;  %v680_v0 = vmul.f32 0.00390625, %v3483_v2  ;;  %v696_v6 = vmul.f32 0.00390625, %v3489_v15  ;;  %v698_v2 = vmul.f32 0.00390625, %v3521_v42 }
 0x150   :  { %4074 = vst [vmem:[#allocation38_spill] sm:$0xff] %v3559_v12  ;;  %v1306_v12 = vrot.slane %v736_v3, %v3269_v18  ;;  %v1089_v3 = vrot.slane %v692_v7, %v3538_v10  ;;  %v1311_v7 = vrot.slane %v737_v28, %v3279_v49  ;;  %v3622_v28 = vmul.f32 0.00390625, %v3372_v19 }
 0x151   :  { %v1099_v33 = vrot.slane %v694_v14, %v3546_v23  ;;  %v768_v42 = vmul.f32 0.00390625, %v3380_v47 }
 0x152   :  { %v3577_v30 = vpop.xlane.xlu1 %421  ;;  %v1307_v21 = vsel %vm966_vm2, %v1306_v12, %v3315_v26  ;;  %v3611_v26 = vsub.s32 %v1045_v29, %v3242_v24  ;;  %v1090_v59 = vsel %vm994_vm7, %v1089_v3, %v3329_v60  ;;  %v995_v12 = vsel %vm994_vm7, %v993_v54, %v3333_v1 }
 0x153   :  { %4075 = vst [vmem:[#allocation39_spill] sm:$0xff] %v3577_v30  ;;  %v377_v55 = vpop.xlane.xlu0 %376  ;;  %v1381_v30 = vsel %vm4043_vm1, %v1380_v16, %v3324_v43  ;;  %v1455_v43 = vsel %vm952_vm0, %v1454_v9, %v1450_v44  ;;  %v1000_v16 = vrot.slane %v677_v48, %v3543_v53  ;;  %v1094_v60 = vrot.slane %v693_v5, %v3543_v53 }
 0x154   :  { %v3629_v31 = vsel %vm966_vm2, %v1385_v63, %v1381_v30  ;;  %v678_v9 = vmul.f32 0.00390625, %v3384_v62  ;;  %v3634_v1 = vsel %vm973_vm3, %v1311_v7, %v1307_v21  ;;  %v3639_v19 = vsel %vm4043_vm1, %v1459_v13, %v1455_v43 }
 0x155   :  { %v1002_v30 = vsel %vm1001_vm8, %v1000_v16, %v995_v12  ;;  %v1533_v62 = vrot.slane %v3606_v22, %v3250_v36  ;;  %v679_v48 = vmul.f32 0.00390625, %v3433_v17  ;;  %v695_v29 = vmul.f32 0.00390625, %v3447_v35  ;;  %v4083_v36 = vld [vmem:[#allocation10_spill] sm:$0xff] }
 0x156   :  { %v3601_v52 = vpop.xlane.xlu1 %511  ;;  %v1168_v54 = vrot.slane %v3622_v28, %v3538_v10  ;;  %v1095_v63 = vsel %vm1001_vm8, %v1094_v60, %v1090_v59  ;;  %v1007_v17 = vrot.slane %v678_v9, %v3546_v23  ;;  %v681_v35 = vmul.f32 0.00390625, %v3499_v50 }
 0x157   :  { %v3608_v27 = vpop.xlane.xlu0 %466  ;;  %v697_v5 = vmul.f32 0.00390625, %v3505_v57  ;;  %v3663_v21 = vmul.f32 0.00390625, %v3378_v41  ;;  %v682_v7 = vmul.f32 0.00390625, %v3515_v56  ;;  %v1014_v13 = vrot.slane %v679_v48, %v3554_v46 }
 0x158   :  { %v1104_v43 = vrot.slane %v695_v29, %v3554_v46  ;;  %v683_v50 = vmul.f32 0.00390625, %v3549_v4  ;;  %v699_v16 = vmul.f32 0.00390625, %v377_v55  ;;  %v1316_v41 = vrot.slane %v3654_v8, %v3294_v32 }
 0x159   :  { %v1021_v59 = vrot.slane %v680_v0, %v3557_v40  ;;  %v1109_v56 = vrot.slane %v696_v6, %v3557_v40  ;;  %v1009_v60 = vsel %vm1008_vm9, %v1007_v17, %v1002_v30  ;;  %v1028_v9 = vrot.slane %v681_v35, %v3569_v38 }
 0x15a   :  { %v3642_v44 = vpop.xlane.xlu1 %601  ;;  %v1114_v14 = vrot.slane %v697_v5, %v3569_v38  ;;  %v709_v55 = vmul.f32 0.00390625, %v3397_v20  ;;  %v1100_v4 = vsel %vm1008_vm9, %v1099_v33, %v1095_v63  ;;  %v1035_v48 = vrot.slane %v682_v7, %v3575_v39  ;;  %v4076_v33 = vld [vmem:[#allocation8_spill] sm:$0xff] }
 0x15b   :  { %v3649_v3 = vpop.xlane.xlu0 %556  ;;  %v1119_v29 = vrot.slane %v698_v2, %v3575_v39  ;;  %v1016_v0 = vsel %vm1015_vm10, %v1014_v13, %v1009_v60  ;;  %v1105_v6 = vsel %vm1015_vm10, %v1104_v43, %v1100_v4  ;;  %v1042_v47 = vrot.slane %v683_v50, %v3587_v45  ;;  %v4077_v2 = vld [vmem:[#allocation15_spill] sm:$0xff]  ;;  %v4078_v60 = vld [vmem:[#allocation21_spill] sm:$0xff] }
 0x15c   :  { %v1124_v30 = vrot.slane %v699_v16, %v3587_v45  ;;  %v1023_v35 = vsel %vm1022_vm11, %v1021_v59, %v1016_v0  ;;  %v1110_v20 = vsel %vm1022_vm11, %v1109_v56, %v1105_v6  ;;  %v753_v7 = vmul.f32 0.00390625, %v4076_v33  ;;  %v4079_v0 = vld [vmem:[#allocation27_spill] sm:$0xff] }
 0x15d   :  { %v1030_v13 = vsel %vm1029_vm12, %v1028_v9, %v1023_v35  ;;  %v1115_v43 = vsel %vm1029_vm12, %v1114_v14, %v1110_v20  ;;  %v711_v50 = vmul.f32 0.00390625, %v4078_v60  ;;  %v712_v6 = vmul.f32 0.00390625, %v4079_v0  ;;  %v4080_v20 = vld [vmem:[#allocation33_spill] sm:$0xff] }
 0x15e   :  { %v332_v15 = vpop.xlane.xlu1 %331  ;;  %v1037_v16 = vsel %vm1036_vm13, %v1035_v48, %v1030_v13  ;;  %v1120_v4 = vsel %vm1036_vm13, %v1119_v29, %v1115_v43  ;;  %v1173_v35 = vrot.slane %v709_v55, %v3543_v53  ;;  %v713_v48 = vmul.f32 0.00390625, %v4080_v20  ;;  %v4086_v20 = vld [vmem:[#allocation13_spill] sm:$0xff] }
 0x15f   :  { %v3671_v57 = vpop.xlane.xlu0 %646  ;;  %v684_v12 = vmul.f32 0.00390625, %v332_v15  ;;  %v710_v15 = vmul.f32 0.00390625, %v4077_v2  ;;  %v1125_v9 = vsel %vm1043_vm14, %v1124_v30, %v1120_v4  ;;  %v1464_v33 = vrot.slane %v768_v42, %v3269_v18 }
 0x160   :  { %v1183_v30 = vrot.slane %v711_v50, %v3554_v46  ;;  %vm1607_vm1 = vcmask 1042434   ;;  %v1534_v42 = vsel %vm952_vm0, %v1533_v62, %v1529_v11  ;;  %v1317_v34 = vsel %vm980_vm4, %v1316_v41, %v3634_v1  ;;  %v4084_v1 = vld [vmem:[#allocation11_spill] sm:$0xff] }
 0x161   :  { %v1049_v63 = vrot.slane %v684_v12, %v3611_v26  ;;  %v1242_v12 = vrot.slane %v3663_v21, %v3320_v37  ;;  %v1178_v2 = vrot.slane %v710_v15, %v3546_v23  ;;  %v4081_v21 = vld [vmem:[#allocation39_spill] sm:$0xff]  ;;  %v739_v22 = vmul.f32 0.00390625, %v4083_v36 }
 0x162   :  { %v425_v8 = vpop.xlane.xlu1 %424  ;;  %v714_v13 = vmul.f32 0.00390625, %v4081_v21  ;;  %v1193_v11 = vrot.slane %v713_v48, %v3569_v38  ;;  %v724_v41 = vmul.f32 0.00390625, %v4084_v1  ;;  %v4087_v48 = vld [vmem:[#allocation17_spill] sm:$0xff]  ;;  %v4089_v21 = vld [vmem:[#allocation23_spill] sm:$0xff]  ;;  %vm4092_vm0 = vcmask 195712  }
 0x163   :  { %v380_v17 = vpop.xlane.xlu0 %379  ;;  %v715_v60 = vmul.f32 0.00390625, %v425_v8  ;;  %v1188_v8 = vrot.slane %v712_v6, %v3557_v40  ;;  %v1243_v28 = vsel %vm987_vm5, %v1242_v12, %v3619_v25  ;;  %v4085_v25 = vld [vmem:[#allocation12_spill] sm:$0xff] }
 0x164   :  { %v700_v5 = vmul.f32 0.00390625, %v380_v17  ;;  %v1044_v17 = vsel %vm1043_vm14, %v1042_v47, %v1037_v16  ;;  %v1390_v47 = vrot.slane %v753_v7, %v3279_v49  ;;  %v4082_v7 = vld [vmem:[#allocation9_spill] sm:$0xff]  ;;  %v769_v12 = vmul.f32 0.00390625, %v4085_v25 }
 0x165   :  { %v1051_v29 = vsel %vm1050_vm15, %v1049_v63, %v1044_v17  ;;  %v1169_v63 = vsel %vm994_vm7, %v1168_v54, %v3626_v58  ;;  %v783_v15 = vmul.f32 0.00390625, %v4082_v7  ;;  %v1465_v58 = vsel %vm966_vm2, %v1464_v33, %v3639_v19  ;;  %v4088_v33 = vld [vmem:[#allocation14_spill] sm:$0xff]  ;;  %v4091_v7 = vld [vmem:[#allocation29_spill] sm:$0xff] }
 0x166   :  { %v1129_v59 = vrot.slane %v700_v5, %v3611_v26  ;;  %v3700_v56 = vpop.xlane.xlu1 %514  ;;  %v1174_v61 = vsel %vm1001_vm8, %v1173_v35, %v1169_v63  ;;  %v1198_v54 = vrot.slane %v714_v13, %v3575_v39  ;;  %v1391_v16 = vsel %vm973_vm3, %v1390_v47, %v3629_v31 }
 0x167   :  { %v470_v14 = vpop.xlane.xlu0 %469  ;;  %v1179_v62 = vsel %vm1008_vm9, %v1178_v2, %v1174_v61  ;;  %v1538_v6 = vrot.slane %v783_v15, %v3256_v51  ;;  %v1321_v35 = vrot.slane %v739_v22, %v3320_v37  ;;  %v754_v31 = vmul.f32 0.00390625, %v4086_v20 }
 0x168   :  { %v1130_v5 = vsel %vm1050_vm15, %v1129_v59, %v1125_v9  ;;  %v1184_v4 = vsel %vm1015_vm10, %v1183_v30, %v1179_v62  ;;  %v1203_v59 = vrot.slane %v715_v60, %v3587_v45  ;;  %v784_v2 = vmul.f32 0.00390625, %v4088_v33  ;;  %v4090_v60 = vld [vmem:[#allocation16_spill] sm:$0xff] }
 0x169   :  { %v1606_v43 = vsel %vm1605_vm6, %v1130_v5, %v1051_v29  ;;  %v1189_v19 = vsel %vm1022_vm11, %v1188_v8, %v1184_v4  ;;  %v725_v29 = vmul.f32 0.00390625, %v4087_v48  ;;  %v726_v13 = vmul.f32 0.00390625, %v4089_v21  ;;  %v4096_v33 = vld [vmem:[#allocation20_spill] sm:$0xff] }
 0x16a   :  { %v3717_v55 = vpop.xlane.xlu1 %604  ;;  %v1194_v5 = vsel %vm1029_vm12, %v1193_v11, %v1189_v19  ;;  %v1247_v30 = vrot.slane %v724_v41, %v3538_v10  ;;  %v740_v63 = vmul.f32 0.00390625, %v4090_v60  ;;  %v727_v15 = vmul.f32 0.00390625, %v4091_v7  ;;  %v4093_v11 = vld [vmem:[#allocation35_spill] sm:$0xff] }
 0x16b   :  { %v3733_v50 = vpop.xlane.xlu0 %559  ;;  %v1199_v51 = vsel %vm1036_vm13, %v1198_v54, %v1194_v5  ;;  %v1539_v36 = vsel %vm4092_vm0, %v1538_v6, %v1534_v42  ;;  %v1469_v22 = vrot.slane %v769_v12, %v3279_v49  ;;  %v728_v62 = vmul.f32 0.00390625, %v4093_v11 }
 0x16c   :  { %v1204_v8 = vsel %vm1043_vm14, %v1203_v59, %v1199_v51  ;;  %v1395_v4 = vrot.slane %v754_v31, %v3294_v32  ;;  %v1252_v41 = vrot.slane %v725_v29, %v3543_v53  ;;  %v1322_v59 = vsel %vm987_vm5, %v1321_v35, %v1317_v34  ;;  %v4095_v34 = vld [vmem:[#allocation19_spill] sm:$0xff]  ;;  %v4097_v51 = vld [vmem:[#allocation22_spill] sm:$0xff] }
 0x16d   :  { %v1543_v19 = vrot.slane %v784_v2, %v3269_v18  ;;  %v1257_v42 = vrot.slane %v726_v13, %v3546_v23  ;;  %v730_v6 = vmul.f32 0.00390625, %v470_v14  ;;  %vm1609_vm6 = vcmask 1043459  }
 0x16e   :  { %v428_v0 = vpop.xlane.xlu1 %427  ;;  %v1248_v12 = vsel %vm994_vm7, %v1247_v30, %v1243_v28  ;;  %v1262_v20 = vrot.slane %v727_v15, %v3554_v46  ;;  %v755_v35 = vmul.f32 0.00390625, %v4095_v34  ;;  %v1267_v18 = vrot.slane %v728_v62, %v3557_v40  ;;  %v4103_v34 = vld [vmem:[#allocation31_spill] sm:$0xff] }
 0x16f   :  { %v716_v17 = vmul.f32 0.00390625, %v428_v0  ;;  %v3754_v9 = vpop.xlane.xlu0 %649  ;;  %v729_v0 = vmul.f32 0.00390625, %v3608_v27  ;;  %v1470_v27 = vsel %vm973_vm3, %v1469_v22, %v1465_v58  ;;  %v1396_v14 = vsel %vm980_vm4, %v1395_v4, %v1391_v16  ;;  %v4099_v4 = vld [vmem:[#allocation25_spill] sm:$0xff] }
 0x170   :  { %v1253_v28 = vsel %vm1001_vm8, %v1252_v41, %v1248_v12  ;;  %v785_v2 = vmul.f32 0.00390625, %v4096_v33  ;;  %v1544_v13 = vsel %vm966_vm2, %v1543_v19, %v1539_v36  ;;  %v741_v58 = vmul.f32 0.00390625, %v4097_v51 }
 0x171   :  { %v1208_v47 = vrot.slane %v716_v17, %v3611_v26  ;;  %v1326_v17 = vrot.slane %v740_v63, %v3538_v10  ;;  %v1272_v21 = vrot.slane %v729_v0, %v3569_v38  ;;  %v1277_v30 = vrot.slane %v730_v6, %v3575_v39  ;;  %v4098_v63 = vld [vmem:[#allocation24_spill] sm:$0xff]  ;;  %v4100_v0 = vld [vmem:[#allocation26_spill] sm:$0xff] }
 0x172   :  { %v3768_v61 = vpop.xlane.xlu1 %517  ;;  %v771_v7 = vmul.f32 0.00390625, %v4098_v63  ;;  %v1400_v11 = vrot.slane %v755_v35, %v3320_v37  ;;  %v756_v41 = vmul.f32 0.00390625, %v4099_v4  ;;  %v4101_v6 = vld [vmem:[#allocation28_spill] sm:$0xff]  ;;  %v744_v63 = vmul.f32 0.00390625, %v3601_v52 }
 0x173   :  { %v1209_v54 = vsel %vm1050_vm15, %v1208_v47, %v1204_v8  ;;  %v473_v1 = vpop.xlane.xlu0 %472  ;;  %v1258_v47 = vsel %vm1008_vm9, %v1257_v42, %v1253_v28  ;;  %v1327_v60 = vsel %vm994_vm7, %v1326_v17, %v1322_v59  ;;  %v786_v59 = vmul.f32 0.00390625, %v4100_v0  ;;  %v4105_v52 = vld [vmem:[#allocation32_spill] sm:$0xff]  ;;  %v4107_v0 = vld [vmem:[#allocation37_spill] sm:$0xff] }
 0x174   :  { %v1608_v25 = vsel %vm1607_vm1, %v1209_v54, %v1606_v43  ;;  %v731_v31 = vmul.f32 0.00390625, %v473_v1  ;;  %v4094_v43 = vld [vmem:[#allocation18_spill] sm:$0xff]  ;;  %v1263_v16 = vsel %vm1015_vm10, %v1262_v20, %v1258_v47  ;;  %v1548_v1 = vrot.slane %v785_v2, %v3279_v49 }
 0x175   :  { %v770_v29 = vmul.f32 0.00390625, %v4094_v43  ;;  %v1268_v36 = vsel %vm1022_vm11, %v1267_v18, %v1263_v16  ;;  %v1331_v42 = vrot.slane %v741_v58, %v3543_v53  ;;  %v742_v12 = vmul.f32 0.00390625, %v4101_v6  ;;  %v4102_v43 = vld [vmem:[#allocation30_spill] sm:$0xff] }
 0x176   :  { %v3784_v48 = vpop.xlane.xlu1 %607  ;;  %v1282_v15 = vrot.slane %v731_v31, %v3587_v45  ;;  %v1273_v19 = vsel %vm1029_vm12, %v1272_v21, %v1268_v36  ;;  %v1479_v31 = vrot.slane %v771_v7, %v3320_v37  ;;  %v757_v49 = vmul.f32 0.00390625, %v4103_v34  ;;  %v4104_v2 = vld [vmem:[#allocation34_spill] sm:$0xff] }
 0x177   :  { %v3790_v5 = vpop.xlane.xlu0 %562  ;;  %v1474_v22 = vrot.slane %v770_v29, %v3294_v32  ;;  %v1278_v17 = vsel %vm1036_vm13, %v1277_v30, %v1273_v19  ;;  %v772_v29 = vmul.f32 0.00390625, %v4102_v43  ;;  %v1401_v33 = vsel %vm987_vm5, %v1400_v11, %v1396_v14 }
 0x178   :  { %v1283_v35 = vsel %vm1043_vm14, %v1282_v15, %v1278_v17  ;;  %v743_v21 = vmul.f32 0.00390625, %v4104_v2  ;;  %v1405_v47 = vrot.slane %v756_v41, %v3538_v10  ;;  %v1553_v30 = vrot.slane %v786_v59, %v3294_v32 }
 0x179   :  { %v1475_v28 = vsel %vm980_vm4, %v1474_v22, %v1470_v27  ;;  %v1549_v16 = vsel %vm973_vm3, %v1548_v1, %v1544_v13  ;;  %v1332_v15 = vsel %vm1001_vm8, %v1331_v42, %v1327_v60  ;;  %v1336_v27 = vrot.slane %v742_v12, %v3546_v23  ;;  %v4106_v60 = vld [vmem:[#allocation36_spill] sm:$0xff]  ;;  %v4108_v42 = vld [vmem:[#allocation38_spill] sm:$0xff] }
 0x17a   :  { %v476_v8 = vpop.xlane.xlu1 %475  ;;  %v745_v14 = vmul.f32 0.00390625, %v3700_v56  ;;  %v1484_v22 = vrot.slane %v772_v29, %v3538_v10  ;;  %v1410_v11 = vrot.slane %v757_v49, %v3543_v53  ;;  %v746_v32 = vmul.f32 0.00390625, %v3768_v61 }
 0x17b   :  { %v732_v62 = vmul.f32 0.00390625, %v476_v8  ;;  %v3807_v54 = vpop.xlane.xlu0 %652  ;;  %v1480_v8 = vsel %vm987_vm5, %v1479_v31, %v1475_v28  ;;  %vm1611_vm1 = vcmask 1044484   ;;  %v1341_v13 = vrot.slane %v743_v21, %v3554_v46 }
 0x17c   :  { %v1406_v56 = vsel %vm994_vm7, %v1405_v47, %v1401_v33  ;;  %v1554_v41 = vsel %vm980_vm4, %v1553_v30, %v1549_v16  ;;  %v758_v59 = vmul.f32 0.00390625, %v4107_v0  ;;  %v1346_v19 = vrot.slane %v744_v63, %v3557_v40 }
 0x17d   :  { %v1287_v20 = vrot.slane %v732_v62, %v3611_v26  ;;  %v773_v62 = vmul.f32 0.00390625, %v4106_v60  ;;  %v1337_v61 = vsel %vm1008_vm9, %v1336_v27, %v1332_v15  ;;  %v788_v6 = vmul.f32 0.00390625, %v4108_v42 }
 0x17e   :  { %v566_v18 = vpop.xlane.xlu1 %565  ;;  %v774_v12 = vmul.f32 0.00390625, %v3642_v44  ;;  %v1351_v17 = vrot.slane %v745_v14, %v3569_v38  ;;  %v1411_v31 = vsel %vm1001_vm8, %v1410_v11, %v1406_v56  ;;  %v759_v43 = vmul.f32 0.00390625, %v3649_v3 }
 0x17f   :  { %v1288_v51 = vsel %vm1050_vm15, %v1287_v20, %v1283_v35  ;;  %v521_v58 = vpop.xlane.xlu0 %520  ;;  %v1485_v20 = vsel %vm994_vm7, %v1484_v22, %v1480_v8  ;;  %v1356_v29 = vrot.slane %v746_v32, %v3575_v39  ;;  %v1342_v35 = vsel %vm1015_vm10, %v1341_v13, %v1337_v61 }
 0x180   :  { %v1610_v7 = vsel %vm1609_vm6, %v1288_v51, %v1608_v25  ;;  %v787_v25 = vmul.f32 0.00390625, %v4105_v52  ;;  %v747_v1 = vmul.f32 0.00390625, %v521_v58  ;;  %v1489_v28 = vrot.slane %v773_v62, %v3543_v53 }
 0x181   :  { %v1415_v2 = vrot.slane %v758_v59, %v3546_v23  ;;  %v1347_v21 = vsel %vm1022_vm11, %v1346_v19, %v1342_v35  ;;  %v760_v51 = vmul.f32 0.00390625, %v3733_v50  ;;  %v1563_v3 = vrot.slane %v788_v6, %v3538_v10 }
 0x182   :  { %v3837_v36 = vpop.xlane.xlu1 %655  ;;  %v1558_v49 = vrot.slane %v787_v25, %v3320_v37  ;;  %v1361_v33 = vrot.slane %v747_v1, %v3587_v45  ;;  %v1494_v47 = vrot.slane %v774_v12, %v3546_v23  ;;  %v1352_v37 = vsel %vm1029_vm12, %v1351_v17, %v1347_v21 }
 0x183   :  { %v611_v4 = vpop.xlane.xlu0 %610  ;;  %v761_v30 = vmul.f32 0.00390625, %v3790_v5  ;;  %v1420_v63 = vrot.slane %v759_v43, %v3554_v46  ;;  %v1357_v16 = vsel %vm1036_vm13, %v1356_v29, %v1352_v37  ;;  %v762_v15 = vmul.f32 0.00390625, %v566_v18 }
 0x184   :  { %vm1613_vm2 = vcmask 1045509   ;;  %v1559_v50 = vsel %vm987_vm5, %v1558_v49, %v1554_v41  ;;  %v789_v8 = vmul.f32 0.00390625, %v3671_v57  ;;  %v1362_v10 = vsel %vm1043_vm14, %v1361_v33, %v1357_v16 }
 0x185   :  { %v1490_v32 = vsel %vm1001_vm8, %v1489_v28, %v1485_v20  ;;  %v1416_v5 = vsel %vm1008_vm9, %v1415_v2, %v1411_v31  ;;  %v1425_v52 = vrot.slane %v760_v51, %v3557_v40  ;;  %v1564_v25 = vsel %vm994_vm7, %v1563_v3, %v1559_v50 }
 0x186   :  { %v569_v34 = vpop.xlane.xlu1 %568  ;;  %v775_v13 = vmul.f32 0.00390625, %v3717_v55  ;;  %v1430_v60 = vrot.slane %v761_v30, %v3569_v38  ;;  %v1495_v62 = vsel %vm1008_vm9, %v1494_v47, %v1490_v32  ;;  %v1421_v1 = vsel %vm1015_vm10, %v1420_v63, %v1416_v5 }
 0x187   :  { %v524_v44 = vpop.xlane.xlu0 %523  ;;  %v763_v22 = vmul.f32 0.00390625, %v569_v34  ;;  %v776_v56 = vmul.f32 0.00390625, %v3784_v48  ;;  %v1435_v41 = vrot.slane %v762_v15, %v3575_v39  ;;  %v1568_v59 = vrot.slane %v789_v8, %v3543_v53 }
 0x188   :  { %v748_v58 = vmul.f32 0.00390625, %v524_v44  ;;  %v790_v19 = vmul.f32 0.00390625, %v3754_v9  ;;  %v777_v61 = vmul.f32 0.00390625, %v611_v4  ;;  %v1426_v6 = vsel %vm1022_vm11, %v1425_v52, %v1421_v1 }
 0x189   :  { %v1440_v55 = vrot.slane %v763_v22, %v3587_v45  ;;  %v1499_v20 = vrot.slane %v775_v13, %v3554_v46  ;;  %v1431_v48 = vsel %vm1029_vm12, %v1430_v60, %v1426_v6  ;;  %v792_v31 = vmul.f32 0.00390625, %v3837_v36 }
 0x18a   :  { %v1366_v27 = vrot.slane %v748_v58, %v3611_v26  ;;  %v659_v14 = vpop.xlane.xlu1 %658  ;;  %v1504_v53 = vrot.slane %v776_v56, %v3557_v40  ;;  %v1436_v9 = vsel %vm1036_vm13, %v1435_v41, %v1431_v48  ;;  %v1573_v49 = vrot.slane %v790_v19, %v3546_v23 }
 0x18b   :  { %v614_v11 = vpop.xlane.xlu0 %613  ;;  %v793_v4 = vmul.f32 0.00390625, %v659_v14  ;;  %v1441_v35 = vsel %vm1043_vm14, %v1440_v55, %v1436_v9  ;;  %v1500_v51 = vsel %vm1015_vm10, %v1499_v20, %v1495_v62  ;;  %v1583_v58 = vrot.slane %v792_v31, %v3557_v40  ;;  %v2909_v9 = vld [vmem:[#allocation2 + $0x18] sm:$0xff] }
 0x18c   :  { %v1367_v18 = vsel %vm1050_vm15, %v1366_v27, %v1362_v10  ;;  %v778_v12 = vmul.f32 0.00390625, %v614_v11  ;;  %v1569_v47 = vsel %vm1001_vm8, %v1568_v59, %v1564_v25  ;;  %v1505_v37 = vsel %vm1022_vm11, %v1504_v53, %v1500_v51  ;;  %v2914_v51 = vld [vmem:[#allocation2 + $0x40] sm:$0xff] }
 0x18d   :  { %v1612_v57 = vsel %vm1611_vm1, %v1367_v18, %v1610_v7  ;;  %v791_v7 = vmul.f32 0.00390625, %v3807_v54  ;;  %v1509_v54 = vrot.slane %v777_v61, %v3569_v38  ;;  %v1588_v30 = vrot.slane %v793_v4, %v3569_v38 }
 0x18e   :  { %v617_v0 = vpop.xlane.xlu1 %616  ;;  %v1514_v36 = vrot.slane %v778_v12, %v3575_v39  ;;  %v1574_v16 = vsel %vm1008_vm9, %v1573_v49, %v1569_v47  ;;  %vm1615_vm3 = vcmask 1046534   ;;  %vm1617_vm4 = vcmask 1047559   ;;  %v2911_v49 = vld [vmem:[#allocation2 + $0x8] sm:$0xff] }
 0x18f   :  { %v572_v42 = vpop.xlane.xlu0 %571  ;;  %v779_v43 = vmul.f32 0.00390625, %v617_v0  ;;  %v1578_v44 = vrot.slane %v791_v7, %v3554_v46  ;;  %v1510_v15 = vsel %vm1029_vm12, %v1509_v54, %v1505_v37  ;;  %vm1692_vm5 = vcmask 64512  }
 0x190   :  { %v764_v17 = vmul.f32 0.00390625, %v572_v42  ;;  %v1515_v8 = vsel %vm1036_vm13, %v1514_v36, %v1510_v15  ;;  %v1774_v19 = vsub.s32 0, %v3242_v24  ;;  %v1841_v42 = vsub.s32 1, %v3242_v24 }
 0x191   :  { %v1519_v3 = vrot.slane %v779_v43, %v3587_v45  ;;  %v1579_v50 = vsel %vm1015_vm10, %v1578_v44, %v1574_v16  ;;  %v1908_v7 = vsub.s32 2, %v3242_v24  ;;  %v2908_v43 = vld [vmem:[#allocation2 + $0x10] sm:$0xff]  ;;  %v2912_v44 = vld [vmem:[#allocation2 + $0x20] sm:$0xff]  ;;  %v2917_v16 = vld [vmem:[#allocation2 + $0x38] sm:$0xff] }
 0x192   :  { %v1445_v29 = vrot.slane %v764_v17, %v3611_v26  ;;  %v620_v34 = vpop.xlane.xlu1 %619  ;;  %v1584_v22 = vsel %vm1022_vm11, %v1583_v58, %v1579_v50  ;;  %v1975_v17 = vsub.s32 3, %v3242_v24 }
 0x193   :  { %v780_v28 = vmul.f32 0.00390625, %v620_v34  ;;  %v662_v33 = vpop.xlane.xlu0 %661  ;;  %v1520_v38 = vsel %vm1043_vm14, %v1519_v3, %v1515_v8  ;;  %v1589_v32 = vsel %vm1029_vm12, %v1588_v30, %v1584_v22  ;;  %v2915_v3 = vld [vmem:[#allocation2 + $0x48] sm:$0xff]  ;;  %v2920_v22 = vld [vmem:[#allocation2 + $0x50] sm:$0xff] }
 0x194   :  { %v1446_v2 = vsel %vm1050_vm15, %v1445_v29, %v1441_v35  ;;  %v794_v21 = vmul.f32 0.00390625, %v662_v33  ;;  %v2910_v29 = vld [vmem:[#allocation2] sm:$0xff]  ;;  %v2042_v33 = vsub.s32 4, %v3242_v24 }
 0x195   :  { %v1614_v23 = vsel %vm1613_vm2, %v1446_v2, %v1612_v57  ;;  %v1524_v46 = vrot.slane %v780_v28, %v3611_v26  ;;  %v2913_v2 = vld [vmem:[#allocation2 + $0x28] sm:$0xff] }
 0x196   :  { %v668_v63 = vpop.xlane.xlu1 %667  ;;  %v1593_v27 = vrot.slane %v794_v21, %v3575_v39 }
 0x197   :  { %v665_v40 = vpop.xlane.xlu0 %664  ;;  %v796_v14 = vmul.f32 0.00390625, %v668_v63  ;;  %v1525_v52 = vsel %vm1050_vm15, %v1524_v46, %v1520_v38  ;;  %v2916_v46 = vld [vmem:[#allocation2 + $0x30] sm:$0xff] }
 0x198   :  { %v795_v10 = vmul.f32 0.00390625, %v665_v40  ;;  %v1594_v39 = vsel %vm1036_vm13, %v1593_v27, %v1589_v32  ;;  %v1616_v13 = vsel %vm1615_vm3, %v1525_v52, %v1614_v23  ;;  %v2918_v27 = vld [vmem:[#allocation2 + $0x60] sm:$0xff] }
 0x199   :  { %v1603_v11 = vrot.slane %v796_v14, %v3611_v26  ;;  %v1691_v26 = vld [vmem:[%s4041_s2] sm:$0xff]  ;;  %v2919_v14 = vld [vmem:[#allocation2 + $0x68] sm:$0xff]  ;;  %s3213_s2 = smov [#allocation5]  }
 0x19a   :  { %v1598_v5 = vrot.slane %v795_v10, %v3587_v45  ;;  %2894 = vmatpush3.msra.mxu1 %v1691_v26  ;;  %s2825_s25 = sshll.u32 %s3213_s2, 4  ;;  %s2826_s25 = int_to_ptr.vmem [resolvable:$true] %s2825_s25 }
 0x19b   :  { %s3184_s26 = scalar_lea.vmem %s2826_s25, 32768  ;;  %p3189_p6 = scmp.lt.s32.totalorder %s2826_s25, %s2826_s25 }
 0x19c   :  { %v1599_v18 = vsel %vm1043_vm14, %v1598_v5, %v1594_v39  ;;  %v2922_v5 = vld [vmem:[#allocation2 + $0x80] sm:$0xff]  ;;  %v2923_v39 = vld [vmem:[#allocation2 + $0x88] sm:$0xff]  ;;  %p3185_p5 = scmp.ne.s32.totalorder %s2826_s25, %s3184_s26  ;;  %p3190_p7 = scmp.lt.s32.totalorder %s3184_s26, %s3184_s26 }
 0x19d   :  { %v1604_v25 = vsel %vm1050_vm15, %v1603_v11, %v1599_v18  ;;  %v2921_v11 = vld [vmem:[#allocation2 + $0x58] sm:$0xff] }
 0x19e   :  { %v1618_v60 = vsel %vm1617_vm4, %v1604_v25, %v1616_v13  ;;  %p3191_p8 = por %p3190_p7, %p3189_p6 }
 0x19f   :  { %2891 = vmatmul.mubr.f32.vlgmr.msra.gmra.mxu0 %v1618_v60  ;;  %v2924_v60 = vld [vmem:[#allocation2 + $0x70] sm:$0xff] }
 0x1a0   :  { %p3192_p9 = pnand %p3191_p8, %p3185_p5 }
 0x25f   :  { %v1686_v57 = vpop.f32.mrf.mxu0 }
 0x260   :  { %v1690_v45 = vmax.f32 %v1686_v57, 0.0  ;;  %v2925_v57 = vld [vmem:[#allocation2 + $0x78] sm:$0xff] }
 0x261   :  { %v2892_v62 = vpop.f32.mrf.mxu0 }
 0x262   :  { %2896 = vmatmul.mubr.msk.f32.vlgmr.msra.gmra.mxu1 %vm1692_vm5, %v1690_v45  ;;  %v2926_v62 = vld [vmem:[#allocation2 + $0xa0] sm:$0xff] }
 0x322   :  { %v1762_v1 = vpop.f32.mrf.mxu1 }
 0x323   :  { %v2838_v56 = vmul.f32 -1.442695, %v1762_v1 }
 0x324   :  { %v2897_v41 = vpop.f32.mrf.mxu1 }
 0x325   :  { %2904 = vpow2.f32 %v2838_v56  ;;  %v2927_v56 = vld [vmem:[#allocation2 + $0xa8] sm:$0xff] }
 0x332   :  { %v2905_v0 = vpop.eup %2904 }
 0x333   :  { %v1769_v59 = vadd.f32 1.0, %v2905_v0 }
 0x335   :  { %2906 = vrcp.f32 %v1769_v59 }
 0x342   :  { %v3926_v61 = vpop.eup %2906 }
 0x343   :  { %v1775_v55 = vrot.slane %v3926_v61, %v1774_v19  ;;  %v1842_v6 = vrot.slane %v3926_v61, %v1841_v42  ;;  %v1909_v12 = vrot.slane %v3926_v61, %v1908_v7  ;;  %v3935_v20 = vrot.slane %v3926_v61, %v1975_v17  ;;  %v2928_v19 = vld [vmem:[#allocation2 + $0x90] sm:$0xff]  ;;  %v2929_v42 = vld [vmem:[#allocation2 + $0x98] sm:$0xff]  ;;  %v2930_v7 = vld [vmem:[#allocation2 + $0xc0] sm:$0xff] }
 0x344   :  { %v3953_v30 = vrot.slane %v3926_v61, %v2042_v33  ;;  %v2931_v17 = vld [vmem:[#allocation2 + $0xc8] sm:$0xff]  ;;  %v2936_v33 = vld [vmem:[#allocation2 + $0xd0] sm:$0xff] }
 0x345   :  { %1781 = vbcast.lane.b32.xlu1 %v1775_v55, 264  ;;  %1777 = vbcast.lane.b32.xlu0 %v1775_v55, 256 }
 0x349   :  { %1785 = vbcast.lane.b32.xlu1 %v1775_v55, 272  ;;  %1793 = vbcast.lane.b32.xlu0 %v1775_v55, 288 }
 0x34d   :  { %1789 = vbcast.lane.b32.xlu1 %v1775_v55, 280  ;;  %1801 = vbcast.lane.b32.xlu0 %v1775_v55, 304 }
 0x351   :  { %1797 = vbcast.lane.b32.xlu1 %v1775_v55, 296  ;;  %1809 = vbcast.lane.b32.xlu0 %v1775_v55, 320 }
 0x355   :  { %1805 = vbcast.lane.b32.xlu1 %v1775_v55, 312  ;;  %1817 = vbcast.lane.b32.xlu0 %v1775_v55, 336 }
 0x359   :  { %1813 = vbcast.lane.b32.xlu1 %v1775_v55, 328  ;;  %1825 = vbcast.lane.b32.xlu0 %v1775_v55, 352 }
 0x35d   :  { %1821 = vbcast.lane.b32.xlu1 %v1775_v55, 344  ;;  %1833 = vbcast.lane.b32.xlu0 %v1775_v55, 368 }
 0x361   :  { %1829 = vbcast.lane.b32.xlu1 %v1775_v55, 360  ;;  %1844 = vbcast.lane.b32.xlu0 %v1842_v6, 256 }
 0x365   :  { %1837 = vbcast.lane.b32.xlu1 %v1775_v55, 376  ;;  %1852 = vbcast.lane.b32.xlu0 %v1842_v6, 272 }
 0x369   :  { %1848 = vbcast.lane.b32.xlu1 %v1842_v6, 264  ;;  %1860 = vbcast.lane.b32.xlu0 %v1842_v6, 288 }
 0x36d   :  { %1856 = vbcast.lane.b32.xlu1 %v1842_v6, 280  ;;  %1868 = vbcast.lane.b32.xlu0 %v1842_v6, 304 }
 0x371   :  { %1864 = vbcast.lane.b32.xlu1 %v1842_v6, 296  ;;  %1876 = vbcast.lane.b32.xlu0 %v1842_v6, 320 }
 0x375   :  { %1872 = vbcast.lane.b32.xlu1 %v1842_v6, 312  ;;  %1884 = vbcast.lane.b32.xlu0 %v1842_v6, 336 }
 0x379   :  { %1880 = vbcast.lane.b32.xlu1 %v1842_v6, 328  ;;  %1892 = vbcast.lane.b32.xlu0 %v1842_v6, 352 }
 0x37d   :  { %1888 = vbcast.lane.b32.xlu1 %v1842_v6, 344  ;;  %1900 = vbcast.lane.b32.xlu0 %v1842_v6, 368 }
 0x381   :  { %1896 = vbcast.lane.b32.xlu1 %v1842_v6, 360  ;;  %1911 = vbcast.lane.b32.xlu0 %v1909_v12, 256 }
 0x385   :  { %1904 = vbcast.lane.b32.xlu1 %v1842_v6, 376  ;;  %1919 = vbcast.lane.b32.xlu0 %v1909_v12, 272 }
 0x389   :  { %1915 = vbcast.lane.b32.xlu1 %v1909_v12, 264  ;;  %1927 = vbcast.lane.b32.xlu0 %v1909_v12, 288 }
 0x38d   :  { %1923 = vbcast.lane.b32.xlu1 %v1909_v12, 280  ;;  %1935 = vbcast.lane.b32.xlu0 %v1909_v12, 304 }
 0x391   :  { %1931 = vbcast.lane.b32.xlu1 %v1909_v12, 296  ;;  %1943 = vbcast.lane.b32.xlu0 %v1909_v12, 320 }
 0x395   :  { %1939 = vbcast.lane.b32.xlu1 %v1909_v12, 312  ;;  %1951 = vbcast.lane.b32.xlu0 %v1909_v12, 336 }
 0x399   :  { %1947 = vbcast.lane.b32.xlu1 %v1909_v12, 328  ;;  %1959 = vbcast.lane.b32.xlu0 %v1909_v12, 352 }
 0x39d   :  { %1955 = vbcast.lane.b32.xlu1 %v1909_v12, 344  ;;  %1967 = vbcast.lane.b32.xlu0 %v1909_v12, 368 }
 0x3a1   :  { %1963 = vbcast.lane.b32.xlu1 %v1909_v12, 360  ;;  %1978 = vbcast.lane.b32.xlu0 %v3935_v20, 256 }
 0x3a5   :  { %1971 = vbcast.lane.b32.xlu1 %v1909_v12, 376  ;;  %1986 = vbcast.lane.b32.xlu0 %v3935_v20, 272 }
 0x3a9   :  { %1982 = vbcast.lane.b32.xlu1 %v3935_v20, 264  ;;  %1994 = vbcast.lane.b32.xlu0 %v3935_v20, 288 }
 0x3ad   :  { %1990 = vbcast.lane.b32.xlu1 %v3935_v20, 280  ;;  %2002 = vbcast.lane.b32.xlu0 %v3935_v20, 304 }
 0x3b1   :  { %1998 = vbcast.lane.b32.xlu1 %v3935_v20, 296  ;;  %2010 = vbcast.lane.b32.xlu0 %v3935_v20, 320 }
 0x3b5   :  { %2006 = vbcast.lane.b32.xlu1 %v3935_v20, 312  ;;  %2018 = vbcast.lane.b32.xlu0 %v3935_v20, 336 }
 0x3b7   :  { %v1782_v48 = vpop.permute.xlu1 %1781  ;;  %v1778_v31 = vpop.permute.xlu0 %1777 }
 0x3b8   :  { %v2310_v53 = vmul.f32 %v2908_v43, %v1782_v48  ;;  %v2311_v4 = vmul.f32 %v2909_v9, %v1782_v48  ;;  %v2308_v34 = vmul.f32 %v2910_v29, %v1778_v31  ;;  %v2309_v54 = vmul.f32 %v2911_v49, %v1778_v31  ;;  %v2932_v43 = vld [vmem:[#allocation2 + $0xb0] sm:$0xff]  ;;  %v2933_v9 = vld [vmem:[#allocation2 + $0xb8] sm:$0xff]  ;;  %v2934_v29 = vld [vmem:[#allocation2 + $0xe0] sm:$0xff] }
 0x3b9   :  { %2014 = vbcast.lane.b32.xlu1 %v3935_v20, 328  ;;  %2026 = vbcast.lane.b32.xlu0 %v3935_v20, 352  ;;  %v2935_v49 = vld [vmem:[#allocation2 + $0xe8] sm:$0xff] }
 0x3ba   :  { %2566 = vst [vmem:[#allocation5 + $0x10] sm:$0xff] %v2310_v53  ;;  %2567 = vst [vmem:[#allocation5 + $0x18] sm:$0xff] %v2311_v4 }
 0x3bb   :  { %2564 = vst [vmem:[#allocation5] sm:$0xff] %v2308_v34  ;;  %2565 = vst [vmem:[#allocation5 + $0x8] sm:$0xff] %v2309_v54  ;;  %v1786_v35 = vpop.permute.xlu1 %1785  ;;  %v1794_v28 = vpop.permute.xlu0 %1793 }
 0x3bc   :  { %v2312_v36 = vmul.f32 %v2912_v44, %v1786_v35  ;;  %v2313_v21 = vmul.f32 %v2913_v2, %v1786_v35  ;;  %v2316_v58 = vmul.f32 %v2914_v51, %v1794_v28  ;;  %v2317_v23 = vmul.f32 %v2915_v3, %v1794_v28 }
 0x3bd   :  { %2022 = vbcast.lane.b32.xlu1 %v3935_v20, 344  ;;  %2034 = vbcast.lane.b32.xlu0 %v3935_v20, 368 }
 0x3be   :  { %2568 = vst [vmem:[#allocation5 + $0x20] sm:$0xff] %v2312_v36  ;;  %2569 = vst [vmem:[#allocation5 + $0x28] sm:$0xff] %v2313_v21  ;;  %v2937_v36 = vld [vmem:[#allocation2 + $0xd8] sm:$0xff]  ;;  %v2938_v21 = vld [vmem:[#allocation2 + $0x100] sm:$0xff] }
 0x3bf   :  { %2572 = vst [vmem:[#allocation5 + $0x40] sm:$0xff] %v2316_v58  ;;  %2573 = vst [vmem:[#allocation5 + $0x48] sm:$0xff] %v2317_v23  ;;  %v1790_v47 = vpop.permute.xlu1 %1789  ;;  %v1802_v37 = vpop.permute.xlu0 %1801  ;;  %v2939_v58 = vld [vmem:[#allocation2 + $0x108] sm:$0xff] }
 0x3c0   :  { %v2314_v63 = vmul.f32 %v2916_v46, %v1790_v47  ;;  %v2315_v15 = vmul.f32 %v2917_v16, %v1790_v47  ;;  %v2320_v40 = vmul.f32 %v2918_v27, %v1802_v37  ;;  %v2321_v50 = vmul.f32 %v2919_v14, %v1802_v37  ;;  %v2940_v37 = vld [vmem:[#allocation2 + $0xf0] sm:$0xff] }
 0x3c1   :  { %2030 = vbcast.lane.b32.xlu1 %v3935_v20, 360  ;;  %2045 = vbcast.lane.b32.xlu0 %v3953_v30, 256 }
 0x3c2   :  { %2570 = vst [vmem:[#allocation5 + $0x30] sm:$0xff] %v2314_v63  ;;  %2571 = vst [vmem:[#allocation5 + $0x38] sm:$0xff] %v2315_v15  ;;  %v2941_v63 = vld [vmem:[#allocation2 + $0xf8] sm:$0xff]  ;;  %v2942_v15 = vld [vmem:[#allocation2 + $0x120] sm:$0xff] }
 0x3c3   :  { %2576 = vst [vmem:[#allocation5 + $0x60] sm:$0xff] %v2320_v40  ;;  %2577 = vst [vmem:[#allocation5 + $0x68] sm:$0xff] %v2321_v50  ;;  %v1798_v8 = vpop.permute.xlu1 %1797  ;;  %v1810_v10 = vpop.permute.xlu0 %1809  ;;  %v2943_v40 = vld [vmem:[#allocation2 + $0x128] sm:$0xff] }
 0x3c4   :  { %v2318_v38 = vmul.f32 %v2920_v22, %v1798_v8  ;;  %v2319_v32 = vmul.f32 %v2921_v11, %v1798_v8  ;;  %v2324_v52 = vmul.f32 %v2922_v5, %v1810_v10  ;;  %v2325_v18 = vmul.f32 %v2923_v39, %v1810_v10  ;;  %v2944_v22 = vld [vmem:[#allocation2 + $0x110] sm:$0xff]  ;;  %v2945_v11 = vld [vmem:[#allocation2 + $0x118] sm:$0xff]  ;;  %v2946_v5 = vld [vmem:[#allocation2 + $0x140] sm:$0xff] }
 0x3c5   :  { %2038 = vbcast.lane.b32.xlu1 %v3935_v20, 376  ;;  %2053 = vbcast.lane.b32.xlu0 %v3953_v30, 272  ;;  %v2109_v10 = vsub.s32 5, %v3242_v24  ;;  %v2947_v39 = vld [vmem:[#allocation2 + $0x148] sm:$0xff] }
 0x3c6   :  { %2574 = vst [vmem:[#allocation5 + $0x50] sm:$0xff] %v2318_v38  ;;  %2575 = vst [vmem:[#allocation5 + $0x58] sm:$0xff] %v2319_v32 }
 0x3c7   :  { %2580 = vst [vmem:[#allocation5 + $0x80] sm:$0xff] %v2324_v52  ;;  %2581 = vst [vmem:[#allocation5 + $0x88] sm:$0xff] %v2325_v18  ;;  %v1806_v25 = vpop.permute.xlu1 %1805  ;;  %v1818_v13 = vpop.permute.xlu0 %1817 }
 0x3c8   :  { %v2322_v26 = vmul.f32 %v2924_v60, %v1806_v25  ;;  %v2323_v45 = vmul.f32 %v2925_v57, %v1806_v25  ;;  %v2328_v1 = vmul.f32 %v2926_v62, %v1818_v13  ;;  %v2329_v41 = vmul.f32 %v2927_v56, %v1818_v13 }
 0x3c9   :  { %2049 = vbcast.lane.b32.xlu1 %v3953_v30, 264  ;;  %2061 = vbcast.lane.b32.xlu0 %v3953_v30, 288  ;;  %v3973_v60 = vrot.slane %v3926_v61, %v2109_v10  ;;  %v2968_v10 = vld [vmem:[#allocation2 + $0x1d0] sm:$0xff] }
 0x3ca   :  { %2578 = vst [vmem:[#allocation5 + $0x70] sm:$0xff] %v2322_v26  ;;  %2579 = vst [vmem:[#allocation5 + $0x78] sm:$0xff] %v2323_v45  ;;  %v2948_v26 = vld [vmem:[#allocation2 + $0x130] sm:$0xff]  ;;  %v2949_v45 = vld [vmem:[#allocation2 + $0x138] sm:$0xff] }
 0x3cb   :  { %2584 = vst [vmem:[#allocation5 + $0xa0] sm:$0xff] %v2328_v1  ;;  %2585 = vst [vmem:[#allocation5 + $0xa8] sm:$0xff] %v2329_v41  ;;  %v1814_v0 = vpop.permute.xlu1 %1813  ;;  %v1826_v59 = vpop.permute.xlu0 %1825  ;;  %v2950_v1 = vld [vmem:[#allocation2 + $0x160] sm:$0xff]  ;;  %v2951_v41 = vld [vmem:[#allocation2 + $0x168] sm:$0xff] }
 0x3cc   :  { %v2326_v55 = vmul.f32 %v2928_v19, %v1814_v0  ;;  %v2327_v6 = vmul.f32 %v2929_v42, %v1814_v0  ;;  %v2332_v12 = vmul.f32 %v2930_v7, %v1826_v59  ;;  %v2333_v20 = vmul.f32 %v2931_v17, %v1826_v59 }
 0x3cd   :  { %2057 = vbcast.lane.b32.xlu1 %v3953_v30, 280  ;;  %2069 = vbcast.lane.b32.xlu0 %v3953_v30, 304 }
 0x3ce   :  { %2582 = vst [vmem:[#allocation5 + $0x90] sm:$0xff] %v2326_v55  ;;  %2583 = vst [vmem:[#allocation5 + $0x98] sm:$0xff] %v2327_v6  ;;  %v2952_v55 = vld [vmem:[#allocation2 + $0x150] sm:$0xff]  ;;  %v2953_v6 = vld [vmem:[#allocation2 + $0x158] sm:$0xff] }
 0x3cf   :  { %2588 = vst [vmem:[#allocation5 + $0xc0] sm:$0xff] %v2332_v12  ;;  %2589 = vst [vmem:[#allocation5 + $0xc8] sm:$0xff] %v2333_v20  ;;  %v1822_v48 = vpop.permute.xlu1 %1821  ;;  %v1834_v31 = vpop.permute.xlu0 %1833  ;;  %v2954_v12 = vld [vmem:[#allocation2 + $0x180] sm:$0xff]  ;;  %v2955_v20 = vld [vmem:[#allocation2 + $0x188] sm:$0xff] }
 0x3d0   :  { %v2330_v53 = vmul.f32 %v2932_v43, %v1822_v48  ;;  %v2331_v4 = vmul.f32 %v2933_v9, %v1822_v48  ;;  %v2336_v34 = vmul.f32 %v2934_v29, %v1834_v31  ;;  %v2337_v54 = vmul.f32 %v2935_v49, %v1834_v31 }
 0x3d1   :  { %2065 = vbcast.lane.b32.xlu1 %v3953_v30, 296  ;;  %2077 = vbcast.lane.b32.xlu0 %v3953_v30, 320 }
 0x3d2   :  { %2586 = vst [vmem:[#allocation5 + $0xb0] sm:$0xff] %v2330_v53  ;;  %2587 = vst [vmem:[#allocation5 + $0xb8] sm:$0xff] %v2331_v4  ;;  %v2956_v53 = vld [vmem:[#allocation2 + $0x170] sm:$0xff]  ;;  %v2957_v4 = vld [vmem:[#allocation2 + $0x178] sm:$0xff] }
 0x3d3   :  { %2592 = vst [vmem:[#allocation5 + $0xe0] sm:$0xff] %v2336_v34  ;;  %2593 = vst [vmem:[#allocation5 + $0xe8] sm:$0xff] %v2337_v54  ;;  %v1830_v35 = vpop.permute.xlu1 %1829  ;;  %v1845_v28 = vpop.permute.xlu0 %1844  ;;  %v2958_v34 = vld [vmem:[#allocation2 + $0x1a0] sm:$0xff]  ;;  %v2959_v54 = vld [vmem:[#allocation2 + $0x1a8] sm:$0xff] }
 0x3d4   :  { %v2334_v44 = vmul.f32 %v2936_v33, %v1830_v35  ;;  %v2335_v2 = vmul.f32 %v2937_v36, %v1830_v35  ;;  %v2340_v51 = vmul.f32 %v2938_v21, %v1845_v28  ;;  %v2341_v3 = vmul.f32 %v2939_v58, %v1845_v28  ;;  %v2960_v33 = vld [vmem:[#allocation2 + $0x190] sm:$0xff]  ;;  %v2961_v36 = vld [vmem:[#allocation2 + $0x198] sm:$0xff]  ;;  %v2962_v21 = vld [vmem:[#allocation2 + $0x1c0] sm:$0xff] }
 0x3d5   :  { %2073 = vbcast.lane.b32.xlu1 %v3953_v30, 312  ;;  %2085 = vbcast.lane.b32.xlu0 %v3953_v30, 336  ;;  %v2963_v58 = vld [vmem:[#allocation2 + $0x1c8] sm:$0xff] }
 0x3d6   :  { %2590 = vst [vmem:[#allocation5 + $0xd0] sm:$0xff] %v2334_v44  ;;  %2591 = vst [vmem:[#allocation5 + $0xd8] sm:$0xff] %v2335_v2 }
 0x3d7   :  { %2596 = vst [vmem:[#allocation5 + $0x100] sm:$0xff] %v2340_v51  ;;  %2597 = vst [vmem:[#allocation5 + $0x108] sm:$0xff] %v2341_v3  ;;  %v1838_v23 = vpop.permute.xlu1 %1837  ;;  %v1853_v47 = vpop.permute.xlu0 %1852 }
 0x3d8   :  { %v2338_v46 = vmul.f32 %v2940_v37, %v1838_v23  ;;  %v2339_v16 = vmul.f32 %v2941_v63, %v1838_v23  ;;  %v2344_v27 = vmul.f32 %v2942_v15, %v1853_v47  ;;  %v2345_v14 = vmul.f32 %v2943_v40, %v1853_v47  ;;  %v2964_v37 = vld [vmem:[#allocation2 + $0x1b0] sm:$0xff]  ;;  %v2965_v63 = vld [vmem:[#allocation2 + $0x1b8] sm:$0xff]  ;;  %v2966_v15 = vld [vmem:[#allocation2 + $0x1e0] sm:$0xff] }
 0x3d9   :  { %2081 = vbcast.lane.b32.xlu1 %v3953_v30, 328  ;;  %2093 = vbcast.lane.b32.xlu0 %v3953_v30, 352  ;;  %v2967_v40 = vld [vmem:[#allocation2 + $0x1e8] sm:$0xff] }
 0x3da   :  { %2594 = vst [vmem:[#allocation5 + $0xf0] sm:$0xff] %v2338_v46  ;;  %2595 = vst [vmem:[#allocation5 + $0xf8] sm:$0xff] %v2339_v16 }
 0x3db   :  { %2600 = vst [vmem:[#allocation5 + $0x120] sm:$0xff] %v2344_v27  ;;  %2601 = vst [vmem:[#allocation5 + $0x128] sm:$0xff] %v2345_v14  ;;  %v1849_v50 = vpop.permute.xlu1 %1848  ;;  %v1861_v8 = vpop.permute.xlu0 %1860 }
 0x3dc   :  { %v2342_v38 = vmul.f32 %v2944_v22, %v1849_v50  ;;  %v2343_v32 = vmul.f32 %v2945_v11, %v1849_v50  ;;  %v2348_v52 = vmul.f32 %v2946_v5, %v1861_v8  ;;  %v2349_v18 = vmul.f32 %v2947_v39, %v1861_v8 }
 0x3dd   :  { %2089 = vbcast.lane.b32.xlu1 %v3953_v30, 344  ;;  %2101 = vbcast.lane.b32.xlu0 %v3953_v30, 368 }
 0x3de   :  { %2598 = vst [vmem:[#allocation5 + $0x110] sm:$0xff] %v2342_v38  ;;  %2599 = vst [vmem:[#allocation5 + $0x118] sm:$0xff] %v2343_v32  ;;  %v2969_v38 = vld [vmem:[#allocation2 + $0x1d8] sm:$0xff]  ;;  %v2970_v32 = vld [vmem:[#allocation2 + $0x200] sm:$0xff] }
 0x3df   :  { %2604 = vst [vmem:[#allocation5 + $0x140] sm:$0xff] %v2348_v52  ;;  %2605 = vst [vmem:[#allocation5 + $0x148] sm:$0xff] %v2349_v18  ;;  %v1857_v25 = vpop.permute.xlu1 %1856  ;;  %v1869_v13 = vpop.permute.xlu0 %1868  ;;  %v2971_v52 = vld [vmem:[#allocation2 + $0x208] sm:$0xff] }
 0x3e0   :  { %v2346_v57 = vmul.f32 %v2948_v26, %v1857_v25  ;;  %v2347_v62 = vmul.f32 %v2949_v45, %v1857_v25  ;;  %v2352_v56 = vmul.f32 %v2950_v1, %v1869_v13  ;;  %v2353_v0 = vmul.f32 %v2951_v41, %v1869_v13  ;;  %v2972_v13 = vld [vmem:[#allocation2 + $0x1f0] sm:$0xff] }
 0x3e1   :  { %2097 = vbcast.lane.b32.xlu1 %v3953_v30, 360  ;;  %2112 = vbcast.lane.b32.xlu0 %v3973_v60, 256 }
 0x3e2   :  { %2602 = vst [vmem:[#allocation5 + $0x130] sm:$0xff] %v2346_v57  ;;  %2603 = vst [vmem:[#allocation5 + $0x138] sm:$0xff] %v2347_v62  ;;  %v2973_v57 = vld [vmem:[#allocation2 + $0x1f8] sm:$0xff]  ;;  %v2974_v62 = vld [vmem:[#allocation2 + $0x220] sm:$0xff] }
 0x3e3   :  { %2608 = vst [vmem:[#allocation5 + $0x160] sm:$0xff] %v2352_v56  ;;  %2609 = vst [vmem:[#allocation5 + $0x168] sm:$0xff] %v2353_v0  ;;  %v1865_v59 = vpop.permute.xlu1 %1864  ;;  %v1877_v19 = vpop.permute.xlu0 %1876  ;;  %v2975_v56 = vld [vmem:[#allocation2 + $0x228] sm:$0xff] }
 0x3e4   :  { %v2350_v42 = vmul.f32 %v2952_v55, %v1865_v59  ;;  %v2351_v7 = vmul.f32 %v2953_v6, %v1865_v59  ;;  %v2356_v17 = vmul.f32 %v2954_v12, %v1877_v19  ;;  %v2357_v48 = vmul.f32 %v2955_v20, %v1877_v19  ;;  %v2976_v55 = vld [vmem:[#allocation2 + $0x210] sm:$0xff]  ;;  %v2977_v6 = vld [vmem:[#allocation2 + $0x218] sm:$0xff]  ;;  %v2978_v12 = vld [vmem:[#allocation2 + $0x240] sm:$0xff] }
 0x3e5   :  { %2105 = vbcast.lane.b32.xlu1 %v3953_v30, 376  ;;  %2120 = vbcast.lane.b32.xlu0 %v3973_v60, 272  ;;  %v2176_v19 = vsub.s32 6, %v3242_v24  ;;  %v2979_v20 = vld [vmem:[#allocation2 + $0x248] sm:$0xff] }
 0x3e6   :  { %2606 = vst [vmem:[#allocation5 + $0x150] sm:$0xff] %v2350_v42  ;;  %2607 = vst [vmem:[#allocation5 + $0x158] sm:$0xff] %v2351_v7 }
 0x3e7   :  { %2612 = vst [vmem:[#allocation5 + $0x180] sm:$0xff] %v2356_v17  ;;  %2613 = vst [vmem:[#allocation5 + $0x188] sm:$0xff] %v2357_v48  ;;  %v1873_v31 = vpop.permute.xlu1 %1872  ;;  %v1885_v43 = vpop.permute.xlu0 %1884 }
 0x3e8   :  { %v2354_v9 = vmul.f32 %v2956_v53, %v1873_v31  ;;  %v2355_v29 = vmul.f32 %v2957_v4, %v1873_v31  ;;  %v2360_v49 = vmul.f32 %v2958_v34, %v1885_v43  ;;  %v2361_v35 = vmul.f32 %v2959_v54, %v1885_v43 }
 0x3e9   :  { %2116 = vbcast.lane.b32.xlu1 %v3973_v60, 264  ;;  %2128 = vbcast.lane.b32.xlu0 %v3973_v60, 288  ;;  %v3993_v53 = vrot.slane %v3926_v61, %v2176_v19  ;;  %v3000_v19 = vld [vmem:[#allocation2 + $0x2d0] sm:$0xff] }
 0x3ea   :  { %2610 = vst [vmem:[#allocation5 + $0x170] sm:$0xff] %v2354_v9  ;;  %2611 = vst [vmem:[#allocation5 + $0x178] sm:$0xff] %v2355_v29  ;;  %v2980_v9 = vld [vmem:[#allocation2 + $0x230] sm:$0xff]  ;;  %v2981_v29 = vld [vmem:[#allocation2 + $0x238] sm:$0xff] }
 0x3eb   :  { %2616 = vst [vmem:[#allocation5 + $0x1a0] sm:$0xff] %v2360_v49  ;;  %2617 = vst [vmem:[#allocation5 + $0x1a8] sm:$0xff] %v2361_v35  ;;  %v1881_v30 = vpop.permute.xlu1 %1880  ;;  %v1893_v28 = vpop.permute.xlu0 %1892  ;;  %v2982_v49 = vld [vmem:[#allocation2 + $0x260] sm:$0xff]  ;;  %v2983_v35 = vld [vmem:[#allocation2 + $0x268] sm:$0xff] }
 0x3ec   :  { %v2358_v44 = vmul.f32 %v2960_v33, %v1881_v30  ;;  %v2359_v2 = vmul.f32 %v2961_v36, %v1881_v30  ;;  %v2364_v51 = vmul.f32 %v2962_v21, %v1893_v28  ;;  %v2365_v3 = vmul.f32 %v2963_v58, %v1893_v28 }
 0x3ed   :  { %2124 = vbcast.lane.b32.xlu1 %v3973_v60, 280  ;;  %2136 = vbcast.lane.b32.xlu0 %v3973_v60, 304 }
 0x3ee   :  { %2614 = vst [vmem:[#allocation5 + $0x190] sm:$0xff] %v2358_v44  ;;  %2615 = vst [vmem:[#allocation5 + $0x198] sm:$0xff] %v2359_v2  ;;  %v2984_v44 = vld [vmem:[#allocation2 + $0x250] sm:$0xff]  ;;  %v2985_v2 = vld [vmem:[#allocation2 + $0x258] sm:$0xff] }
 0x3ef   :  { %2620 = vst [vmem:[#allocation5 + $0x1c0] sm:$0xff] %v2364_v51  ;;  %2621 = vst [vmem:[#allocation5 + $0x1c8] sm:$0xff] %v2365_v3  ;;  %v1889_v23 = vpop.permute.xlu1 %1888  ;;  %v1901_v47 = vpop.permute.xlu0 %1900  ;;  %v2986_v51 = vld [vmem:[#allocation2 + $0x280] sm:$0xff]  ;;  %v2987_v3 = vld [vmem:[#allocation2 + $0x288] sm:$0xff] }
 0x3f0   :  { %v2362_v46 = vmul.f32 %v2964_v37, %v1889_v23  ;;  %v2363_v16 = vmul.f32 %v2965_v63, %v1889_v23  ;;  %v2368_v27 = vmul.f32 %v2966_v15, %v1901_v47  ;;  %v2369_v14 = vmul.f32 %v2967_v40, %v1901_v47 }
 0x3f1   :  { %2132 = vbcast.lane.b32.xlu1 %v3973_v60, 296  ;;  %2144 = vbcast.lane.b32.xlu0 %v3973_v60, 320 }
 0x3f2   :  { %2618 = vst [vmem:[#allocation5 + $0x1b0] sm:$0xff] %v2362_v46  ;;  %2619 = vst [vmem:[#allocation5 + $0x1b8] sm:$0xff] %v2363_v16  ;;  %v2988_v46 = vld [vmem:[#allocation2 + $0x270] sm:$0xff]  ;;  %v2989_v16 = vld [vmem:[#allocation2 + $0x278] sm:$0xff] }
 0x3f3   :  { %2624 = vst [vmem:[#allocation5 + $0x1e0] sm:$0xff] %v2368_v27  ;;  %2625 = vst [vmem:[#allocation5 + $0x1e8] sm:$0xff] %v2369_v14  ;;  %v1897_v50 = vpop.permute.xlu1 %1896  ;;  %v1912_v8 = vpop.permute.xlu0 %1911  ;;  %v2990_v27 = vld [vmem:[#allocation2 + $0x2a0] sm:$0xff]  ;;  %v2991_v14 = vld [vmem:[#allocation2 + $0x2a8] sm:$0xff] }
 0x3f4   :  { %v2366_v22 = vmul.f32 %v2968_v10, %v1897_v50  ;;  %v2367_v11 = vmul.f32 %v2969_v38, %v1897_v50  ;;  %v2372_v5 = vmul.f32 %v2970_v32, %v1912_v8  ;;  %v2373_v39 = vmul.f32 %v2971_v52, %v1912_v8  ;;  %v2992_v10 = vld [vmem:[#allocation2 + $0x290] sm:$0xff]  ;;  %v2993_v38 = vld [vmem:[#allocation2 + $0x298] sm:$0xff]  ;;  %v2994_v32 = vld [vmem:[#allocation2 + $0x2c0] sm:$0xff] }
 0x3f5   :  { %2140 = vbcast.lane.b32.xlu1 %v3973_v60, 312  ;;  %2152 = vbcast.lane.b32.xlu0 %v3973_v60, 336  ;;  %v2995_v52 = vld [vmem:[#allocation2 + $0x2c8] sm:$0xff] }
 0x3f6   :  { %2622 = vst [vmem:[#allocation5 + $0x1d0] sm:$0xff] %v2366_v22  ;;  %2623 = vst [vmem:[#allocation5 + $0x1d8] sm:$0xff] %v2367_v11 }
 0x3f7   :  { %2628 = vst [vmem:[#allocation5 + $0x200] sm:$0xff] %v2372_v5  ;;  %2629 = vst [vmem:[#allocation5 + $0x208] sm:$0xff] %v2373_v39  ;;  %v1905_v18 = vpop.permute.xlu1 %1904  ;;  %v1920_v25 = vpop.permute.xlu0 %1919 }
 0x3f8   :  { %v2370_v26 = vmul.f32 %v2972_v13, %v1905_v18  ;;  %v2371_v45 = vmul.f32 %v2973_v57, %v1905_v18  ;;  %v2376_v1 = vmul.f32 %v2974_v62, %v1920_v25  ;;  %v2377_v41 = vmul.f32 %v2975_v56, %v1920_v25  ;;  %v2996_v13 = vld [vmem:[#allocation2 + $0x2b0] sm:$0xff]  ;;  %v2997_v57 = vld [vmem:[#allocation2 + $0x2b8] sm:$0xff]  ;;  %v2998_v62 = vld [vmem:[#allocation2 + $0x2e0] sm:$0xff] }
 0x3f9   :  { %2148 = vbcast.lane.b32.xlu1 %v3973_v60, 328  ;;  %2160 = vbcast.lane.b32.xlu0 %v3973_v60, 352  ;;  %v2999_v56 = vld [vmem:[#allocation2 + $0x2e8] sm:$0xff] }
 0x3fa   :  { %2626 = vst [vmem:[#allocation5 + $0x1f0] sm:$0xff] %v2370_v26  ;;  %2627 = vst [vmem:[#allocation5 + $0x1f8] sm:$0xff] %v2371_v45 }
 0x3fb   :  { %2632 = vst [vmem:[#allocation5 + $0x220] sm:$0xff] %v2376_v1  ;;  %2633 = vst [vmem:[#allocation5 + $0x228] sm:$0xff] %v2377_v41  ;;  %v1916_v0 = vpop.permute.xlu1 %1915  ;;  %v1928_v59 = vpop.permute.xlu0 %1927 }
 0x3fc   :  { %v2374_v42 = vmul.f32 %v2976_v55, %v1916_v0  ;;  %v2375_v7 = vmul.f32 %v2977_v6, %v1916_v0  ;;  %v2380_v17 = vmul.f32 %v2978_v12, %v1928_v59  ;;  %v2381_v48 = vmul.f32 %v2979_v20, %v1928_v59 }
 0x3fd   :  { %2156 = vbcast.lane.b32.xlu1 %v3973_v60, 344  ;;  %2168 = vbcast.lane.b32.xlu0 %v3973_v60, 368 }
 0x3fe   :  { %2630 = vst [vmem:[#allocation5 + $0x210] sm:$0xff] %v2374_v42  ;;  %2631 = vst [vmem:[#allocation5 + $0x218] sm:$0xff] %v2375_v7  ;;  %v3001_v42 = vld [vmem:[#allocation2 + $0x2d8] sm:$0xff]  ;;  %v3002_v7 = vld [vmem:[#allocation2 + $0x300] sm:$0xff] }
 0x3ff   :  { %2636 = vst [vmem:[#allocation5 + $0x240] sm:$0xff] %v2380_v17  ;;  %2637 = vst [vmem:[#allocation5 + $0x248] sm:$0xff] %v2381_v48  ;;  %v1924_v31 = vpop.permute.xlu1 %1923  ;;  %v1936_v43 = vpop.permute.xlu0 %1935  ;;  %v3003_v17 = vld [vmem:[#allocation2 + $0x308] sm:$0xff] }
 0x400   :  { %v2378_v4 = vmul.f32 %v2980_v9, %v1924_v31  ;;  %v2379_v34 = vmul.f32 %v2981_v29, %v1924_v31  ;;  %v2384_v54 = vmul.f32 %v2982_v49, %v1936_v43  ;;  %v2385_v30 = vmul.f32 %v2983_v35, %v1936_v43  ;;  %v3004_v43 = vld [vmem:[#allocation2 + $0x2f0] sm:$0xff] }
 0x401   :  { %2164 = vbcast.lane.b32.xlu1 %v3973_v60, 360  ;;  %2179 = vbcast.lane.b32.xlu0 %v3993_v53, 256 }
 0x402   :  { %2634 = vst [vmem:[#allocation5 + $0x230] sm:$0xff] %v2378_v4  ;;  %2635 = vst [vmem:[#allocation5 + $0x238] sm:$0xff] %v2379_v34  ;;  %v3005_v4 = vld [vmem:[#allocation2 + $0x2f8] sm:$0xff]  ;;  %v3006_v34 = vld [vmem:[#allocation2 + $0x320] sm:$0xff] }
 0x403   :  { %2640 = vst [vmem:[#allocation5 + $0x260] sm:$0xff] %v2384_v54  ;;  %2641 = vst [vmem:[#allocation5 + $0x268] sm:$0xff] %v2385_v30  ;;  %v1932_v28 = vpop.permute.xlu1 %1931  ;;  %v1944_v33 = vpop.permute.xlu0 %1943  ;;  %v3007_v54 = vld [vmem:[#allocation2 + $0x328] sm:$0xff] }
 0x404   :  { %v2382_v36 = vmul.f32 %v2984_v44, %v1932_v28  ;;  %v2383_v21 = vmul.f32 %v2985_v2, %v1932_v28  ;;  %v2388_v58 = vmul.f32 %v2986_v51, %v1944_v33  ;;  %v2389_v23 = vmul.f32 %v2987_v3, %v1944_v33  ;;  %v3008_v44 = vld [vmem:[#allocation2 + $0x310] sm:$0xff]  ;;  %v3009_v2 = vld [vmem:[#allocation2 + $0x318] sm:$0xff]  ;;  %v3010_v51 = vld [vmem:[#allocation2 + $0x340] sm:$0xff] }
 0x405   :  { %2172 = vbcast.lane.b32.xlu1 %v3973_v60, 376  ;;  %2187 = vbcast.lane.b32.xlu0 %v3993_v53, 272  ;;  %v2243_v33 = vsub.s32 7, %v3242_v24  ;;  %v3011_v3 = vld [vmem:[#allocation2 + $0x348] sm:$0xff] }
 0x406   :  { %2638 = vst [vmem:[#allocation5 + $0x250] sm:$0xff] %v2382_v36  ;;  %2639 = vst [vmem:[#allocation5 + $0x258] sm:$0xff] %v2383_v21 }
 0x407   :  { %2644 = vst [vmem:[#allocation5 + $0x280] sm:$0xff] %v2388_v58  ;;  %2645 = vst [vmem:[#allocation5 + $0x288] sm:$0xff] %v2389_v23  ;;  %v1940_v47 = vpop.permute.xlu1 %1939  ;;  %v1952_v37 = vpop.permute.xlu0 %1951  ;;  %v4013_v24 = vrot.slane %v3926_v61, %v2243_v33  ;;  %v3016_v61 = vld [vmem:[#allocation2 + $0x350] sm:$0xff]  ;;  %v3033_v33 = vld [vmem:[#allocation2 + $0x3d8] sm:$0xff] }
 0x408   :  { %v2386_v63 = vmul.f32 %v2988_v46, %v1940_v47  ;;  %v2387_v15 = vmul.f32 %v2989_v16, %v1940_v47  ;;  %v2392_v40 = vmul.f32 %v2990_v27, %v1952_v37  ;;  %v2393_v50 = vmul.f32 %v2991_v14, %v1952_v37  ;;  %v3012_v46 = vld [vmem:[#allocation2 + $0x330] sm:$0xff]  ;;  %v3013_v16 = vld [vmem:[#allocation2 + $0x338] sm:$0xff]  ;;  %v3014_v27 = vld [vmem:[#allocation2 + $0x360] sm:$0xff] }
 0x409   :  { %2183 = vbcast.lane.b32.xlu1 %v3993_v53, 264  ;;  %2195 = vbcast.lane.b32.xlu0 %v3993_v53, 288  ;;  %v3015_v14 = vld [vmem:[#allocation2 + $0x368] sm:$0xff] }
 0x40a   :  { %2642 = vst [vmem:[#allocation5 + $0x270] sm:$0xff] %v2386_v63  ;;  %2643 = vst [vmem:[#allocation5 + $0x278] sm:$0xff] %v2387_v15 }
 0x40b   :  { %2648 = vst [vmem:[#allocation5 + $0x2a0] sm:$0xff] %v2392_v40  ;;  %2649 = vst [vmem:[#allocation5 + $0x2a8] sm:$0xff] %v2393_v50  ;;  %v1948_v60 = vpop.permute.xlu1 %1947  ;;  %v1960_v8 = vpop.permute.xlu0 %1959 }
 0x40c   :  { %v2390_v22 = vmul.f32 %v2992_v10, %v1948_v60  ;;  %v2391_v11 = vmul.f32 %v2993_v38, %v1948_v60  ;;  %v2396_v5 = vmul.f32 %v2994_v32, %v1960_v8  ;;  %v2397_v39 = vmul.f32 %v2995_v52, %v1960_v8 }
 0x40d   :  { %2191 = vbcast.lane.b32.xlu1 %v3993_v53, 280  ;;  %2203 = vbcast.lane.b32.xlu0 %v3993_v53, 304 }
 0x40e   :  { %2646 = vst [vmem:[#allocation5 + $0x290] sm:$0xff] %v2390_v22  ;;  %2647 = vst [vmem:[#allocation5 + $0x298] sm:$0xff] %v2391_v11  ;;  %v3017_v22 = vld [vmem:[#allocation2 + $0x358] sm:$0xff]  ;;  %v3018_v11 = vld [vmem:[#allocation2 + $0x380] sm:$0xff] }
 0x40f   :  { %2652 = vst [vmem:[#allocation5 + $0x2c0] sm:$0xff] %v2396_v5  ;;  %2653 = vst [vmem:[#allocation5 + $0x2c8] sm:$0xff] %v2397_v39  ;;  %v1956_v18 = vpop.permute.xlu1 %1955  ;;  %v1968_v25 = vpop.permute.xlu0 %1967  ;;  %v3019_v5 = vld [vmem:[#allocation2 + $0x388] sm:$0xff] }
 0x410   :  { %v2394_v26 = vmul.f32 %v2996_v13, %v1956_v18  ;;  %v2395_v45 = vmul.f32 %v2997_v57, %v1956_v18  ;;  %v2400_v1 = vmul.f32 %v2998_v62, %v1968_v25  ;;  %v2401_v41 = vmul.f32 %v2999_v56, %v1968_v25  ;;  %v3020_v25 = vld [vmem:[#allocation2 + $0x370] sm:$0xff] }
 0x411   :  { %2199 = vbcast.lane.b32.xlu1 %v3993_v53, 296  ;;  %2211 = vbcast.lane.b32.xlu0 %v3993_v53, 320 }
 0x412   :  { %2650 = vst [vmem:[#allocation5 + $0x2b0] sm:$0xff] %v2394_v26  ;;  %2651 = vst [vmem:[#allocation5 + $0x2b8] sm:$0xff] %v2395_v45  ;;  %v3021_v26 = vld [vmem:[#allocation2 + $0x378] sm:$0xff]  ;;  %v3022_v45 = vld [vmem:[#allocation2 + $0x3a0] sm:$0xff] }
 0x413   :  { %2656 = vst [vmem:[#allocation5 + $0x2e0] sm:$0xff] %v2400_v1  ;;  %2657 = vst [vmem:[#allocation5 + $0x2e8] sm:$0xff] %v2401_v41  ;;  %v1964_v0 = vpop.permute.xlu1 %1963  ;;  %v1979_v59 = vpop.permute.xlu0 %1978  ;;  %v3023_v1 = vld [vmem:[#allocation2 + $0x3a8] sm:$0xff] }
 0x414   :  { %v2398_v55 = vmul.f32 %v3000_v19, %v1964_v0  ;;  %v2399_v6 = vmul.f32 %v3001_v42, %v1964_v0  ;;  %v2404_v12 = vmul.f32 %v3002_v7, %v1979_v59  ;;  %v2405_v20 = vmul.f32 %v3003_v17, %v1979_v59  ;;  %v3024_v0 = vld [vmem:[#allocation2 + $0x390] sm:$0xff]  ;;  %v3025_v19 = vld [vmem:[#allocation2 + $0x398] sm:$0xff]  ;;  %v3026_v42 = vld [vmem:[#allocation2 + $0x3c0] sm:$0xff] }
 0x415   :  { %2207 = vbcast.lane.b32.xlu1 %v3993_v53, 312  ;;  %2219 = vbcast.lane.b32.xlu0 %v3993_v53, 336  ;;  %v3027_v7 = vld [vmem:[#allocation2 + $0x3c8] sm:$0xff] }
 0x416   :  { %2654 = vst [vmem:[#allocation5 + $0x2d0] sm:$0xff] %v2398_v55  ;;  %2655 = vst [vmem:[#allocation5 + $0x2d8] sm:$0xff] %v2399_v6 }
 0x417   :  { %2660 = vst [vmem:[#allocation5 + $0x300] sm:$0xff] %v2404_v12  ;;  %2661 = vst [vmem:[#allocation5 + $0x308] sm:$0xff] %v2405_v20  ;;  %v1972_v48 = vpop.permute.xlu1 %1971  ;;  %v1987_v31 = vpop.permute.xlu0 %1986 }
 0x418   :  { %v2402_v9 = vmul.f32 %v3004_v43, %v1972_v48  ;;  %v2403_v29 = vmul.f32 %v3005_v4, %v1972_v48  ;;  %v2408_v49 = vmul.f32 %v3006_v34, %v1987_v31  ;;  %v2409_v35 = vmul.f32 %v3007_v54, %v1987_v31  ;;  %v3028_v48 = vld [vmem:[#allocation2 + $0x3b0] sm:$0xff]  ;;  %v3029_v43 = vld [vmem:[#allocation2 + $0x3b8] sm:$0xff]  ;;  %v3030_v4 = vld [vmem:[#allocation2 + $0x3e0] sm:$0xff] }
 0x419   :  { %2215 = vbcast.lane.b32.xlu1 %v3993_v53, 328  ;;  %2227 = vbcast.lane.b32.xlu0 %v3993_v53, 352  ;;  %v3031_v34 = vld [vmem:[#allocation2 + $0x3e8] sm:$0xff] }
 0x41a   :  { %2658 = vst [vmem:[#allocation5 + $0x2f0] sm:$0xff] %v2402_v9  ;;  %2659 = vst [vmem:[#allocation5 + $0x2f8] sm:$0xff] %v2403_v29 }
 0x41b   :  { %2664 = vst [vmem:[#allocation5 + $0x320] sm:$0xff] %v2408_v49  ;;  %2665 = vst [vmem:[#allocation5 + $0x328] sm:$0xff] %v2409_v35  ;;  %v1983_v30 = vpop.permute.xlu1 %1982  ;;  %v1995_v28 = vpop.permute.xlu0 %1994 }
 0x41c   :  { %v2406_v36 = vmul.f32 %v3008_v44, %v1983_v30  ;;  %v2407_v21 = vmul.f32 %v3009_v2, %v1983_v30  ;;  %v2412_v58 = vmul.f32 %v3010_v51, %v1995_v28  ;;  %v2413_v23 = vmul.f32 %v3011_v3, %v1995_v28  ;;  %v3032_v30 = vld [vmem:[#allocation2 + $0x3d0] sm:$0xff] }
 0x41d   :  { %2223 = vbcast.lane.b32.xlu1 %v3993_v53, 344  ;;  %2235 = vbcast.lane.b32.xlu0 %v3993_v53, 368 }
 0x41e   :  { %2662 = vst [vmem:[#allocation5 + $0x310] sm:$0xff] %v2406_v36  ;;  %2663 = vst [vmem:[#allocation5 + $0x318] sm:$0xff] %v2407_v21  ;;  %v3034_v36 = vld [vmem:[#allocation2 + $0x400] sm:$0xff]  ;;  %v3035_v21 = vld [vmem:[#allocation2 + $0x408] sm:$0xff] }
 0x41f   :  { %2668 = vst [vmem:[#allocation5 + $0x340] sm:$0xff] %v2412_v58  ;;  %2669 = vst [vmem:[#allocation5 + $0x348] sm:$0xff] %v2413_v23  ;;  %v1991_v47 = vpop.permute.xlu1 %1990  ;;  %v2003_v37 = vpop.permute.xlu0 %2002  ;;  %v3036_v23 = vld [vmem:[#allocation2 + $0x3f0] sm:$0xff] }
 0x420   :  { %v2410_v63 = vmul.f32 %v3012_v46, %v1991_v47  ;;  %v2411_v15 = vmul.f32 %v3013_v16, %v1991_v47  ;;  %v2416_v40 = vmul.f32 %v3014_v27, %v2003_v37  ;;  %v2417_v50 = vmul.f32 %v3015_v14, %v2003_v37  ;;  %v3037_v37 = vld [vmem:[#allocation2 + $0x3f8] sm:$0xff] }
 0x421   :  { %2231 = vbcast.lane.b32.xlu1 %v3993_v53, 360  ;;  %2246 = vbcast.lane.b32.xlu0 %v4013_v24, 256 }
 0x422   :  { %2666 = vst [vmem:[#allocation5 + $0x330] sm:$0xff] %v2410_v63  ;;  %2667 = vst [vmem:[#allocation5 + $0x338] sm:$0xff] %v2411_v15  ;;  %v3038_v63 = vld [vmem:[#allocation2 + $0x420] sm:$0xff]  ;;  %v3039_v15 = vld [vmem:[#allocation2 + $0x428] sm:$0xff] }
 0x423   :  { %2672 = vst [vmem:[#allocation5 + $0x360] sm:$0xff] %v2416_v40  ;;  %2673 = vst [vmem:[#allocation5 + $0x368] sm:$0xff] %v2417_v50  ;;  %v1999_v60 = vpop.permute.xlu1 %1998  ;;  %v2011_v8 = vpop.permute.xlu0 %2010  ;;  %v3040_v50 = vld [vmem:[#allocation2 + $0x410] sm:$0xff] }
 0x424   :  { %v2414_v10 = vmul.f32 %v3016_v61, %v1999_v60  ;;  %v2415_v38 = vmul.f32 %v3017_v22, %v1999_v60  ;;  %v2420_v32 = vmul.f32 %v3018_v11, %v2011_v8  ;;  %v2421_v52 = vmul.f32 %v3019_v5, %v2011_v8  ;;  %v3041_v8 = vld [vmem:[#allocation2 + $0x418] sm:$0xff] }
 0x425   :  { %2239 = vbcast.lane.b32.xlu1 %v3993_v53, 376  ;;  %2254 = vbcast.lane.b32.xlu0 %v4013_v24, 272 }
 0x426   :  { %2670 = vst [vmem:[#allocation5 + $0x350] sm:$0xff] %v2414_v10  ;;  %2671 = vst [vmem:[#allocation5 + $0x358] sm:$0xff] %v2415_v38  ;;  %v3042_v10 = vld [vmem:[#allocation2 + $0x440] sm:$0xff]  ;;  %v3043_v38 = vld [vmem:[#allocation2 + $0x448] sm:$0xff] }
 0x427   :  { %2676 = vst [vmem:[#allocation5 + $0x380] sm:$0xff] %v2420_v32  ;;  %2677 = vst [vmem:[#allocation5 + $0x388] sm:$0xff] %v2421_v52  ;;  %v2007_v39 = vpop.permute.xlu1 %2006  ;;  %v2019_v18 = vpop.permute.xlu0 %2018  ;;  %v3044_v52 = vld [vmem:[#allocation2 + $0x430] sm:$0xff] }
 0x428   :  { %v2418_v13 = vmul.f32 %v3020_v25, %v2007_v39  ;;  %v2419_v57 = vmul.f32 %v3021_v26, %v2007_v39  ;;  %v2424_v62 = vmul.f32 %v3022_v45, %v2019_v18  ;;  %v2425_v56 = vmul.f32 %v3023_v1, %v2019_v18  ;;  %v3045_v18 = vld [vmem:[#allocation2 + $0x438] sm:$0xff] }
 0x429   :  { %2250 = vbcast.lane.b32.xlu1 %v4013_v24, 264  ;;  %2262 = vbcast.lane.b32.xlu0 %v4013_v24, 288 }
 0x42a   :  { %2674 = vst [vmem:[#allocation5 + $0x370] sm:$0xff] %v2418_v13  ;;  %2675 = vst [vmem:[#allocation5 + $0x378] sm:$0xff] %v2419_v57  ;;  %v3046_v13 = vld [vmem:[#allocation2 + $0x460] sm:$0xff]  ;;  %v3047_v57 = vld [vmem:[#allocation2 + $0x468] sm:$0xff] }
 0x42b   :  { %2680 = vst [vmem:[#allocation5 + $0x3a0] sm:$0xff] %v2424_v62  ;;  %2681 = vst [vmem:[#allocation5 + $0x3a8] sm:$0xff] %v2425_v56  ;;  %v2015_v53 = vpop.permute.xlu1 %2014  ;;  %v2027_v41 = vpop.permute.xlu0 %2026  ;;  %v3048_v56 = vld [vmem:[#allocation2 + $0x450] sm:$0xff] }
 0x42c   :  { %v2422_v59 = vmul.f32 %v3024_v0, %v2015_v53  ;;  %v2423_v55 = vmul.f32 %v3025_v19, %v2015_v53  ;;  %v2428_v6 = vmul.f32 %v3026_v42, %v2027_v41  ;;  %v2429_v12 = vmul.f32 %v3027_v7, %v2027_v41  ;;  %v3049_v41 = vld [vmem:[#allocation2 + $0x458] sm:$0xff] }
 0x42d   :  { %2258 = vbcast.lane.b32.xlu1 %v4013_v24, 280  ;;  %2270 = vbcast.lane.b32.xlu0 %v4013_v24, 304 }
 0x42e   :  { %2678 = vst [vmem:[#allocation5 + $0x390] sm:$0xff] %v2422_v59  ;;  %2679 = vst [vmem:[#allocation5 + $0x398] sm:$0xff] %v2423_v55  ;;  %v3050_v59 = vld [vmem:[#allocation2 + $0x480] sm:$0xff]  ;;  %v3051_v55 = vld [vmem:[#allocation2 + $0x488] sm:$0xff] }
 0x42f   :  { %2684 = vst [vmem:[#allocation5 + $0x3c0] sm:$0xff] %v2428_v6  ;;  %2685 = vst [vmem:[#allocation5 + $0x3c8] sm:$0xff] %v2429_v12  ;;  %v2023_v17 = vpop.permute.xlu1 %2022  ;;  %v2035_v20 = vpop.permute.xlu0 %2034  ;;  %v3052_v12 = vld [vmem:[#allocation2 + $0x470] sm:$0xff] }
 0x430   :  { %v2426_v31 = vmul.f32 %v3028_v48, %v2023_v17  ;;  %v2427_v9 = vmul.f32 %v3029_v43, %v2023_v17  ;;  %v2432_v29 = vmul.f32 %v3030_v4, %v2035_v20  ;;  %v2433_v49 = vmul.f32 %v3031_v34, %v2035_v20  ;;  %v3053_v20 = vld [vmem:[#allocation2 + $0x478] sm:$0xff]  ;;  %v3056_v34 = vld [vmem:[#allocation2 + $0x490] sm:$0xff] }
 0x431   :  { %2266 = vbcast.lane.b32.xlu1 %v4013_v24, 296  ;;  %2278 = vbcast.lane.b32.xlu0 %v4013_v24, 320 }
 0x432   :  { %2682 = vst [vmem:[#allocation5 + $0x3b0] sm:$0xff] %v2426_v31  ;;  %2683 = vst [vmem:[#allocation5 + $0x3b8] sm:$0xff] %v2427_v9  ;;  %v3054_v31 = vld [vmem:[#allocation2 + $0x4a0] sm:$0xff]  ;;  %v3055_v9 = vld [vmem:[#allocation2 + $0x4a8] sm:$0xff] }
 0x433   :  { %2688 = vst [vmem:[#allocation5 + $0x3e0] sm:$0xff] %v2432_v29  ;;  %2689 = vst [vmem:[#allocation5 + $0x3e8] sm:$0xff] %v2433_v49  ;;  %v2031_v54 = vpop.permute.xlu1 %2030  ;;  %v2046_v35 = vpop.permute.xlu0 %2045 }
 0x434   :  { %v2430_v28 = vmul.f32 %v3032_v30, %v2031_v54  ;;  %v2431_v44 = vmul.f32 %v3033_v33, %v2031_v54  ;;  %v2436_v2 = vmul.f32 %v3034_v36, %v2046_v35  ;;  %v2437_v51 = vmul.f32 %v3035_v21, %v2046_v35  ;;  %v3057_v54 = vld [vmem:[#allocation2 + $0x498] sm:$0xff]  ;;  %v3058_v30 = vld [vmem:[#allocation2 + $0x4c0] sm:$0xff]  ;;  %v3059_v33 = vld [vmem:[#allocation2 + $0x4c8] sm:$0xff] }
 0x435   :  { %2274 = vbcast.lane.b32.xlu1 %v4013_v24, 312  ;;  %2286 = vbcast.lane.b32.xlu0 %v4013_v24, 336  ;;  %v3060_v21 = vld [vmem:[#allocation2 + $0x4b0] sm:$0xff] }
 0x436   :  { %2686 = vst [vmem:[#allocation5 + $0x3d0] sm:$0xff] %v2430_v28  ;;  %2687 = vst [vmem:[#allocation5 + $0x3d8] sm:$0xff] %v2431_v44 }
 0x437   :  { %2692 = vst [vmem:[#allocation5 + $0x400] sm:$0xff] %v2436_v2  ;;  %2693 = vst [vmem:[#allocation5 + $0x408] sm:$0xff] %v2437_v51  ;;  %v2039_v58 = vpop.permute.xlu1 %2038  ;;  %v2054_v3 = vpop.permute.xlu0 %2053 }
 0x438   :  { %v2434_v47 = vmul.f32 %v3036_v23, %v2039_v58  ;;  %v2435_v46 = vmul.f32 %v3037_v37, %v2039_v58  ;;  %v2440_v16 = vmul.f32 %v3038_v63, %v2054_v3  ;;  %v2441_v27 = vmul.f32 %v3039_v15, %v2054_v3  ;;  %v3061_v58 = vld [vmem:[#allocation2 + $0x4b8] sm:$0xff]  ;;  %v3062_v23 = vld [vmem:[#allocation2 + $0x4e0] sm:$0xff]  ;;  %v3063_v37 = vld [vmem:[#allocation2 + $0x4e8] sm:$0xff] }
 0x439   :  { %2282 = vbcast.lane.b32.xlu1 %v4013_v24, 328  ;;  %2294 = vbcast.lane.b32.xlu0 %v4013_v24, 352  ;;  %v3064_v15 = vld [vmem:[#allocation2 + $0x4d0] sm:$0xff] }
 0x43a   :  { %2690 = vst [vmem:[#allocation5 + $0x3f0] sm:$0xff] %v2434_v47  ;;  %2691 = vst [vmem:[#allocation5 + $0x3f8] sm:$0xff] %v2435_v46 }
 0x43b   :  { %2696 = vst [vmem:[#allocation5 + $0x420] sm:$0xff] %v2440_v16  ;;  %2697 = vst [vmem:[#allocation5 + $0x428] sm:$0xff] %v2441_v27  ;;  %v2050_v40 = vpop.permute.xlu1 %2049  ;;  %v2062_v14 = vpop.permute.xlu0 %2061 }
 0x43c   :  { %v2438_v60 = vmul.f32 %v3040_v50, %v2050_v40  ;;  %v2439_v61 = vmul.f32 %v3041_v8, %v2050_v40  ;;  %v2444_v22 = vmul.f32 %v3042_v10, %v2062_v14  ;;  %v2445_v11 = vmul.f32 %v3043_v38, %v2062_v14  ;;  %v3065_v40 = vld [vmem:[#allocation2 + $0x4d8] sm:$0xff]  ;;  %v3066_v50 = vld [vmem:[#allocation2 + $0x500] sm:$0xff]  ;;  %v3067_v8 = vld [vmem:[#allocation2 + $0x508] sm:$0xff] }
 0x43d   :  { %2290 = vbcast.lane.b32.xlu1 %v4013_v24, 344  ;;  %2302 = vbcast.lane.b32.xlu0 %v4013_v24, 368  ;;  %v3068_v38 = vld [vmem:[#allocation2 + $0x4f0] sm:$0xff] }
 0x43e   :  { %2694 = vst [vmem:[#allocation5 + $0x410] sm:$0xff] %v2438_v60  ;;  %2695 = vst [vmem:[#allocation5 + $0x418] sm:$0xff] %v2439_v61 }
 0x43f   :  { %2700 = vst [vmem:[#allocation5 + $0x440] sm:$0xff] %v2444_v22  ;;  %2701 = vst [vmem:[#allocation5 + $0x448] sm:$0xff] %v2445_v11  ;;  %v2058_v32 = vpop.permute.xlu1 %2057  ;;  %v2070_v5 = vpop.permute.xlu0 %2069 }
 0x440   :  { %v2442_v39 = vmul.f32 %v3044_v52, %v2058_v32  ;;  %v2443_v25 = vmul.f32 %v3045_v18, %v2058_v32  ;;  %v2448_v26 = vmul.f32 %v3046_v13, %v2070_v5  ;;  %v2449_v45 = vmul.f32 %v3047_v57, %v2070_v5  ;;  %v3069_v32 = vld [vmem:[#allocation2 + $0x4f8] sm:$0xff]  ;;  %v3070_v52 = vld [vmem:[#allocation2 + $0x520] sm:$0xff]  ;;  %v3071_v18 = vld [vmem:[#allocation2 + $0x528] sm:$0xff] }
 0x441   :  { %2298 = vbcast.lane.b32.xlu1 %v4013_v24, 360  ;;  %v3072_v57 = vld [vmem:[#allocation2 + $0x510] sm:$0xff] }
 0x442   :  { %2698 = vst [vmem:[#allocation5 + $0x430] sm:$0xff] %v2442_v39  ;;  %2699 = vst [vmem:[#allocation5 + $0x438] sm:$0xff] %v2443_v25 }
 0x443   :  { %2704 = vst [vmem:[#allocation5 + $0x460] sm:$0xff] %v2448_v26  ;;  %2705 = vst [vmem:[#allocation5 + $0x468] sm:$0xff] %v2449_v45  ;;  %v2066_v62 = vpop.permute.xlu1 %2065  ;;  %v2078_v1 = vpop.permute.xlu0 %2077 }
 0x444   :  { %v2446_v53 = vmul.f32 %v3048_v56, %v2066_v62  ;;  %v2447_v0 = vmul.f32 %v3049_v41, %v2066_v62  ;;  %v2452_v19 = vmul.f32 %v3050_v59, %v2078_v1  ;;  %v2453_v42 = vmul.f32 %v3051_v55, %v2078_v1  ;;  %v3073_v62 = vld [vmem:[#allocation2 + $0x518] sm:$0xff]  ;;  %v3074_v56 = vld [vmem:[#allocation2 + $0x540] sm:$0xff]  ;;  %v3075_v41 = vld [vmem:[#allocation2 + $0x548] sm:$0xff] }
 0x445   :  { %2306 = vbcast.lane.b32.xlu1 %v4013_v24, 376  ;;  %v3076_v55 = vld [vmem:[#allocation2 + $0x530] sm:$0xff] }
 0x446   :  { %2702 = vst [vmem:[#allocation5 + $0x450] sm:$0xff] %v2446_v53  ;;  %2703 = vst [vmem:[#allocation5 + $0x458] sm:$0xff] %v2447_v0 }
 0x447   :  { %2708 = vst [vmem:[#allocation5 + $0x480] sm:$0xff] %v2452_v19  ;;  %2709 = vst [vmem:[#allocation5 + $0x488] sm:$0xff] %v2453_v42  ;;  %v2074_v6 = vpop.permute.xlu1 %2073  ;;  %v2086_v7 = vpop.permute.xlu0 %2085 }
 0x448   :  { %v2450_v17 = vmul.f32 %v3052_v12, %v2074_v6  ;;  %v2451_v48 = vmul.f32 %v3053_v20, %v2074_v6  ;;  %v2456_v43 = vmul.f32 %v3054_v31, %v2086_v7  ;;  %v2457_v4 = vmul.f32 %v3055_v9, %v2086_v7  ;;  %v3077_v6 = vld [vmem:[#allocation2 + $0x538] sm:$0xff]  ;;  %v3078_v12 = vld [vmem:[#allocation2 + $0x560] sm:$0xff]  ;;  %v3079_v20 = vld [vmem:[#allocation2 + $0x568] sm:$0xff] }
 0x449   :  { %v3080_v9 = vld [vmem:[#allocation2 + $0x550] sm:$0xff] }
 0x44a   :  { %2706 = vst [vmem:[#allocation5 + $0x470] sm:$0xff] %v2450_v17  ;;  %2707 = vst [vmem:[#allocation5 + $0x478] sm:$0xff] %v2451_v48 }
 0x44b   :  { %2712 = vst [vmem:[#allocation5 + $0x4a0] sm:$0xff] %v2456_v43  ;;  %2713 = vst [vmem:[#allocation5 + $0x4a8] sm:$0xff] %v2457_v4  ;;  %v2082_v29 = vpop.permute.xlu1 %2081  ;;  %v2094_v24 = vpop.permute.xlu0 %2093 }
 0x44c   :  { %v2454_v49 = vmul.f32 %v3056_v34, %v2082_v29  ;;  %v2455_v35 = vmul.f32 %v3057_v54, %v2082_v29  ;;  %v2460_v28 = vmul.f32 %v3058_v30, %v2094_v24  ;;  %v2461_v44 = vmul.f32 %v3059_v33, %v2094_v24  ;;  %v3081_v29 = vld [vmem:[#allocation2 + $0x558] sm:$0xff]  ;;  %v3082_v34 = vld [vmem:[#allocation2 + $0x580] sm:$0xff]  ;;  %v3083_v54 = vld [vmem:[#allocation2 + $0x588] sm:$0xff] }
 0x44d   :  { %v3084_v33 = vld [vmem:[#allocation2 + $0x570] sm:$0xff] }
 0x44e   :  { %2710 = vst [vmem:[#allocation5 + $0x490] sm:$0xff] %v2454_v49  ;;  %2711 = vst [vmem:[#allocation5 + $0x498] sm:$0xff] %v2455_v35 }
 0x44f   :  { %2716 = vst [vmem:[#allocation5 + $0x4c0] sm:$0xff] %v2460_v28  ;;  %2717 = vst [vmem:[#allocation5 + $0x4c8] sm:$0xff] %v2461_v44  ;;  %v2090_v36 = vpop.permute.xlu1 %2089  ;;  %v2102_v2 = vpop.permute.xlu0 %2101 }
 0x450   :  { %v2458_v51 = vmul.f32 %v3060_v21, %v2090_v36  ;;  %v2459_v3 = vmul.f32 %v3061_v58, %v2090_v36  ;;  %v2464_v47 = vmul.f32 %v3062_v23, %v2102_v2  ;;  %v2465_v46 = vmul.f32 %v3063_v37, %v2102_v2  ;;  %v3085_v36 = vld [vmem:[#allocation2 + $0x578] sm:$0xff]  ;;  %v3086_v21 = vld [vmem:[#allocation2 + $0x5a0] sm:$0xff]  ;;  %v3087_v58 = vld [vmem:[#allocation2 + $0x5a8] sm:$0xff] }
 0x451   :  { %v3088_v37 = vld [vmem:[#allocation2 + $0x590] sm:$0xff] }
 0x452   :  { %2714 = vst [vmem:[#allocation5 + $0x4b0] sm:$0xff] %v2458_v51  ;;  %2715 = vst [vmem:[#allocation5 + $0x4b8] sm:$0xff] %v2459_v3 }
 0x453   :  { %2720 = vst [vmem:[#allocation5 + $0x4e0] sm:$0xff] %v2464_v47  ;;  %2721 = vst [vmem:[#allocation5 + $0x4e8] sm:$0xff] %v2465_v46  ;;  %v2098_v63 = vpop.permute.xlu1 %2097  ;;  %v2113_v16 = vpop.permute.xlu0 %2112 }
 0x454   :  { %v2462_v27 = vmul.f32 %v3064_v15, %v2098_v63  ;;  %v2463_v14 = vmul.f32 %v3065_v40, %v2098_v63  ;;  %v2468_v60 = vmul.f32 %v3066_v50, %v2113_v16  ;;  %v2469_v61 = vmul.f32 %v3067_v8, %v2113_v16  ;;  %v3089_v63 = vld [vmem:[#allocation2 + $0x598] sm:$0xff]  ;;  %v3090_v15 = vld [vmem:[#allocation2 + $0x5c0] sm:$0xff]  ;;  %v3091_v40 = vld [vmem:[#allocation2 + $0x5c8] sm:$0xff] }
 0x455   :  { %v3092_v8 = vld [vmem:[#allocation2 + $0x5b0] sm:$0xff] }
 0x456   :  { %2718 = vst [vmem:[#allocation5 + $0x4d0] sm:$0xff] %v2462_v27  ;;  %2719 = vst [vmem:[#allocation5 + $0x4d8] sm:$0xff] %v2463_v14 }
 0x457   :  { %2724 = vst [vmem:[#allocation5 + $0x500] sm:$0xff] %v2468_v60  ;;  %2725 = vst [vmem:[#allocation5 + $0x508] sm:$0xff] %v2469_v61  ;;  %v2106_v10 = vpop.permute.xlu1 %2105  ;;  %v2121_v22 = vpop.permute.xlu0 %2120 }
 0x458   :  { %v2466_v11 = vmul.f32 %v3068_v38, %v2106_v10  ;;  %v2467_v5 = vmul.f32 %v3069_v32, %v2106_v10  ;;  %v2472_v39 = vmul.f32 %v3070_v52, %v2121_v22  ;;  %v2473_v25 = vmul.f32 %v3071_v18, %v2121_v22  ;;  %v3093_v10 = vld [vmem:[#allocation2 + $0x5b8] sm:$0xff]  ;;  %v3094_v38 = vld [vmem:[#allocation2 + $0x5e0] sm:$0xff]  ;;  %v3095_v32 = vld [vmem:[#allocation2 + $0x5e8] sm:$0xff] }
 0x459   :  { %v3096_v18 = vld [vmem:[#allocation2 + $0x5d0] sm:$0xff] }
 0x45a   :  { %2722 = vst [vmem:[#allocation5 + $0x4f0] sm:$0xff] %v2466_v11  ;;  %2723 = vst [vmem:[#allocation5 + $0x4f8] sm:$0xff] %v2467_v5 }
 0x45b   :  { %2728 = vst [vmem:[#allocation5 + $0x520] sm:$0xff] %v2472_v39  ;;  %2729 = vst [vmem:[#allocation5 + $0x528] sm:$0xff] %v2473_v25  ;;  %v2117_v13 = vpop.permute.xlu1 %2116  ;;  %v2129_v26 = vpop.permute.xlu0 %2128 }
 0x45c   :  { %v2470_v45 = vmul.f32 %v3072_v57, %v2117_v13  ;;  %v2471_v1 = vmul.f32 %v3073_v62, %v2117_v13  ;;  %v2476_v53 = vmul.f32 %v3074_v56, %v2129_v26  ;;  %v2477_v0 = vmul.f32 %v3075_v41, %v2129_v26  ;;  %v3097_v13 = vld [vmem:[#allocation2 + $0x5d8] sm:$0xff]  ;;  %v3098_v57 = vld [vmem:[#allocation2 + $0x600] sm:$0xff]  ;;  %v3099_v62 = vld [vmem:[#allocation2 + $0x608] sm:$0xff] }
 0x45d   :  { %v3100_v41 = vld [vmem:[#allocation2 + $0x5f0] sm:$0xff] }
 0x45e   :  { %2726 = vst [vmem:[#allocation5 + $0x510] sm:$0xff] %v2470_v45  ;;  %2727 = vst [vmem:[#allocation5 + $0x518] sm:$0xff] %v2471_v1 }
 0x45f   :  { %2732 = vst [vmem:[#allocation5 + $0x540] sm:$0xff] %v2476_v53  ;;  %2733 = vst [vmem:[#allocation5 + $0x548] sm:$0xff] %v2477_v0  ;;  %v2125_v59 = vpop.permute.xlu1 %2124  ;;  %v2137_v19 = vpop.permute.xlu0 %2136 }
 0x460   :  { %v2474_v42 = vmul.f32 %v3076_v55, %v2125_v59  ;;  %v2475_v7 = vmul.f32 %v3077_v6, %v2125_v59  ;;  %v2480_v17 = vmul.f32 %v3078_v12, %v2137_v19  ;;  %v2481_v48 = vmul.f32 %v3079_v20, %v2137_v19  ;;  %v3101_v59 = vld [vmem:[#allocation2 + $0x5f8] sm:$0xff]  ;;  %v3102_v55 = vld [vmem:[#allocation2 + $0x620] sm:$0xff]  ;;  %v3103_v6 = vld [vmem:[#allocation2 + $0x628] sm:$0xff] }
 0x461   :  { %v3104_v20 = vld [vmem:[#allocation2 + $0x610] sm:$0xff] }
 0x462   :  { %2730 = vst [vmem:[#allocation5 + $0x530] sm:$0xff] %v2474_v42  ;;  %2731 = vst [vmem:[#allocation5 + $0x538] sm:$0xff] %v2475_v7 }
 0x463   :  { %2736 = vst [vmem:[#allocation5 + $0x560] sm:$0xff] %v2480_v17  ;;  %2737 = vst [vmem:[#allocation5 + $0x568] sm:$0xff] %v2481_v48  ;;  %v2133_v31 = vpop.permute.xlu1 %2132  ;;  %v2145_v43 = vpop.permute.xlu0 %2144 }
 0x464   :  { %v2478_v4 = vmul.f32 %v3080_v9, %v2133_v31  ;;  %v2479_v24 = vmul.f32 %v3081_v29, %v2133_v31  ;;  %v2484_v49 = vmul.f32 %v3082_v34, %v2145_v43  ;;  %v2485_v35 = vmul.f32 %v3083_v54, %v2145_v43  ;;  %v3105_v31 = vld [vmem:[#allocation2 + $0x618] sm:$0xff]  ;;  %v3106_v9 = vld [vmem:[#allocation2 + $0x640] sm:$0xff]  ;;  %v3107_v29 = vld [vmem:[#allocation2 + $0x648] sm:$0xff] }
 0x465   :  { %v3108_v54 = vld [vmem:[#allocation2 + $0x630] sm:$0xff] }
 0x466   :  { %2734 = vst [vmem:[#allocation5 + $0x550] sm:$0xff] %v2478_v4  ;;  %2735 = vst [vmem:[#allocation5 + $0x558] sm:$0xff] %v2479_v24 }
 0x467   :  { %2740 = vst [vmem:[#allocation5 + $0x580] sm:$0xff] %v2484_v49  ;;  %2741 = vst [vmem:[#allocation5 + $0x588] sm:$0xff] %v2485_v35  ;;  %v2141_v30 = vpop.permute.xlu1 %2140  ;;  %v2153_v28 = vpop.permute.xlu0 %2152 }
 0x468   :  { %v2482_v44 = vmul.f32 %v3084_v33, %v2141_v30  ;;  %v2483_v2 = vmul.f32 %v3085_v36, %v2141_v30  ;;  %v2488_v51 = vmul.f32 %v3086_v21, %v2153_v28  ;;  %v2489_v3 = vmul.f32 %v3087_v58, %v2153_v28  ;;  %v3109_v30 = vld [vmem:[#allocation2 + $0x638] sm:$0xff]  ;;  %v3110_v33 = vld [vmem:[#allocation2 + $0x660] sm:$0xff]  ;;  %v3111_v36 = vld [vmem:[#allocation2 + $0x668] sm:$0xff] }
 0x469   :  { %v3112_v58 = vld [vmem:[#allocation2 + $0x650] sm:$0xff] }
 0x46a   :  { %2738 = vst [vmem:[#allocation5 + $0x570] sm:$0xff] %v2482_v44  ;;  %2739 = vst [vmem:[#allocation5 + $0x578] sm:$0xff] %v2483_v2 }
 0x46b   :  { %2744 = vst [vmem:[#allocation5 + $0x5a0] sm:$0xff] %v2488_v51  ;;  %2745 = vst [vmem:[#allocation5 + $0x5a8] sm:$0xff] %v2489_v3  ;;  %v2149_v23 = vpop.permute.xlu1 %2148  ;;  %v2161_v47 = vpop.permute.xlu0 %2160 }
 0x46c   :  { %v2486_v46 = vmul.f32 %v3088_v37, %v2149_v23  ;;  %v2487_v16 = vmul.f32 %v3089_v63, %v2149_v23  ;;  %v2492_v27 = vmul.f32 %v3090_v15, %v2161_v47  ;;  %v2493_v14 = vmul.f32 %v3091_v40, %v2161_v47  ;;  %v3113_v23 = vld [vmem:[#allocation2 + $0x658] sm:$0xff]  ;;  %v3114_v37 = vld [vmem:[#allocation2 + $0x680] sm:$0xff]  ;;  %v3115_v63 = vld [vmem:[#allocation2 + $0x688] sm:$0xff] }
 0x46d   :  { %v3116_v40 = vld [vmem:[#allocation2 + $0x670] sm:$0xff] }
 0x46e   :  { %2742 = vst [vmem:[#allocation5 + $0x590] sm:$0xff] %v2486_v46  ;;  %2743 = vst [vmem:[#allocation5 + $0x598] sm:$0xff] %v2487_v16 }
 0x46f   :  { %2748 = vst [vmem:[#allocation5 + $0x5c0] sm:$0xff] %v2492_v27  ;;  %2749 = vst [vmem:[#allocation5 + $0x5c8] sm:$0xff] %v2493_v14  ;;  %v2157_v50 = vpop.permute.xlu1 %2156  ;;  %v2169_v60 = vpop.permute.xlu0 %2168 }
 0x470   :  { %v2490_v61 = vmul.f32 %v3092_v8, %v2157_v50  ;;  %v2491_v22 = vmul.f32 %v3093_v10, %v2157_v50  ;;  %v2496_v11 = vmul.f32 %v3094_v38, %v2169_v60  ;;  %v2497_v5 = vmul.f32 %v3095_v32, %v2169_v60  ;;  %v3117_v50 = vld [vmem:[#allocation2 + $0x678] sm:$0xff]  ;;  %v3118_v8 = vld [vmem:[#allocation2 + $0x6a0] sm:$0xff]  ;;  %v3119_v10 = vld [vmem:[#allocation2 + $0x6a8] sm:$0xff] }
 0x471   :  { %v3120_v32 = vld [vmem:[#allocation2 + $0x690] sm:$0xff] }
 0x472   :  { %2746 = vst [vmem:[#allocation5 + $0x5b0] sm:$0xff] %v2490_v61  ;;  %2747 = vst [vmem:[#allocation5 + $0x5b8] sm:$0xff] %v2491_v22 }
 0x473   :  { %2752 = vst [vmem:[#allocation5 + $0x5e0] sm:$0xff] %v2496_v11  ;;  %2753 = vst [vmem:[#allocation5 + $0x5e8] sm:$0xff] %v2497_v5  ;;  %v2165_v52 = vpop.permute.xlu1 %2164  ;;  %v2180_v39 = vpop.permute.xlu0 %2179 }
 0x474   :  { %v2494_v25 = vmul.f32 %v3096_v18, %v2165_v52  ;;  %v2495_v26 = vmul.f32 %v3097_v13, %v2165_v52  ;;  %v2500_v45 = vmul.f32 %v3098_v57, %v2180_v39  ;;  %v2501_v1 = vmul.f32 %v3099_v62, %v2180_v39  ;;  %v3121_v52 = vld [vmem:[#allocation2 + $0x698] sm:$0xff]  ;;  %v3122_v18 = vld [vmem:[#allocation2 + $0x6c0] sm:$0xff]  ;;  %v3123_v13 = vld [vmem:[#allocation2 + $0x6c8] sm:$0xff] }
 0x475   :  { %v3124_v62 = vld [vmem:[#allocation2 + $0x6b0] sm:$0xff] }
 0x476   :  { %2750 = vst [vmem:[#allocation5 + $0x5d0] sm:$0xff] %v2494_v25  ;;  %2751 = vst [vmem:[#allocation5 + $0x5d8] sm:$0xff] %v2495_v26 }
 0x477   :  { %2756 = vst [vmem:[#allocation5 + $0x600] sm:$0xff] %v2500_v45  ;;  %2757 = vst [vmem:[#allocation5 + $0x608] sm:$0xff] %v2501_v1  ;;  %v2173_v56 = vpop.permute.xlu1 %2172  ;;  %v2188_v53 = vpop.permute.xlu0 %2187 }
 0x478   :  { %v2498_v0 = vmul.f32 %v3100_v41, %v2173_v56  ;;  %v2499_v19 = vmul.f32 %v3101_v59, %v2173_v56  ;;  %v2504_v42 = vmul.f32 %v3102_v55, %v2188_v53  ;;  %v2505_v7 = vmul.f32 %v3103_v6, %v2188_v53  ;;  %v3125_v56 = vld [vmem:[#allocation2 + $0x6b8] sm:$0xff]  ;;  %v3126_v41 = vld [vmem:[#allocation2 + $0x6e0] sm:$0xff]  ;;  %v3127_v59 = vld [vmem:[#allocation2 + $0x6e8] sm:$0xff] }
 0x479   :  { %v3128_v6 = vld [vmem:[#allocation2 + $0x6d0] sm:$0xff] }
 0x47a   :  { %2754 = vst [vmem:[#allocation5 + $0x5f0] sm:$0xff] %v2498_v0  ;;  %2755 = vst [vmem:[#allocation5 + $0x5f8] sm:$0xff] %v2499_v19 }
 0x47b   :  { %2760 = vst [vmem:[#allocation5 + $0x620] sm:$0xff] %v2504_v42  ;;  %2761 = vst [vmem:[#allocation5 + $0x628] sm:$0xff] %v2505_v7  ;;  %v2184_v12 = vpop.permute.xlu1 %2183  ;;  %v2196_v17 = vpop.permute.xlu0 %2195 }
 0x47c   :  { %v2502_v48 = vmul.f32 %v3104_v20, %v2184_v12  ;;  %v2503_v43 = vmul.f32 %v3105_v31, %v2184_v12  ;;  %v2508_v4 = vmul.f32 %v3106_v9, %v2196_v17  ;;  %v2509_v24 = vmul.f32 %v3107_v29, %v2196_v17  ;;  %v3129_v12 = vld [vmem:[#allocation2 + $0x6d8] sm:$0xff]  ;;  %v3130_v20 = vld [vmem:[#allocation2 + $0x700] sm:$0xff]  ;;  %v3131_v31 = vld [vmem:[#allocation2 + $0x708] sm:$0xff] }
 0x47d   :  { %v3132_v29 = vld [vmem:[#allocation2 + $0x6f0] sm:$0xff] }
 0x47e   :  { %2758 = vst [vmem:[#allocation5 + $0x610] sm:$0xff] %v2502_v48  ;;  %2759 = vst [vmem:[#allocation5 + $0x618] sm:$0xff] %v2503_v43 }
 0x47f   :  { %2764 = vst [vmem:[#allocation5 + $0x640] sm:$0xff] %v2508_v4  ;;  %2765 = vst [vmem:[#allocation5 + $0x648] sm:$0xff] %v2509_v24  ;;  %v2192_v34 = vpop.permute.xlu1 %2191  ;;  %v2204_v49 = vpop.permute.xlu0 %2203 }
 0x480   :  { %v2506_v35 = vmul.f32 %v3108_v54, %v2192_v34  ;;  %v2507_v28 = vmul.f32 %v3109_v30, %v2192_v34  ;;  %v2512_v44 = vmul.f32 %v3110_v33, %v2204_v49  ;;  %v2513_v2 = vmul.f32 %v3111_v36, %v2204_v49  ;;  %v3133_v34 = vld [vmem:[#allocation2 + $0x6f8] sm:$0xff]  ;;  %v3134_v54 = vld [vmem:[#allocation2 + $0x720] sm:$0xff]  ;;  %v3135_v30 = vld [vmem:[#allocation2 + $0x728] sm:$0xff] }
 0x481   :  { %v3136_v36 = vld [vmem:[#allocation2 + $0x710] sm:$0xff] }
 0x482   :  { %2762 = vst [vmem:[#allocation5 + $0x630] sm:$0xff] %v2506_v35  ;;  %2763 = vst [vmem:[#allocation5 + $0x638] sm:$0xff] %v2507_v28 }
 0x483   :  { %2768 = vst [vmem:[#allocation5 + $0x660] sm:$0xff] %v2512_v44  ;;  %2769 = vst [vmem:[#allocation5 + $0x668] sm:$0xff] %v2513_v2  ;;  %v2200_v21 = vpop.permute.xlu1 %2199  ;;  %v2212_v51 = vpop.permute.xlu0 %2211 }
 0x484   :  { %v2510_v3 = vmul.f32 %v3112_v58, %v2200_v21  ;;  %v2511_v47 = vmul.f32 %v3113_v23, %v2200_v21  ;;  %v2516_v46 = vmul.f32 %v3114_v37, %v2212_v51  ;;  %v2517_v16 = vmul.f32 %v3115_v63, %v2212_v51  ;;  %v3137_v21 = vld [vmem:[#allocation2 + $0x718] sm:$0xff]  ;;  %v3138_v58 = vld [vmem:[#allocation2 + $0x740] sm:$0xff]  ;;  %v3139_v23 = vld [vmem:[#allocation2 + $0x748] sm:$0xff] }
 0x485   :  { %v3140_v63 = vld [vmem:[#allocation2 + $0x730] sm:$0xff] }
 0x486   :  { %2766 = vst [vmem:[#allocation5 + $0x650] sm:$0xff] %v2510_v3  ;;  %2767 = vst [vmem:[#allocation5 + $0x658] sm:$0xff] %v2511_v47 }
 0x487   :  { %2772 = vst [vmem:[#allocation5 + $0x680] sm:$0xff] %v2516_v46  ;;  %2773 = vst [vmem:[#allocation5 + $0x688] sm:$0xff] %v2517_v16  ;;  %v2208_v15 = vpop.permute.xlu1 %2207  ;;  %v2220_v27 = vpop.permute.xlu0 %2219 }
 0x488   :  { %v2514_v14 = vmul.f32 %v3116_v40, %v2208_v15  ;;  %v2515_v60 = vmul.f32 %v3117_v50, %v2208_v15  ;;  %v2520_v61 = vmul.f32 %v3118_v8, %v2220_v27  ;;  %v2521_v22 = vmul.f32 %v3119_v10, %v2220_v27  ;;  %v3141_v15 = vld [vmem:[#allocation2 + $0x738] sm:$0xff]  ;;  %v3142_v40 = vld [vmem:[#allocation2 + $0x760] sm:$0xff]  ;;  %v3143_v50 = vld [vmem:[#allocation2 + $0x768] sm:$0xff] }
 0x489   :  { %v3144_v10 = vld [vmem:[#allocation2 + $0x750] sm:$0xff] }
 0x48a   :  { %2770 = vst [vmem:[#allocation5 + $0x670] sm:$0xff] %v2514_v14  ;;  %2771 = vst [vmem:[#allocation5 + $0x678] sm:$0xff] %v2515_v60 }
 0x48b   :  { %2776 = vst [vmem:[#allocation5 + $0x6a0] sm:$0xff] %v2520_v61  ;;  %2777 = vst [vmem:[#allocation5 + $0x6a8] sm:$0xff] %v2521_v22  ;;  %v2216_v38 = vpop.permute.xlu1 %2215  ;;  %v2228_v11 = vpop.permute.xlu0 %2227 }
 0x48c   :  { %v2518_v5 = vmul.f32 %v3120_v32, %v2216_v38  ;;  %v2519_v39 = vmul.f32 %v3121_v52, %v2216_v38  ;;  %v2524_v25 = vmul.f32 %v3122_v18, %v2228_v11  ;;  %v2525_v26 = vmul.f32 %v3123_v13, %v2228_v11  ;;  %v3145_v38 = vld [vmem:[#allocation2 + $0x758] sm:$0xff]  ;;  %v3146_v32 = vld [vmem:[#allocation2 + $0x780] sm:$0xff]  ;;  %v3147_v52 = vld [vmem:[#allocation2 + $0x788] sm:$0xff] }
 0x48d   :  { %v3148_v13 = vld [vmem:[#allocation2 + $0x770] sm:$0xff] }
 0x48e   :  { %2774 = vst [vmem:[#allocation5 + $0x690] sm:$0xff] %v2518_v5  ;;  %2775 = vst [vmem:[#allocation5 + $0x698] sm:$0xff] %v2519_v39 }
 0x48f   :  { %2780 = vst [vmem:[#allocation5 + $0x6c0] sm:$0xff] %v2524_v25  ;;  %2781 = vst [vmem:[#allocation5 + $0x6c8] sm:$0xff] %v2525_v26  ;;  %v2224_v57 = vpop.permute.xlu1 %2223  ;;  %v2236_v45 = vpop.permute.xlu0 %2235 }
 0x490   :  { %v2522_v1 = vmul.f32 %v3124_v62, %v2224_v57  ;;  %v2523_v53 = vmul.f32 %v3125_v56, %v2224_v57  ;;  %v2528_v0 = vmul.f32 %v3126_v41, %v2236_v45  ;;  %v2529_v19 = vmul.f32 %v3127_v59, %v2236_v45  ;;  %v3149_v57 = vld [vmem:[#allocation2 + $0x778] sm:$0xff]  ;;  %v3150_v62 = vld [vmem:[#allocation2 + $0x7a0] sm:$0xff]  ;;  %v3151_v56 = vld [vmem:[#allocation2 + $0x7a8] sm:$0xff] }
 0x491   :  { %v3152_v59 = vld [vmem:[#allocation2 + $0x790] sm:$0xff] }
 0x492   :  { %2778 = vst [vmem:[#allocation5 + $0x6b0] sm:$0xff] %v2522_v1  ;;  %2779 = vst [vmem:[#allocation5 + $0x6b8] sm:$0xff] %v2523_v53 }
 0x493   :  { %2784 = vst [vmem:[#allocation5 + $0x6e0] sm:$0xff] %v2528_v0  ;;  %2785 = vst [vmem:[#allocation5 + $0x6e8] sm:$0xff] %v2529_v19  ;;  %v2232_v55 = vpop.permute.xlu1 %2231  ;;  %v2247_v42 = vpop.permute.xlu0 %2246 }
 0x494   :  { %v2526_v7 = vmul.f32 %v3128_v6, %v2232_v55  ;;  %v2527_v17 = vmul.f32 %v3129_v12, %v2232_v55  ;;  %v2532_v48 = vmul.f32 %v3130_v20, %v2247_v42  ;;  %v2533_v43 = vmul.f32 %v3131_v31, %v2247_v42  ;;  %v3153_v55 = vld [vmem:[#allocation2 + $0x798] sm:$0xff]  ;;  %v3154_v6 = vld [vmem:[#allocation2 + $0x7c0] sm:$0xff]  ;;  %v3155_v12 = vld [vmem:[#allocation2 + $0x7c8] sm:$0xff] }
 0x495   :  { %v3156_v31 = vld [vmem:[#allocation2 + $0x7b0] sm:$0xff] }
 0x496   :  { %2782 = vst [vmem:[#allocation5 + $0x6d0] sm:$0xff] %v2526_v7  ;;  %2783 = vst [vmem:[#allocation5 + $0x6d8] sm:$0xff] %v2527_v17 }
 0x497   :  { %2788 = vst [vmem:[#allocation5 + $0x700] sm:$0xff] %v2532_v48  ;;  %2789 = vst [vmem:[#allocation5 + $0x708] sm:$0xff] %v2533_v43  ;;  %v2240_v9 = vpop.permute.xlu1 %2239  ;;  %v2255_v4 = vpop.permute.xlu0 %2254 }
 0x498   :  { %v2530_v24 = vmul.f32 %v3132_v29, %v2240_v9  ;;  %v2531_v49 = vmul.f32 %v3133_v34, %v2240_v9  ;;  %v2536_v35 = vmul.f32 %v3134_v54, %v2255_v4  ;;  %v2537_v28 = vmul.f32 %v3135_v30, %v2255_v4  ;;  %v3157_v9 = vld [vmem:[#allocation2 + $0x7b8] sm:$0xff]  ;;  %v3158_v29 = vld [vmem:[#allocation2 + $0x7e0] sm:$0xff]  ;;  %v3159_v34 = vld [vmem:[#allocation2 + $0x7e8] sm:$0xff] }
 0x49a   :  { %2786 = vst [vmem:[#allocation5 + $0x6f0] sm:$0xff] %v2530_v24  ;;  %2787 = vst [vmem:[#allocation5 + $0x6f8] sm:$0xff] %v2531_v49 }
 0x49b   :  { %2792 = vst [vmem:[#allocation5 + $0x720] sm:$0xff] %v2536_v35  ;;  %2793 = vst [vmem:[#allocation5 + $0x728] sm:$0xff] %v2537_v28  ;;  %v2251_v33 = vpop.permute.xlu1 %2250  ;;  %v2263_v44 = vpop.permute.xlu0 %2262  ;;  %v3160_v35 = vld [vmem:[#allocation2 + $0x7d0] sm:$0xff]  ;;  %v3161_v28 = vld [vmem:[#allocation2 + $0x7d8] sm:$0xff] }
 0x49c   :  { %v2534_v2 = vmul.f32 %v3136_v36, %v2251_v33  ;;  %v2535_v51 = vmul.f32 %v3137_v21, %v2251_v33  ;;  %v2540_v3 = vmul.f32 %v3138_v58, %v2263_v44  ;;  %v2541_v47 = vmul.f32 %v3139_v23, %v2263_v44  ;;  %v3162_v36 = vld [vmem:[#allocation2 + $0x7f0] sm:$0xff]  ;;  %v3163_v21 = vld [vmem:[#allocation2 + $0x7f8] sm:$0xff] }
 0x49e   :  { %2790 = vst [vmem:[#allocation5 + $0x710] sm:$0xff] %v2534_v2  ;;  %2791 = vst [vmem:[#allocation5 + $0x718] sm:$0xff] %v2535_v51 }
 0x49f   :  { %2796 = vst [vmem:[#allocation5 + $0x740] sm:$0xff] %v2540_v3  ;;  %2797 = vst [vmem:[#allocation5 + $0x748] sm:$0xff] %v2541_v47  ;;  %v2259_v37 = vpop.permute.xlu1 %2258  ;;  %v2271_v46 = vpop.permute.xlu0 %2270 }
 0x4a0   :  { %v2538_v16 = vmul.f32 %v3140_v63, %v2259_v37  ;;  %v2539_v27 = vmul.f32 %v3141_v15, %v2259_v37  ;;  %v2544_v14 = vmul.f32 %v3142_v40, %v2271_v46  ;;  %v2545_v60 = vmul.f32 %v3143_v50, %v2271_v46 }
 0x4a2   :  { %2794 = vst [vmem:[#allocation5 + $0x730] sm:$0xff] %v2538_v16  ;;  %2795 = vst [vmem:[#allocation5 + $0x738] sm:$0xff] %v2539_v27 }
 0x4a3   :  { %2800 = vst [vmem:[#allocation5 + $0x760] sm:$0xff] %v2544_v14  ;;  %2801 = vst [vmem:[#allocation5 + $0x768] sm:$0xff] %v2545_v60  ;;  %v2267_v8 = vpop.permute.xlu1 %2266  ;;  %v2279_v61 = vpop.permute.xlu0 %2278 }
 0x4a4   :  { %v2542_v22 = vmul.f32 %v3144_v10, %v2267_v8  ;;  %v2543_v11 = vmul.f32 %v3145_v38, %v2267_v8  ;;  %v2548_v5 = vmul.f32 %v3146_v32, %v2279_v61  ;;  %v2549_v39 = vmul.f32 %v3147_v52, %v2279_v61 }
 0x4a6   :  { %2798 = vst [vmem:[#allocation5 + $0x750] sm:$0xff] %v2542_v22  ;;  %2799 = vst [vmem:[#allocation5 + $0x758] sm:$0xff] %v2543_v11 }
 0x4a7   :  { %2804 = vst [vmem:[#allocation5 + $0x780] sm:$0xff] %v2548_v5  ;;  %2805 = vst [vmem:[#allocation5 + $0x788] sm:$0xff] %v2549_v39  ;;  %v2275_v18 = vpop.permute.xlu1 %2274  ;;  %v2287_v25 = vpop.permute.xlu0 %2286 }
 0x4a8   :  { %v2546_v26 = vmul.f32 %v3148_v13, %v2275_v18  ;;  %v2547_v45 = vmul.f32 %v3149_v57, %v2275_v18  ;;  %v2552_v1 = vmul.f32 %v3150_v62, %v2287_v25  ;;  %v2553_v53 = vmul.f32 %v3151_v56, %v2287_v25 }
 0x4aa   :  { %2802 = vst [vmem:[#allocation5 + $0x770] sm:$0xff] %v2546_v26  ;;  %2803 = vst [vmem:[#allocation5 + $0x778] sm:$0xff] %v2547_v45 }
 0x4ab   :  { %2808 = vst [vmem:[#allocation5 + $0x7a0] sm:$0xff] %v2552_v1  ;;  %2809 = vst [vmem:[#allocation5 + $0x7a8] sm:$0xff] %v2553_v53  ;;  %v2283_v41 = vpop.permute.xlu1 %2282  ;;  %v2295_v0 = vpop.permute.xlu0 %2294 }
 0x4ac   :  { %v2550_v19 = vmul.f32 %v3152_v59, %v2283_v41  ;;  %v2551_v42 = vmul.f32 %v3153_v55, %v2283_v41  ;;  %v2556_v7 = vmul.f32 %v3154_v6, %v2295_v0  ;;  %v2557_v17 = vmul.f32 %v3155_v12, %v2295_v0 }
 0x4ae   :  { %2806 = vst [vmem:[#allocation5 + $0x790] sm:$0xff] %v2550_v19  ;;  %2807 = vst [vmem:[#allocation5 + $0x798] sm:$0xff] %v2551_v42 }
 0x4af   :  { %2812 = vst [vmem:[#allocation5 + $0x7c0] sm:$0xff] %v2556_v7  ;;  %2813 = vst [vmem:[#allocation5 + $0x7c8] sm:$0xff] %v2557_v17  ;;  %v2291_v20 = vpop.permute.xlu1 %2290  ;;  %v2303_v48 = vpop.permute.xlu0 %2302 }
 0x4b0   :  { %v2554_v43 = vmul.f32 %v3156_v31, %v2291_v20  ;;  %v2555_v4 = vmul.f32 %v3157_v9, %v2291_v20  ;;  %v2560_v24 = vmul.f32 %v3158_v29, %v2303_v48  ;;  %v2561_v49 = vmul.f32 %v3159_v34, %v2303_v48 }
 0x4b2   :  { %2810 = vst [vmem:[#allocation5 + $0x7b0] sm:$0xff] %v2554_v43  ;;  %2811 = vst [vmem:[#allocation5 + $0x7b8] sm:$0xff] %v2555_v4 }
 0x4b3   :  { %2816 = vst [vmem:[#allocation5 + $0x7e0] sm:$0xff] %v2560_v24  ;;  %2817 = vst [vmem:[#allocation5 + $0x7e8] sm:$0xff] %v2561_v49  ;;  %v2299_v54 = vpop.permute.xlu1 %2298 }
 0x4b4   :  { %v2558_v30 = vmul.f32 %v3160_v35, %v2299_v54  ;;  %v2559_v33 = vmul.f32 %v3161_v28, %v2299_v54 }
 0x4b6   :  { %2814 = vst [vmem:[#allocation5 + $0x7d0] sm:$0xff] %v2558_v30  ;;  %2815 = vst [vmem:[#allocation5 + $0x7d8] sm:$0xff] %v2559_v33 }
 0x4b7   :  { %v2307_v44 = vpop.permute.xlu1 %2306 }
 0x4b8   :  { %v2562_v2 = vmul.f32 %v3162_v36, %v2307_v44  ;;  %v2563_v51 = vmul.f32 %v3163_v21, %v2307_v44 }
 0x4ba   :  { %2818 = vst [vmem:[#allocation5 + $0x7f0] sm:$0xff] %v2562_v2  ;;  %2819 = vst [vmem:[#allocation5 + $0x7f8] sm:$0xff] %v2563_v51 }
 0x4bb   :  { %3195 = shalt.err (!%p3192_p9)
}
 0x4bc   :  { %2831 = dma.vmem_to_hbm [thread:$0]  %s2826_s25, 32768, %s4042_s3, [#allocation4], %s3209_s15, %s3209_s15, %s3210_s16  }
 0x4bd   :  { %3206 = dma.done.wait [#allocation4], 32768  }
 0x4be   :  { %3207 = vsyncadd [#allocation4], 4294934528 }
 0x4bf   :  { %2835 = vsyncpa [#allocation3], 1 }
 0x4c0   :  { %2836 = vsyncpa [#allocation4], 1 }

</bundles_post_ra>
